<compile_context>
chip_gen: v6e
topology: v6e:2x2x1
jax: 0.10.0
libtpu: 0.0.40
codegen_flags: <defaults>
</compile_context>

<pallas_src>
import math

import jax
import jax.numpy as jnp
from jax.experimental import pallas as pl
from jax.experimental.pallas import tpu as pltpu

# ---- module hyper-parameters (from the PyTorch source) ----
N_EMBD = 256
N_HEAD = 8
HEAD_DIM = N_EMBD // N_HEAD
LN_EPS = 1e-5
ROW_TARGET = 1024          # target rows (BB*T) per fused tile


def _layernorm(x, w, b, eps=LN_EPS):
    mu = jnp.mean(x, axis=-1, keepdims=True)
    var = jnp.mean((x - mu) ** 2, axis=-1, keepdims=True)
    return (x - mu) * jax.lax.rsqrt(var + eps) * w + b


def block_kernel(x_ref, wqkv_ref, bqkv_ref, wo_ref, bo_ref,
                 ln1w_ref, ln1b_ref, w1_ref, b1_ref, w2_ref, b2_ref,
                 ln2w_ref, ln2b_ref, out_ref):
    """One grid step == BB batch elements.  x_ref: (BB, T, C) f32."""
    BB, T, C = x_ref.shape
    R = BB * T
    H, hd = N_HEAD, HEAD_DIM

    xf = x_ref[...].reshape(R, C)                       # (R, C) f32
    xb = xf.astype(jnp.bfloat16)

    # ---- QKV projection: one tall (R, C) @ (C, 3C) bf16 matmul, f32 acc ----
    qkv = jnp.dot(xb, wqkv_ref[...], preferred_element_type=jnp.float32)
    qkv = qkv + bqkv_ref[...]                           # (R, 3C); 1/sqrt(hd) pre-folded into Q

    qkv_b = qkv.astype(jnp.bfloat16).reshape(BB, T, 3 * C)

    def heads(off):
        # (BB, T, C) slab -> (H*BB, T, hd), head-major along the batch dim, so
        # attention is a single 3-D (one-batch-dim) einsum instead of an 8-way
        # unrolled per-head loop.
        return jnp.concatenate(
            [qkv_b[:, :, off + h * hd: off + (h + 1) * hd] for h in range(H)],
            axis=0)

    q = heads(0 * C)                                    # (H*BB, T, hd) bf16
    k = heads(1 * C)
    v = heads(2 * C)

    # ---- attention, batched over (head, batch) in one shot ----
    s = jnp.einsum("gtd,gsd->gts", q, k,
                   preferred_element_type=jnp.float32)  # (H*BB, T, T) f32
    m = s.max(axis=-1, keepdims=True)
    p = jnp.exp(s - m)
    p = p * pl.reciprocal(p.sum(axis=-1, keepdims=True), approx=False)
    o = jnp.einsum("gts,gsd->gtd", p.astype(jnp.bfloat16), v,
                   preferred_element_type=jnp.float32)  # (H*BB, T, hd) f32

    # head concat -> (BB, T, C) -> single K=256 out-projection GEMM
    o_cat = jnp.concatenate([o[h * BB:(h + 1) * BB] for h in range(H)], axis=-1)
    y = jnp.dot(o_cat.reshape(R, C).astype(jnp.bfloat16), wo_ref[...],
                preferred_element_type=jnp.float32) + bo_ref[...]

    # ---- residual + LayerNorm 1 (f32) ----
    x1 = _layernorm(xf + y, ln1w_ref[...], ln1b_ref[...])

    # ---- FeedForward: Linear(C,4C) -> ReLU -> Linear(4C,C) (-> Dropout: identity) ----
    h1 = jnp.dot(x1.astype(jnp.bfloat16), w1_ref[...],
                 preferred_element_type=jnp.float32) + b1_ref[...]
    h1 = jnp.maximum(h1, 0.0)
    y2 = jnp.dot(h1.astype(jnp.bfloat16), w2_ref[...],
                 preferred_element_type=jnp.float32) + b2_ref[...]

    # ---- residual + LayerNorm 2 (f32) ----
    x2 = _layernorm(x1 + y2, ln2w_ref[...], ln2b_ref[...])
    out_ref[...] = x2.reshape(BB, T, C).astype(out_ref.dtype)


def _hw_config():
    """(vmem_limit_bytes, multi_tc) sized for the local chip generation.

    64 MiB physical VMEM is used as the v7x fingerprint (2 TensorCores, tighter
    budget); anything larger is treated as v5e/v6e class (128 MiB, 1 TC)."""
    cap = 128 * 1024 * 1024
    try:
        info = pltpu.get_tpu_info()
        cap = int(getattr(info, "vmem_capacity_bytes", cap)) or cap
    except Exception:
        pass
    if cap <= 64 * 1024 * 1024:
        return 48 * 1024 * 1024, True      # v7x-class: headroom + feed both TCs
    return 96 * 1024 * 1024, False          # v5e / v6e: big tiles, serial grid


def _pick_bb(B, T, vmem_budget, multi_tc):
    """Largest divisor of B such that the tile has <= ROW_TARGET rows and its
    (over-estimated, everything-live) working set fits the VMEM budget.
    On 2-TC chips (v7x) keep the grid >= 2 so dimension_semantics='parallel'
    can shard it; on 1-TC chips the grid is a serial loop so prefer the biggest
    tile.  Batches are only merged when T % 8 == 0 so the in-kernel
    (BB,T,C) <-> (BB*T,C) reshapes are sublane-retiling-free."""
    if T % 8 != 0:
        return 1
    C = N_EMBD
    best = 1
    for d in range(1, B + 1):
        if B % d:
            continue
        if d * T > ROW_TARGET:
            continue
        if multi_tc and B >= 2 and B // d < 2:
            continue
        # row-proportional f32/bf16 intermediates + per-head TxT scores + weights
        est = 90 * d * T * C + 10 * d * N_HEAD * T * T + (2 << 20)
        if est > vmem_budget:
            continue
        best = d
    return best


def _prep_params(params):
    """Fold the 1/sqrt(hd) scale into the Q third of wqkv/bqkv and cast weight
    matrices to bf16 (biases / LN params stay f32)."""
    C = N_EMBD
    scale = 1.0 / math.sqrt(HEAD_DIM)
    sv = jnp.concatenate([jnp.full((C,), scale, jnp.float32),
                          jnp.ones((2 * C,), jnp.float32)])
    return dict(
        wqkv=(params["wqkv"] * sv[None, :]).astype(jnp.bfloat16),
        bqkv=(params["bqkv"] * sv[None, :]).astype(jnp.float32),
        wo=params["wo"].astype(jnp.bfloat16),
        bo=params["bo"].astype(jnp.float32),
        ln1_w=params["ln1_w"].astype(jnp.float32),
        ln1_b=params["ln1_b"].astype(jnp.float32),
        w1=params["w1"].astype(jnp.bfloat16),
        b1=params["b1"].astype(jnp.float32),
        w2=params["w2"].astype(jnp.bfloat16),
        b2=params["b2"].astype(jnp.float32),
        ln2_w=params["ln2_w"].astype(jnp.float32),
        ln2_b=params["ln2_b"].astype(jnp.float32),
    )


def block_forward(x, params):
    """x: (B, T, C) float32.  Returns (B, T, C) float32."""
    B, T, C = x.shape
    assert C == N_EMBD
    p = _prep_params(params)
    vmem_limit, multi_tc = _hw_config()
    BB = _pick_bb(B, T, vmem_limit, multi_tc)
    grid = (B // BB,)

    def full(arr):
        n = arr.ndim
        return pl.BlockSpec(arr.shape, lambda b, _n=n: (0,) * _n)

    order = ["wqkv", "bqkv", "wo", "bo", "ln1_w", "ln1_b",
             "w1", "b1", "w2", "b2", "ln2_w", "ln2_b"]
    in_specs = ([pl.BlockSpec((BB, T, C), lambda b: (b, 0, 0))]
                + [full(p[k]) for k in order])

    # NOTE: output stays f32 for parity with the PyTorch module; switch the
    # out_shape dtype to bf16 to halve writeback bytes if downstream accepts it.
    return pl.pallas_call(
        block_kernel,
        out_shape=jax.ShapeDtypeStruct((B, T, C), jnp.float32),
        grid_spec=pltpu.PrefetchScalarGridSpec(
            num_scalar_prefetch=0,
            grid=grid,
            in_specs=in_specs,
            out_specs=pl.BlockSpec((BB, T, C), lambda b: (b, 0, 0)),
        ),
        compiler_params=pltpu.CompilerParams(
            dimension_semantics=("parallel",),
            vmem_limit_bytes=vmem_limit,
        ),
    )(x, *[p[k] for k in order])


# ---------------- pure-JAX f32 reference (for correctness check) ----------------
def block_reference(x, params):
    qkv = x @ params["wqkv"] + params["bqkv"]                 # (B, T, 3C)
    q, k, v = jnp.split(qkv, 3, axis=-1)
    B, T, C = x.shape
    scale = 1.0 / math.sqrt(HEAD_DIM)
    qh = q.reshape(B, T, N_HEAD, HEAD_DIM) * scale
    kh = k.reshape(B, T, N_HEAD, HEAD_DIM)
    vh = v.reshape(B, T, N_HEAD, HEAD_DIM)
    s = jnp.einsum("bthd,bshd->bhts", qh, kh)
    p = jax.nn.softmax(s, axis=-1)
    o = jnp.einsum("bhts,bshd->bthd", p, vh).reshape(B, T, C)
    y = o @ params["wo"] + params["bo"]
    x = _layernorm(x + y, params["ln1_w"], params["ln1_b"])
    h1 = jnp.maximum(x @ params["w1"] + params["b1"], 0.0)
    y = h1 @ params["w2"] + params["b2"]
    x = _layernorm(x + y, params["ln2_w"], params["ln2_b"])
    return x


def make_params(key):
    ks = jax.random.split(key, 8)
    scale = 0.02
    C = N_EMBD
    return {
        # stored pre-transposed so the math is x @ W
        "wqkv": scale * jax.random.normal(ks[0], (C, 3 * C), jnp.float32),
        "bqkv": scale * jax.random.normal(ks[1], (1, 3 * C), jnp.float32),
        "wo":   scale * jax.random.normal(ks[2], (C, C), jnp.float32),
        "bo":   scale * jax.random.normal(ks[3], (1, C), jnp.float32),
        "ln1_w": jnp.ones((1, C), jnp.float32),
        "ln1_b": jnp.zeros((1, C), jnp.float32),
        "w1":   scale * jax.random.normal(ks[4], (C, 4 * C), jnp.float32),
        "b1":   scale * jax.random.normal(ks[5], (1, 4 * C), jnp.float32),
        "w2":   scale * jax.random.normal(ks[6], (4 * C, C), jnp.float32),
        "b2":   scale * jax.random.normal(ks[7], (1, C), jnp.float32),
        "ln2_w": jnp.ones((1, C), jnp.float32),
        "ln2_b": jnp.zeros((1, C), jnp.float32),
    }


if __name__ == "__main__":
    key = jax.random.PRNGKey(0)
    k_x, k_p = jax.random.split(key)

    B, T, C = 2, 8, N_EMBD
    x = jax.random.normal(k_x, (B, T, C), jnp.float32)
    params = make_params(k_p)

    out = block_forward(x, params)
    out = jax.block_until_ready(out)

    ref = block_reference(x, params)
    assert out.shape == (B, T, C)
    # bf16 matmul inputs (f32 accumulation) -> looser tolerance than pure f32.
    err = jnp.max(jnp.abs(out - ref))
    assert jnp.allclose(out, ref, atol=2e-2, rtol=2e-2), f"max abs err {err}"

    print("KERNEL_OK")
</pallas_src>

<mosaic_0001>
module attributes {stable_mosaic.version = 11 : i64} {
  func.func @block_kernel(%arg0: i32, %arg1: memref<2x8x256xf32, #tpu.memory_space<vmem>>, %arg2: memref<256x768xbf16, #tpu.memory_space<vmem>>, %arg3: memref<1x768xf32, #tpu.memory_space<vmem>>, %arg4: memref<256x256xbf16, #tpu.memory_space<vmem>>, %arg5: memref<1x256xf32, #tpu.memory_space<vmem>>, %arg6: memref<1x256xf32, #tpu.memory_space<vmem>>, %arg7: memref<1x256xf32, #tpu.memory_space<vmem>>, %arg8: memref<256x1024xbf16, #tpu.memory_space<vmem>>, %arg9: memref<1x1024xf32, #tpu.memory_space<vmem>>, %arg10: memref<1024x256xbf16, #tpu.memory_space<vmem>>, %arg11: memref<1x256xf32, #tpu.memory_space<vmem>>, %arg12: memref<1x256xf32, #tpu.memory_space<vmem>>, %arg13: memref<1x256xf32, #tpu.memory_space<vmem>>, %arg14: memref<2x8x256xf32, #tpu.memory_space<vmem>>) attributes {dimension_semantics = [#tpu.dimension_semantics<parallel>], iteration_bounds = array<i64: 1>, scalar_prefetch = 0 : i64, scratch_operands = 0 : i64, tpu.core_type = #tpu.core_type<tc>, window_params = [{transform_indices = @transform_0, window_bounds = array<i64: 2, 8, 256>}, {pipeline_mode = #tpu.pipeline_mode<synchronous>, transform_indices = @transform_1, window_bounds = array<i64: 256, 768>}, {pipeline_mode = #tpu.pipeline_mode<synchronous>, transform_indices = @transform_2, window_bounds = array<i64: 1, 768>}, {pipeline_mode = #tpu.pipeline_mode<synchronous>, transform_indices = @transform_3, window_bounds = array<i64: 256, 256>}, {pipeline_mode = #tpu.pipeline_mode<synchronous>, transform_indices = @transform_4, window_bounds = array<i64: 1, 256>}, {pipeline_mode = #tpu.pipeline_mode<synchronous>, transform_indices = @transform_5, window_bounds = array<i64: 1, 256>}, {pipeline_mode = #tpu.pipeline_mode<synchronous>, transform_indices = @transform_6, window_bounds = array<i64: 1, 256>}, {pipeline_mode = #tpu.pipeline_mode<synchronous>, transform_indices = @transform_7, window_bounds = array<i64: 256, 1024>}, {pipeline_mode = #tpu.pipeline_mode<synchronous>, transform_indices = @transform_8, window_bounds = array<i64: 1, 1024>}, {pipeline_mode = #tpu.pipeline_mode<synchronous>, transform_indices = @transform_9, window_bounds = array<i64: 1024, 256>}, {pipeline_mode = #tpu.pipeline_mode<synchronous>, transform_indices = @transform_10, window_bounds = array<i64: 1, 256>}, {pipeline_mode = #tpu.pipeline_mode<synchronous>, transform_indices = @transform_11, window_bounds = array<i64: 1, 256>}, {pipeline_mode = #tpu.pipeline_mode<synchronous>, transform_indices = @transform_12, window_bounds = array<i64: 1, 256>}, {transform_indices = @transform_13, window_bounds = array<i64: 2, 8, 256>}]} {
    %c0 = arith.constant 0 : index
    %c0_0 = arith.constant 0 : index
    %c0_1 = arith.constant 0 : index
    %0 = vector.load %arg1[%c0, %c0_0, %c0_1] : memref<2x8x256xf32, #tpu.memory_space<vmem>>, vector<2x8x256xf32>
    %1 = vector.shape_cast %0 : vector<2x8x256xf32> to vector<16x256xf32>
    %2 = arith.truncf %1 : vector<16x256xf32> to vector<16x256xbf16>
    %c0_2 = arith.constant 0 : index
    %c0_3 = arith.constant 0 : index
    %3 = vector.load %arg2[%c0_2, %c0_3] : memref<256x768xbf16, #tpu.memory_space<vmem>>, vector<256x768xbf16>
    %cst = arith.constant dense<0.000000e+00> : vector<16x768xf32>
    %4 = tpu.matmul %2, %3, %cst {dimension_numbers = #tpu.dot_dimension_numbers<[1], [0], [0], [1], [0, 0, 1, 1], [], []>} : vector<16x256xbf16>, vector<256x768xbf16>, vector<16x768xf32> -> vector<16x768xf32>
    %c0_4 = arith.constant 0 : index
    %c0_5 = arith.constant 0 : index
    %5 = vector.load %arg3[%c0_4, %c0_5] : memref<1x768xf32, #tpu.memory_space<vmem>>, vector<1x768xf32>
    %6 = vector.broadcast %5 : vector<1x768xf32> to vector<16x768xf32>
    %7 = arith.addf %4, %6 : vector<16x768xf32>
    %8 = arith.truncf %7 : vector<16x768xf32> to vector<16x768xbf16>
    %9 = vector.shape_cast %8 : vector<16x768xbf16> to vector<2x8x768xbf16>
    %10 = vector.extract_strided_slice %9 {offsets = [0, 0, 0], sizes = [2, 8, 32], strides = [1, 1, 1]} : vector<2x8x768xbf16> to vector<2x8x32xbf16>
    %11 = vector.extract_strided_slice %9 {offsets = [0, 0, 32], sizes = [2, 8, 32], strides = [1, 1, 1]} : vector<2x8x768xbf16> to vector<2x8x32xbf16>
    %12 = vector.extract_strided_slice %9 {offsets = [0, 0, 64], sizes = [2, 8, 32], strides = [1, 1, 1]} : vector<2x8x768xbf16> to vector<2x8x32xbf16>
    %13 = vector.extract_strided_slice %9 {offsets = [0, 0, 96], sizes = [2, 8, 32], strides = [1, 1, 1]} : vector<2x8x768xbf16> to vector<2x8x32xbf16>
    %14 = vector.extract_strided_slice %9 {offsets = [0, 0, 128], sizes = [2, 8, 32], strides = [1, 1, 1]} : vector<2x8x768xbf16> to vector<2x8x32xbf16>
    %15 = vector.extract_strided_slice %9 {offsets = [0, 0, 160], sizes = [2, 8, 32], strides = [1, 1, 1]} : vector<2x8x768xbf16> to vector<2x8x32xbf16>
    %16 = vector.extract_strided_slice %9 {offsets = [0, 0, 192], sizes = [2, 8, 32], strides = [1, 1, 1]} : vector<2x8x768xbf16> to vector<2x8x32xbf16>
    %17 = vector.extract_strided_slice %9 {offsets = [0, 0, 224], sizes = [2, 8, 32], strides = [1, 1, 1]} : vector<2x8x768xbf16> to vector<2x8x32xbf16>
    %18 = tpu.concatenate %10, %11, %12, %13, %14, %15, %16, %17 in 0 : vector<2x8x32xbf16>, vector<2x8x32xbf16>, vector<2x8x32xbf16>, vector<2x8x32xbf16>, vector<2x8x32xbf16>, vector<2x8x32xbf16>, vector<2x8x32xbf16>, vector<2x8x32xbf16> -> vector<16x8x32xbf16>
    %19 = vector.extract_strided_slice %9 {offsets = [0, 0, 256], sizes = [2, 8, 32], strides = [1, 1, 1]} : vector<2x8x768xbf16> to vector<2x8x32xbf16>
    %20 = vector.extract_strided_slice %9 {offsets = [0, 0, 288], sizes = [2, 8, 32], strides = [1, 1, 1]} : vector<2x8x768xbf16> to vector<2x8x32xbf16>
    %21 = vector.extract_strided_slice %9 {offsets = [0, 0, 320], sizes = [2, 8, 32], strides = [1, 1, 1]} : vector<2x8x768xbf16> to vector<2x8x32xbf16>
    %22 = vector.extract_strided_slice %9 {offsets = [0, 0, 352], sizes = [2, 8, 32], strides = [1, 1, 1]} : vector<2x8x768xbf16> to vector<2x8x32xbf16>
    %23 = vector.extract_strided_slice %9 {offsets = [0, 0, 384], sizes = [2, 8, 32], strides = [1, 1, 1]} : vector<2x8x768xbf16> to vector<2x8x32xbf16>
    %24 = vector.extract_strided_slice %9 {offsets = [0, 0, 416], sizes = [2, 8, 32], strides = [1, 1, 1]} : vector<2x8x768xbf16> to vector<2x8x32xbf16>
    %25 = vector.extract_strided_slice %9 {offsets = [0, 0, 448], sizes = [2, 8, 32], strides = [1, 1, 1]} : vector<2x8x768xbf16> to vector<2x8x32xbf16>
    %26 = vector.extract_strided_slice %9 {offsets = [0, 0, 480], sizes = [2, 8, 32], strides = [1, 1, 1]} : vector<2x8x768xbf16> to vector<2x8x32xbf16>
    %27 = tpu.concatenate %19, %20, %21, %22, %23, %24, %25, %26 in 0 : vector<2x8x32xbf16>, vector<2x8x32xbf16>, vector<2x8x32xbf16>, vector<2x8x32xbf16>, vector<2x8x32xbf16>, vector<2x8x32xbf16>, vector<2x8x32xbf16>, vector<2x8x32xbf16> -> vector<16x8x32xbf16>
    %28 = vector.extract_strided_slice %9 {offsets = [0, 0, 512], sizes = [2, 8, 32], strides = [1, 1, 1]} : vector<2x8x768xbf16> to vector<2x8x32xbf16>
    %29 = vector.extract_strided_slice %9 {offsets = [0, 0, 544], sizes = [2, 8, 32], strides = [1, 1, 1]} : vector<2x8x768xbf16> to vector<2x8x32xbf16>
    %30 = vector.extract_strided_slice %9 {offsets = [0, 0, 576], sizes = [2, 8, 32], strides = [1, 1, 1]} : vector<2x8x768xbf16> to vector<2x8x32xbf16>
    %31 = vector.extract_strided_slice %9 {offsets = [0, 0, 608], sizes = [2, 8, 32], strides = [1, 1, 1]} : vector<2x8x768xbf16> to vector<2x8x32xbf16>
    %32 = vector.extract_strided_slice %9 {offsets = [0, 0, 640], sizes = [2, 8, 32], strides = [1, 1, 1]} : vector<2x8x768xbf16> to vector<2x8x32xbf16>
    %33 = vector.extract_strided_slice %9 {offsets = [0, 0, 672], sizes = [2, 8, 32], strides = [1, 1, 1]} : vector<2x8x768xbf16> to vector<2x8x32xbf16>
    %34 = vector.extract_strided_slice %9 {offsets = [0, 0, 704], sizes = [2, 8, 32], strides = [1, 1, 1]} : vector<2x8x768xbf16> to vector<2x8x32xbf16>
    %35 = vector.extract_strided_slice %9 {offsets = [0, 0, 736], sizes = [2, 8, 32], strides = [1, 1, 1]} : vector<2x8x768xbf16> to vector<2x8x32xbf16>
    %36 = tpu.concatenate %28, %29, %30, %31, %32, %33, %34, %35 in 0 : vector<2x8x32xbf16>, vector<2x8x32xbf16>, vector<2x8x32xbf16>, vector<2x8x32xbf16>, vector<2x8x32xbf16>, vector<2x8x32xbf16>, vector<2x8x32xbf16>, vector<2x8x32xbf16> -> vector<16x8x32xbf16>
    "tpu.trace_start"() <{level = 10 : i32, message = "gtd,gsd->gts"}> : () -> ()
    %cst_6 = arith.constant dense<0.000000e+00> : vector<16x8x8xf32>
    %37 = tpu.matmul %18, %27, %cst_6 {dimension_numbers = #tpu.dot_dimension_numbers<[2], [2], [1], [1], [0, 0, 0, 1, 1, 1], [0], [0]>} : vector<16x8x32xbf16>, vector<16x8x32xbf16>, vector<16x8x8xf32> -> vector<16x8x8xf32>
    "tpu.trace_stop"() : () -> ()
    %cst_7 = arith.constant dense<0xFF800000> : vector<16x8xf32>
    %38 = vector.multi_reduction <maximumf>, %37, %cst_7 [2] : vector<16x8x8xf32> to vector<16x8xf32>
    %39 = vector.shape_cast %38 : vector<16x8xf32> to vector<16x8x1xf32>
    %40 = vector.broadcast %39 : vector<16x8x1xf32> to vector<16x8x8xf32>
    %41 = arith.subf %37, %40 : vector<16x8x8xf32>
    %42 = math.exp %41 : vector<16x8x8xf32>
    %cst_8 = arith.constant dense<0.000000e+00> : vector<16x8xf32>
    %43 = vector.multi_reduction <add>, %42, %cst_8 [2] : vector<16x8x8xf32> to vector<16x8xf32>
    %44 = vector.shape_cast %43 : vector<16x8xf32> to vector<16x8x1xf32>
    %45 = tpu.reciprocal %44 : vector<16x8x1xf32> -> vector<16x8x1xf32>
    %46 = vector.broadcast %45 : vector<16x8x1xf32> to vector<16x8x8xf32>
    %47 = arith.mulf %42, %46 : vector<16x8x8xf32>
    %48 = arith.truncf %47 : vector<16x8x8xf32> to vector<16x8x8xbf16>
    "tpu.trace_start"() <{level = 10 : i32, message = "gts,gsd->gtd"}> : () -> ()
    %cst_9 = arith.constant dense<0.000000e+00> : vector<16x8x32xf32>
    %49 = tpu.matmul %48, %36, %cst_9 {dimension_numbers = #tpu.dot_dimension_numbers<[2], [1], [1], [2], [0, 0, 0, 1, 1, 2], [0], [0]>} : vector<16x8x8xbf16>, vector<16x8x32xbf16>, vector<16x8x32xf32> -> vector<16x8x32xf32>
    "tpu.trace_stop"() : () -> ()
    %50 = vector.extract_strided_slice %49 {offsets = [0, 0, 0], sizes = [2, 8, 32], strides = [1, 1, 1]} : vector<16x8x32xf32> to vector<2x8x32xf32>
    %51 = vector.extract_strided_slice %49 {offsets = [2, 0, 0], sizes = [2, 8, 32], strides = [1, 1, 1]} : vector<16x8x32xf32> to vector<2x8x32xf32>
    %52 = vector.extract_strided_slice %49 {offsets = [4, 0, 0], sizes = [2, 8, 32], strides = [1, 1, 1]} : vector<16x8x32xf32> to vector<2x8x32xf32>
    %53 = vector.extract_strided_slice %49 {offsets = [6, 0, 0], sizes = [2, 8, 32], strides = [1, 1, 1]} : vector<16x8x32xf32> to vector<2x8x32xf32>
    %54 = vector.extract_strided_slice %49 {offsets = [8, 0, 0], sizes = [2, 8, 32], strides = [1, 1, 1]} : vector<16x8x32xf32> to vector<2x8x32xf32>
    %55 = vector.extract_strided_slice %49 {offsets = [10, 0, 0], sizes = [2, 8, 32], strides = [1, 1, 1]} : vector<16x8x32xf32> to vector<2x8x32xf32>
    %56 = vector.extract_strided_slice %49 {offsets = [12, 0, 0], sizes = [2, 8, 32], strides = [1, 1, 1]} : vector<16x8x32xf32> to vector<2x8x32xf32>
    %57 = vector.extract_strided_slice %49 {offsets = [14, 0, 0], sizes = [2, 8, 32], strides = [1, 1, 1]} : vector<16x8x32xf32> to vector<2x8x32xf32>
    %58 = tpu.concatenate %50, %51, %52, %53, %54, %55, %56, %57 in 2 : vector<2x8x32xf32>, vector<2x8x32xf32>, vector<2x8x32xf32>, vector<2x8x32xf32>, vector<2x8x32xf32>, vector<2x8x32xf32>, vector<2x8x32xf32>, vector<2x8x32xf32> -> vector<2x8x256xf32>
    %59 = vector.shape_cast %58 : vector<2x8x256xf32> to vector<16x256xf32>
    %60 = arith.truncf %59 : vector<16x256xf32> to vector<16x256xbf16>
    %c0_10 = arith.constant 0 : index
    %c0_11 = arith.constant 0 : index
    %61 = vector.load %arg4[%c0_10, %c0_11] : memref<256x256xbf16, #tpu.memory_space<vmem>>, vector<256x256xbf16>
    %cst_12 = arith.constant dense<0.000000e+00> : vector<16x256xf32>
    %62 = tpu.matmul %60, %61, %cst_12 {dimension_numbers = #tpu.dot_dimension_numbers<[1], [0], [0], [1], [0, 0, 1, 1], [], []>} : vector<16x256xbf16>, vector<256x256xbf16>, vector<16x256xf32> -> vector<16x256xf32>
    %c0_13 = arith.constant 0 : index
    %c0_14 = arith.constant 0 : index
    %63 = vector.load %arg5[%c0_13, %c0_14] : memref<1x256xf32, #tpu.memory_space<vmem>>, vector<1x256xf32>
    %64 = vector.broadcast %63 : vector<1x256xf32> to vector<16x256xf32>
    %65 = arith.addf %62, %64 : vector<16x256xf32>
    %66 = arith.addf %1, %65 : vector<16x256xf32>
    %c0_15 = arith.constant 0 : index
    %c0_16 = arith.constant 0 : index
    %67 = vector.load %arg6[%c0_15, %c0_16] : memref<1x256xf32, #tpu.memory_space<vmem>>, vector<1x256xf32>
    %c0_17 = arith.constant 0 : index
    %c0_18 = arith.constant 0 : index
    %68 = vector.load %arg7[%c0_17, %c0_18] : memref<1x256xf32, #tpu.memory_space<vmem>>, vector<1x256xf32>
    %cst_19 = arith.constant dense<0.000000e+00> : vector<16xf32>
    %69 = vector.multi_reduction <add>, %66, %cst_19 [1] : vector<16x256xf32> to vector<16xf32>
    %70 = vector.shape_cast %69 : vector<16xf32> to vector<16x1xf32>
    %cst_20 = arith.constant 2.560000e+02 : f32
    %71 = vector.broadcast %cst_20 : f32 to vector<16x1xf32>
    %72 = arith.divf %70, %71 : vector<16x1xf32>
    %73 = vector.broadcast %72 : vector<16x1xf32> to vector<16x256xf32>
    %74 = arith.subf %66, %73 : vector<16x256xf32>
    %75 = arith.mulf %74, %74 : vector<16x256xf32>
    %cst_21 = arith.constant dense<0.000000e+00> : vector<16xf32>
    %76 = vector.multi_reduction <add>, %75, %cst_21 [1] : vector<16x256xf32> to vector<16xf32>
    %77 = vector.shape_cast %76 : vector<16xf32> to vector<16x1xf32>
    %cst_22 = arith.constant 2.560000e+02 : f32
    %78 = vector.broadcast %cst_22 : f32 to vector<16x1xf32>
    %79 = arith.divf %77, %78 : vector<16x1xf32>
    %80 = vector.broadcast %72 : vector<16x1xf32> to vector<16x256xf32>
    %81 = arith.subf %66, %80 : vector<16x256xf32>
    %cst_23 = arith.constant 9.99999974E-6 : f32
    %82 = vector.broadcast %cst_23 : f32 to vector<16x1xf32>
    %83 = arith.addf %79, %82 : vector<16x1xf32>
    %84 = math.rsqrt %83 : vector<16x1xf32>
    %85 = vector.broadcast %84 : vector<16x1xf32> to vector<16x256xf32>
    %86 = arith.mulf %81, %85 : vector<16x256xf32>
    %87 = vector.broadcast %67 : vector<1x256xf32> to vector<16x256xf32>
    %88 = arith.mulf %86, %87 : vector<16x256xf32>
    %89 = vector.broadcast %68 : vector<1x256xf32> to vector<16x256xf32>
    %90 = arith.addf %88, %89 : vector<16x256xf32>
    %91 = arith.truncf %90 : vector<16x256xf32> to vector<16x256xbf16>
    %c0_24 = arith.constant 0 : index
    %c0_25 = arith.constant 0 : index
    %92 = vector.load %arg8[%c0_24, %c0_25] : memref<256x1024xbf16, #tpu.memory_space<vmem>>, vector<256x1024xbf16>
    %cst_26 = arith.constant dense<0.000000e+00> : vector<16x1024xf32>
    %93 = tpu.matmul %91, %92, %cst_26 {dimension_numbers = #tpu.dot_dimension_numbers<[1], [0], [0], [1], [0, 0, 1, 1], [], []>} : vector<16x256xbf16>, vector<256x1024xbf16>, vector<16x1024xf32> -> vector<16x1024xf32>
    %c0_27 = arith.constant 0 : index
    %c0_28 = arith.constant 0 : index
    %94 = vector.load %arg9[%c0_27, %c0_28] : memref<1x1024xf32, #tpu.memory_space<vmem>>, vector<1x1024xf32>
    %95 = vector.broadcast %94 : vector<1x1024xf32> to vector<16x1024xf32>
    %96 = arith.addf %93, %95 : vector<16x1024xf32>
    %cst_29 = arith.constant 0.000000e+00 : f32
    %97 = vector.broadcast %cst_29 : f32 to vector<16x1024xf32>
    %98 = arith.maximumf %96, %97 : vector<16x1024xf32>
    %99 = arith.truncf %98 : vector<16x1024xf32> to vector<16x1024xbf16>
    %c0_30 = arith.constant 0 : index
    %c0_31 = arith.constant 0 : index
    %100 = vector.load %arg10[%c0_30, %c0_31] : memref<1024x256xbf16, #tpu.memory_space<vmem>>, vector<1024x256xbf16>
    %cst_32 = arith.constant dense<0.000000e+00> : vector<16x256xf32>
    %101 = tpu.matmul %99, %100, %cst_32 {dimension_numbers = #tpu.dot_dimension_numbers<[1], [0], [0], [1], [0, 0, 1, 1], [], []>} : vector<16x1024xbf16>, vector<1024x256xbf16>, vector<16x256xf32> -> vector<16x256xf32>
    %c0_33 = arith.constant 0 : index
    %c0_34 = arith.constant 0 : index
    %102 = vector.load %arg11[%c0_33, %c0_34] : memref<1x256xf32, #tpu.memory_space<vmem>>, vector<1x256xf32>
    %103 = vector.broadcast %102 : vector<1x256xf32> to vector<16x256xf32>
    %104 = arith.addf %101, %103 : vector<16x256xf32>
    %105 = arith.addf %90, %104 : vector<16x256xf32>
    %c0_35 = arith.constant 0 : index
    %c0_36 = arith.constant 0 : index
    %106 = vector.load %arg12[%c0_35, %c0_36] : memref<1x256xf32, #tpu.memory_space<vmem>>, vector<1x256xf32>
    %c0_37 = arith.constant 0 : index
    %c0_38 = arith.constant 0 : index
    %107 = vector.load %arg13[%c0_37, %c0_38] : memref<1x256xf32, #tpu.memory_space<vmem>>, vector<1x256xf32>
    %cst_39 = arith.constant dense<0.000000e+00> : vector<16xf32>
    %108 = vector.multi_reduction <add>, %105, %cst_39 [1] : vector<16x256xf32> to vector<16xf32>
    %109 = vector.shape_cast %108 : vector<16xf32> to vector<16x1xf32>
    %cst_40 = arith.constant 2.560000e+02 : f32
    %110 = vector.broadcast %cst_40 : f32 to vector<16x1xf32>
    %111 = arith.divf %109, %110 : vector<16x1xf32>
    %112 = vector.broadcast %111 : vector<16x1xf32> to vector<16x256xf32>
    %113 = arith.subf %105, %112 : vector<16x256xf32>
    %114 = arith.mulf %113, %113 : vector<16x256xf32>
    %cst_41 = arith.constant dense<0.000000e+00> : vector<16xf32>
    %115 = vector.multi_reduction <add>, %114, %cst_41 [1] : vector<16x256xf32> to vector<16xf32>
    %116 = vector.shape_cast %115 : vector<16xf32> to vector<16x1xf32>
    %cst_42 = arith.constant 2.560000e+02 : f32
    %117 = vector.broadcast %cst_42 : f32 to vector<16x1xf32>
    %118 = arith.divf %116, %117 : vector<16x1xf32>
    %119 = vector.broadcast %111 : vector<16x1xf32> to vector<16x256xf32>
    %120 = arith.subf %105, %119 : vector<16x256xf32>
    %cst_43 = arith.constant 9.99999974E-6 : f32
    %121 = vector.broadcast %cst_43 : f32 to vector<16x1xf32>
    %122 = arith.addf %118, %121 : vector<16x1xf32>
    %123 = math.rsqrt %122 : vector<16x1xf32>
    %124 = vector.broadcast %123 : vector<16x1xf32> to vector<16x256xf32>
    %125 = arith.mulf %120, %124 : vector<16x256xf32>
    %126 = vector.broadcast %106 : vector<1x256xf32> to vector<16x256xf32>
    %127 = arith.mulf %125, %126 : vector<16x256xf32>
    %128 = vector.broadcast %107 : vector<1x256xf32> to vector<16x256xf32>
    %129 = arith.addf %127, %128 : vector<16x256xf32>
    %130 = vector.shape_cast %129 : vector<16x256xf32> to vector<2x8x256xf32>
    %c0_44 = arith.constant 0 : index
    %c0_45 = arith.constant 0 : index
    %c0_46 = arith.constant 0 : index
    %131 = vector.load %arg14[%c0_44, %c0_45, %c0_46] : memref<2x8x256xf32, #tpu.memory_space<vmem>>, vector<2x8x256xf32>
    tpu.vector_store %arg14[%c0_44, %c0_45, %c0_46], %130 {strides = array<i32>} : memref<2x8x256xf32, #tpu.memory_space<vmem>>, vector<2x8x256xf32>,
    return
  }
  func.func @transform_0(%arg0: i32) -> (i32, i32, i32) {
    %c0_i32 = arith.constant 0 : i32
    %c0_i32_0 = arith.constant 0 : i32
    %c0_i32_1 = arith.constant 0 : i32
    return %arg0, %c0_i32, %c0_i32_0 : i32, i32, i32
  }
  func.func @transform_1(%arg0: i32) -> (i32, i32) {
    %c0_i32 = arith.constant 0 : i32
    %c0_i32_0 = arith.constant 0 : i32
    %c0_i32_1 = arith.constant 0 : i32
    return %c0_i32, %c0_i32_0 : i32, i32
  }
  func.func @transform_2(%arg0: i32) -> (i32, i32) {
    %c0_i32 = arith.constant 0 : i32
    %c0_i32_0 = arith.constant 0 : i32
    %c0_i32_1 = arith.constant 0 : i32
    return %c0_i32, %c0_i32_0 : i32, i32
  }
  func.func @transform_3(%arg0: i32) -> (i32, i32) {
    %c0_i32 = arith.constant 0 : i32
    %c0_i32_0 = arith.constant 0 : i32
    %c0_i32_1 = arith.constant 0 : i32
    return %c0_i32, %c0_i32_0 : i32, i32
  }
  func.func @transform_4(%arg0: i32) -> (i32, i32) {
    %c0_i32 = arith.constant 0 : i32
    %c0_i32_0 = arith.constant 0 : i32
    %c0_i32_1 = arith.constant 0 : i32
    return %c0_i32, %c0_i32_0 : i32, i32
  }
  func.func @transform_5(%arg0: i32) -> (i32, i32) {
    %c0_i32 = arith.constant 0 : i32
    %c0_i32_0 = arith.constant 0 : i32
    %c0_i32_1 = arith.constant 0 : i32
    return %c0_i32, %c0_i32_0 : i32, i32
  }
  func.func @transform_6(%arg0: i32) -> (i32, i32) {
    %c0_i32 = arith.constant 0 : i32
    %c0_i32_0 = arith.constant 0 : i32
    %c0_i32_1 = arith.constant 0 : i32
    return %c0_i32, %c0_i32_0 : i32, i32
  }
  func.func @transform_7(%arg0: i32) -> (i32, i32) {
    %c0_i32 = arith.constant 0 : i32
    %c0_i32_0 = arith.constant 0 : i32
    %c0_i32_1 = arith.constant 0 : i32
    return %c0_i32, %c0_i32_0 : i32, i32
  }
  func.func @transform_8(%arg0: i32) -> (i32, i32) {
    %c0_i32 = arith.constant 0 : i32
    %c0_i32_0 = arith.constant 0 : i32
    %c0_i32_1 = arith.constant 0 : i32
    return %c0_i32, %c0_i32_0 : i32, i32
  }
  func.func @transform_9(%arg0: i32) -> (i32, i32) {
    %c0_i32 = arith.constant 0 : i32
    %c0_i32_0 = arith.constant 0 : i32
    %c0_i32_1 = arith.constant 0 : i32
    return %c0_i32, %c0_i32_0 : i32, i32
  }
  func.func @transform_10(%arg0: i32) -> (i32, i32) {
    %c0_i32 = arith.constant 0 : i32
    %c0_i32_0 = arith.constant 0 : i32
    %c0_i32_1 = arith.constant 0 : i32
    return %c0_i32, %c0_i32_0 : i32, i32
  }
  func.func @transform_11(%arg0: i32) -> (i32, i32) {
    %c0_i32 = arith.constant 0 : i32
    %c0_i32_0 = arith.constant 0 : i32
    %c0_i32_1 = arith.constant 0 : i32
    return %c0_i32, %c0_i32_0 : i32, i32
  }
  func.func @transform_12(%arg0: i32) -> (i32, i32) {
    %c0_i32 = arith.constant 0 : i32
    %c0_i32_0 = arith.constant 0 : i32
    %c0_i32_1 = arith.constant 0 : i32
    return %c0_i32, %c0_i32_0 : i32, i32
  }
  func.func @transform_13(%arg0: i32) -> (i32, i32, i32) {
    %c0_i32 = arith.constant 0 : i32
    %c0_i32_0 = arith.constant 0 : i32
    %c0_i32_1 = arith.constant 0 : i32
    return %arg0, %c0_i32, %c0_i32_0 : i32, i32, i32
  }
}

</mosaic_0001>

<bundles_post_ra>
// kernel: tpu_custom_call.1
= control target key start
LH: loop header
LB: loop body
LE: loop exit
PB: predicated region body
PF: predicated region fallthrough
CT: control target
= control target key end

     0   :  { %18 = vsyncpa [#allocation3], 0  ;;  %s7117_s0 = inlined_call_operand.hbm [shape: f32[2,8,256], index: 0, kind: input, shape index: {}]   ;;  %s7118_s1 = inlined_call_operand.hbm [shape: bf16[256,768], index: 1, kind: input, shape index: {}]   ;;  %s7119_s2 = inlined_call_operand.hbm [shape: f32[1,768], index: 2, kind: input, shape index: {}]   ;;  %s7120_s3 = inlined_call_operand.hbm [shape: bf16[256,256], index: 3, kind: input, shape index: {}]   ;;  %s7121_s4 = inlined_call_operand.vmem [shape: f32[1,256], index: 4, kind: input, shape index: {}]   ;;  %s7122_s5 = inlined_call_operand.vmem [shape: f32[1,256], index: 5, kind: input, shape index: {}]   ;;  %s7123_s6 = inlined_call_operand.vmem [shape: f32[1,256], index: 6, kind: input, shape index: {}]   ;;  %s7124_s7 = inlined_call_operand.hbm [shape: bf16[256,1024], index: 7, kind: input, shape index: {}]   ;;  %s7125_s8 = inlined_call_operand.vmem [shape: f32[1,1024], index: 8, kind: input, shape index: {}]   ;;  %s7126_s9 = inlined_call_operand.hbm [shape: bf16[1024,256], index: 9, kind: input, shape index: {}]   ;;  %s7127_s10 = inlined_call_operand.vmem [shape: f32[1,256], index: 10, kind: input, shape index: {}]   ;;  %s7128_s11 = inlined_call_operand.vmem [shape: f32[1,256], index: 11, kind: input, shape index: {}]   ;;  %s7129_s12 = inlined_call_operand.vmem [shape: f32[1,256], index: 12, kind: input, shape index: {}]   ;;  %s7130_s13 = inlined_call_operand.hbm [shape: f32[2,8,256], index: 13, kind: output, shape index: {}]  }
   0x1   :  { %19 = vsyncpa [#allocation6], 0 }
   0x2   :  { %20 = vsyncpa [#allocation9], 0 }
   0x3   :  { %21 = vsyncpa [#allocation12], 0 }
   0x4   :  { %22 = vsyncpa [#allocation4], 0  ;;  %s6401_s25 = smov [#allocation5]  }
   0x5   :  { %s40_s26 = sshll.u32 %s6401_s25, 4  ;;  %s41_s26 = int_to_ptr.vmem [resolvable:$true] %s40_s26 }
   0x6   :  { %s6259_s27 = scalar_lea.vmem %s41_s26, 12288  ;;  %p6264_p1 = scmp.lt.s32.totalorder %s41_s26, %s41_s26 }
   0x7   :  { %p6260_p0 = scmp.ne.s32.totalorder %s41_s26, %s6259_s27  ;;  %p6265_p2 = scmp.lt.s32.totalorder %s6259_s27, %s6259_s27 }
   0x9   :  { %p6266_p3 = por %p6265_p2, %p6264_p1 }
   0xb   :  { %p6267_p4 = pnand %p6266_p3, %p6260_p0 }
   0xd   :  { %6270 = shalt.err (!%p6267_p4)
}
   0xe   :  { %s6402_s28 = smov 384   ;;  %s6403_s29 = smov 24  }
   0xf   :  { %46 = dma.hbm_to_vmem [thread:$0]  %s7118_s1, 12288, %s41_s26, [#allocation6], %s6402_s28, %s6402_s28, %s6403_s29  }
  0x10   :  { %s6404_s15 = smov [#allocation8]  }
  0x11   :  { %s62_s16 = sshll.u32 %s6404_s15, 4  ;;  %s63_s16 = int_to_ptr.vmem [resolvable:$true] %s62_s16 }
  0x12   :  { %s6279_s17 = scalar_lea.vmem %s63_s16, 4096  ;;  %p6284_p6 = scmp.lt.s32.totalorder %s63_s16, %s63_s16 }
  0x13   :  { %p6280_p5 = scmp.ne.s32.totalorder %s63_s16, %s6279_s17  ;;  %p6285_p7 = scmp.lt.s32.totalorder %s6279_s17, %s6279_s17 }
  0x15   :  { %p6286_p8 = por %p6285_p7, %p6284_p6 }
  0x17   :  { %p6287_p9 = pnand %p6286_p8, %p6280_p5 }
  0x19   :  { %6290 = shalt.err (!%p6287_p9)
}
  0x1a   :  { %s6405_s18 = smov 128   ;;  %s6406_s19 = smov 8  }
  0x1b   :  { %68 = dma.hbm_to_vmem [thread:$0]  %s7120_s3, 4096, %s63_s16, [#allocation9], %s6405_s18, %s6405_s18, %s6406_s19  }
  0x1c   :  { %s6407_s1 = smov [#allocation2]  }
  0x1d   :  { %s28_s22 = sshll.u32 %s6407_s1, 4  ;;  %s29_s22 = int_to_ptr.vmem [resolvable:$true] %s28_s22 }
  0x1e   :  { %s6299_s23 = scalar_lea.vmem %s29_s22, 512  ;;  %p6304_p11 = scmp.lt.s32.totalorder %s29_s22, %s29_s22 }
  0x1f   :  { %p6300_p10 = scmp.ne.s32.totalorder %s29_s22, %s6299_s23  ;;  %p6305_p12 = scmp.lt.s32.totalorder %s6299_s23, %s6299_s23 }
  0x21   :  { %p6306_p13 = por %p6305_p12, %p6304_p11 }
  0x23   :  { %p6307_p0 = pnand %p6306_p13, %p6300_p10 }
  0x25   :  { %6310 = shalt.err (!%p6307_p0)
}
  0x26   :  { %s6408_s24 = smov 256   ;;  %s6409_s25 = smov 16  }
  0x27   :  { %34 = dma.hbm_to_vmem [thread:$0]  %s7117_s0, 512, %s29_s22, [#allocation3], %s6408_s24, %s6408_s24, %s6409_s25  }
  0x28   :  { %s6410_s3 = smov [#allocation7]   ;;  %s6411_s29 = smov [#allocation10]  }
  0x29   :  { %s53_s28 = sshll.u32 %s6410_s3, 4  ;;  %s80_s30 = sshll.u32 %s6411_s29, 4  ;;  %s54_s28 = int_to_ptr.vmem [resolvable:$true] %s53_s28  ;;  %s81_s30 = int_to_ptr.vmem [resolvable:$true] %s80_s30 }
  0x2a   :  { %s6319_s14 = scalar_lea.vmem %s54_s28, 96  ;;  %p6324_p2 = scmp.lt.s32.totalorder %s54_s28, %s54_s28 }
  0x2b   :  { %p6320_p1 = scmp.ne.s32.totalorder %s54_s28, %s6319_s14  ;;  %p6325_p3 = scmp.lt.s32.totalorder %s6319_s14, %s6319_s14 }
  0x2d   :  { %p6326_p4 = por %p6325_p3, %p6324_p2 }
  0x2f   :  { %p6327_p5 = pnand %p6326_p4, %p6320_p1 }
  0x31   :  { %6330 = shalt.err (!%p6327_p5)
}
  0x32   :  { %56 = dma.hbm_to_vmem [thread:$0]  %s7119_s2, 96, %s54_s28, [#allocation6]  }
  0x33   :  { %s6339_s17 = scalar_lea.vmem %s81_s30, 16384  ;;  %p6344_p7 = scmp.lt.s32.totalorder %s81_s30, %s81_s30 }
  0x34   :  { %p6340_p6 = scmp.ne.s32.totalorder %s81_s30, %s6339_s17  ;;  %p6345_p8 = scmp.lt.s32.totalorder %s6339_s17, %s6339_s17 }
  0x36   :  { %p6346_p9 = por %p6345_p8, %p6344_p7 }
  0x38   :  { %p6347_p10 = pnand %p6346_p9, %p6340_p6 }
  0x3a   :  { %6350 = shalt.err (!%p6347_p10)
}
  0x3b   :  { %s6412_s0 = smov 512   ;;  %s6413_s20 = smov 32  }
  0x3c   :  { %86 = dma.hbm_to_vmem [thread:$0]  %s7124_s7, 16384, %s81_s30, [#allocation9], %s6412_s0, %s6412_s0, %s6413_s20  }
  0x3d   :  { %s6414_s22 = smov [#allocation11]  }
  0x3e   :  { %s94_s23 = sshll.u32 %s6414_s22, 4  ;;  %s95_s23 = int_to_ptr.vmem [resolvable:$true] %s94_s23 }
  0x3f   :  { %s6359_s26 = scalar_lea.vmem %s95_s23, 16384  ;;  %p6364_p12 = scmp.lt.s32.totalorder %s95_s23, %s95_s23 }
  0x40   :  { %p6360_p11 = scmp.ne.s32.totalorder %s95_s23, %s6359_s26  ;;  %p6365_p13 = scmp.lt.s32.totalorder %s6359_s26, %s6359_s26 }
  0x42   :  { %p6366_p0 = por %p6365_p13, %p6364_p12 }
  0x44   :  { %p6367_p1 = pnand %p6366_p0, %p6360_p11 }
  0x46   :  { %6370 = shalt.err (!%p6367_p1)
}
  0x47   :  { %100 = dma.hbm_to_vmem [thread:$0]  %s7126_s9, 16384, %s95_s23, [#allocation12], %s6405_s18, %s6405_s18, %s6406_s19  }
  0x48   :  { %6391 = dma.done.wait [#allocation3], 512  }
  0x49   :  { %6392 = vsyncadd [#allocation3], 4294966784 }
  0x4a   :  { %6393 = dma.done.wait [#allocation6], 12384  }
  0x4b   :  { %6394 = vsyncadd [#allocation6], 4294954912 }
  0x4c   :  { %6395 = dma.done.wait [#allocation9], 20480  }
  0x4d   :  { %6396 = vsyncadd [#allocation9], 4294946816 }
  0x4e   :  { %6397 = dma.done.wait [#allocation12], 16384  }
  0x4f   :  { %6398 = vsyncadd [#allocation12], 4294950912  ;;  %v5791_v0 = vld [vmem:[#allocation5 + $0x15c] ss:$24 sps:$4 sm:$0xff]   ;;  %v5793_v1 = vld [vmem:[#allocation5 + $0x158] ss:$24 sps:$4 sm:$0xff]  }
  0x50   :  { %783 = vmatprep.subr.bf16.mxu1 %v5791_v0  ;;  %v5794_v2 = vld [vmem:[#allocation5 + $0x154] ss:$24 sps:$4 sm:$0xff]   ;;  %v5796_v3 = vld [vmem:[#allocation5 + $0x150] ss:$24 sps:$4 sm:$0xff]   ;;  %v5800_v6 = vld [vmem:[#allocation5 + $0x124] ss:$24 sps:$4 sm:$0xff]  }
  0x51   :  { %784 = vmatpush1.bf16.msra.mxu1 %v5793_v1  ;;  %v5797_v4 = vld [vmem:[#allocation5 + $0x12c] ss:$24 sps:$4 sm:$0xff]   ;;  %v5799_v5 = vld [vmem:[#allocation5 + $0x128] ss:$24 sps:$4 sm:$0xff]   ;;  %740 = vmatprep.subr.bf16.mxu0 %v5794_v2  ;;  %v5803_v8 = vld [vmem:[#allocation5 + $0xfc] ss:$24 sps:$4 sm:$0xff]  }
  0x52   :  { %741 = vmatpush1.bf16.msra.mxu0 %v5796_v3  ;;  %785 = vmatprep.subr.bf16.mxu1 %v5797_v4  ;;  %v5802_v7 = vld [vmem:[#allocation5 + $0x120] ss:$24 sps:$4 sm:$0xff]   ;;  %v5806_v10 = vld [vmem:[#allocation5 + $0xf4] ss:$24 sps:$4 sm:$0xff]   ;;  %v5808_v12 = vld [vmem:[#allocation5 + $0xf0] ss:$24 sps:$4 sm:$0xff]  }
  0x53   :  { %742 = vmatprep.subr.bf16.mxu0 %v5800_v6  ;;  %v5805_v9 = vld [vmem:[#allocation5 + $0xf8] ss:$24 sps:$4 sm:$0xff]   ;;  %v5809_v11 = vld [vmem:[#allocation5 + $0xcc] ss:$24 sps:$4 sm:$0xff]   ;;  %v5811_v14 = vld [vmem:[#allocation5 + $0xc8] ss:$24 sps:$4 sm:$0xff]  }
  0x54   :  { %v5812_v13 = vld [vmem:[#allocation5 + $0xc4] ss:$24 sps:$4 sm:$0xff]   ;;  %v5814_v16 = vld [vmem:[#allocation5 + $0xc0] ss:$24 sps:$4 sm:$0xff]   ;;  %v5818_v17 = vld [vmem:[#allocation5 + $0x94] ss:$24 sps:$4 sm:$0xff]  }
  0x55   :  { %786 = vmatpush1.bf16.msra.mxu1 %v5799_v5  ;;  %v5815_v15 = vld [vmem:[#allocation5 + $0x9c] ss:$24 sps:$4 sm:$0xff]   ;;  %v5817_v18 = vld [vmem:[#allocation5 + $0x98] ss:$24 sps:$4 sm:$0xff]   ;;  %v5821_v19 = vld [vmem:[#allocation5 + $0x6c] ss:$24 sps:$4 sm:$0xff]  }
  0x56   :  { %787 = vmatprep.subr.bf16.mxu1 %v5803_v8  ;;  %743 = vmatpush1.bf16.msra.mxu0 %v5802_v7  ;;  %v5820_v20 = vld [vmem:[#allocation5 + $0x90] ss:$24 sps:$4 sm:$0xff]   ;;  %v5824_v21 = vld [vmem:[#allocation5 + $0x64] ss:$24 sps:$4 sm:$0xff]   ;;  %v5826_v24 = vld [vmem:[#allocation5 + $0x60] ss:$24 sps:$4 sm:$0xff]  }
  0x57   :  { %744 = vmatprep.subr.bf16.mxu0 %v5806_v10  ;;  %v5823_v22 = vld [vmem:[#allocation5 + $0x68] ss:$24 sps:$4 sm:$0xff]   ;;  %v5827_v23 = vld [vmem:[#allocation5 + $0x3c] ss:$24 sps:$4 sm:$0xff]   ;;  %v5829_v26 = vld [vmem:[#allocation5 + $0x38] ss:$24 sps:$4 sm:$0xff]  }
  0x58   :  { %v5830_v25 = vld [vmem:[#allocation5 + $0x34] ss:$24 sps:$4 sm:$0xff]   ;;  %v5832_v28 = vld [vmem:[#allocation5 + $0x30] ss:$24 sps:$4 sm:$0xff]   ;;  %v5836_v29 = vld [vmem:[#allocation5 + $0x4] ss:$24 sps:$4 sm:$0xff]  }
  0x59   :  { %788 = vmatpush1.bf16.msra.mxu1 %v5805_v9  ;;  %v5833_v27 = vld [vmem:[#allocation5 + $0xc] ss:$24 sps:$4 sm:$0xff]   ;;  %v5835_v30 = vld [vmem:[#allocation5 + $0x8] ss:$24 sps:$4 sm:$0xff]   ;;  %v5839_v31 = vld [vmem:[#allocation5 + $0x2dc] ss:$24 sps:$4 sm:$0xff]  }
  0x5a   :  { %789 = vmatprep.subr.bf16.mxu1 %v5809_v11  ;;  %745 = vmatpush1.bf16.msra.mxu0 %v5808_v12  ;;  %v5838_v32 = vld [vmem:[#allocation5] ss:$24 sps:$4 sm:$0xff]   ;;  %v5842_v33 = vld [vmem:[#allocation5 + $0x2d4] ss:$24 sps:$4 sm:$0xff]   ;;  %v5844_v36 = vld [vmem:[#allocation5 + $0x2d0] ss:$24 sps:$4 sm:$0xff]  }
  0x5b   :  { %746 = vmatprep.subr.bf16.mxu0 %v5812_v13  ;;  %v5841_v34 = vld [vmem:[#allocation5 + $0x2d8] ss:$24 sps:$4 sm:$0xff]   ;;  %v5845_v35 = vld [vmem:[#allocation5 + $0x2ac] ss:$24 sps:$4 sm:$0xff]   ;;  %v5847_v38 = vld [vmem:[#allocation5 + $0x2a8] ss:$24 sps:$4 sm:$0xff]  }
  0x5c   :  { %v5848_v37 = vld [vmem:[#allocation5 + $0x2a4] ss:$24 sps:$4 sm:$0xff]   ;;  %v5850_v40 = vld [vmem:[#allocation5 + $0x2a0] ss:$24 sps:$4 sm:$0xff]   ;;  %v5854_v41 = vld [vmem:[#allocation5 + $0x274] ss:$24 sps:$4 sm:$0xff]  }
  0x5d   :  { %790 = vmatpush1.bf16.msra.mxu1 %v5811_v14  ;;  %v5851_v39 = vld [vmem:[#allocation5 + $0x27c] ss:$24 sps:$4 sm:$0xff]   ;;  %v5853_v42 = vld [vmem:[#allocation5 + $0x278] ss:$24 sps:$4 sm:$0xff]   ;;  %v5857_v43 = vld [vmem:[#allocation5 + $0x24c] ss:$24 sps:$4 sm:$0xff]  }
  0x5e   :  { %791 = vmatprep.subr.bf16.mxu1 %v5815_v15  ;;  %747 = vmatpush1.bf16.msra.mxu0 %v5814_v16  ;;  %v5856_v44 = vld [vmem:[#allocation5 + $0x270] ss:$24 sps:$4 sm:$0xff]   ;;  %v5860_v45 = vld [vmem:[#allocation5 + $0x244] ss:$24 sps:$4 sm:$0xff]   ;;  %v5862_v51 = vld [vmem:[#allocation5 + $0x240] ss:$24 sps:$4 sm:$0xff]  }
  0x5f   :  { %748 = vmatprep.subr.bf16.mxu0 %v5818_v17  ;;  %v127_v46 = vld [vmem:[#allocation2 + $0x8] sm:$0xff]  ;;  %v129_v47 = vld [vmem:[#allocation2 + $0x18] sm:$0xff]  ;;  %v126_v2 = vld [vmem:[#allocation2] sm:$0xff]  ;;  %vm6416_vm0 = vmmov 0   ;;  %vm959_vm1 = vcmask 261120   ;;  %s6417_s7 = smov 96  }
  0x60   :  { %v5859_v48 = vld [vmem:[#allocation5 + $0x248] ss:$24 sps:$4 sm:$0xff]   ;;  %v131_v49 = vpack.c.bf16 %v129_v47, %v127_v46  ;;  %v5863_v50 = vld [vmem:[#allocation5 + $0x21c] ss:$24 sps:$4 sm:$0xff]   ;;  %v5865_v53 = vld [vmem:[#allocation5 + $0x218] ss:$24 sps:$4 sm:$0xff]  }
  0x61   :  { %792 = vmatpush1.bf16.msra.mxu1 %v5817_v18  ;;  %v5866_v52 = vld [vmem:[#allocation5 + $0x214] ss:$24 sps:$4 sm:$0xff]   ;;  %v5868_v55 = vld [vmem:[#allocation5 + $0x210] ss:$24 sps:$4 sm:$0xff]   ;;  %v5872_v56 = vld [vmem:[#allocation5 + $0x1e4] ss:$24 sps:$4 sm:$0xff]  }
  0x62   :  { %793 = vmatprep.subr.bf16.mxu1 %v5821_v19  ;;  %749 = vmatpush1.bf16.msra.mxu0 %v5820_v20  ;;  %v5869_v54 = vld [vmem:[#allocation5 + $0x1ec] ss:$24 sps:$4 sm:$0xff]   ;;  %v5871_v57 = vld [vmem:[#allocation5 + $0x1e8] ss:$24 sps:$4 sm:$0xff]   ;;  %v5875_v58 = vld [vmem:[#allocation5 + $0x1bc] ss:$24 sps:$4 sm:$0xff]  }
  0x63   :  { %750 = vmatprep.subr.bf16.mxu0 %v5824_v21  ;;  %815 = vmatprep.mubr.bf16.mxu1 %v131_v49  ;;  %v5874_v59 = vld [vmem:[#allocation5 + $0x1e0] ss:$24 sps:$4 sm:$0xff]   ;;  %v5878_v60 = vld [vmem:[#allocation5 + $0x1b4] ss:$24 sps:$4 sm:$0xff]   ;;  %v5880_v63 = vld [vmem:[#allocation5 + $0x1b0] ss:$24 sps:$4 sm:$0xff]  }
  0x64   :  { %772 = vmatprep.mubr.bf16.mxu0 %v131_v49  ;;  %v5877_v61 = vld [vmem:[#allocation5 + $0x1b8] ss:$24 sps:$4 sm:$0xff]   ;;  %v5881_v62 = vld [vmem:[#allocation5 + $0x18c] ss:$24 sps:$4 sm:$0xff]   ;;  %v5883_v0 = vld [vmem:[#allocation5 + $0x188] ss:$24 sps:$4 sm:$0xff]  }
  0x65   :  { %794 = vmatpush1.bf16.msra.mxu1 %v5823_v22  ;;  %v5884_v1 = vld [vmem:[#allocation5 + $0x184] ss:$24 sps:$4 sm:$0xff]   ;;  %v128_v3 = vld [vmem:[#allocation2 + $0x10] sm:$0xff]  ;;  %v5886_v4 = vld [vmem:[#allocation5 + $0x180] ss:$24 sps:$4 sm:$0xff]   ;;  %s6418_s9 = smov 64  }
  0x66   :  { %795 = vmatprep.subr.bf16.mxu1 %v5827_v23  ;;  %751 = vmatpush1.bf16.msra.mxu0 %v5826_v24  ;;  %v6518_v5 = vpack.c.bf16 %v128_v3, %v126_v2  ;;  %v5889_v6 = vld [vmem:[#allocation5 + $0x164] ss:$24 sps:$4 sm:$0xff]   ;;  %v5887_v7 = vld [vmem:[#allocation5 + $0x160] ss:$24 sps:$4 sm:$0xff]   ;;  %v5892_v8 = vld [vmem:[#allocation5 + $0x134] ss:$24 sps:$4 sm:$0xff]  }
  0x67   :  { %752 = vmatprep.subr.bf16.mxu0 %v5830_v25  ;;  %v5890_v9 = vld [vmem:[#allocation5 + $0x130] ss:$24 sps:$4 sm:$0xff]   ;;  %v5895_v10 = vld [vmem:[#allocation5 + $0x104] ss:$24 sps:$4 sm:$0xff]   ;;  %v5893_v11 = vld [vmem:[#allocation5 + $0x100] ss:$24 sps:$4 sm:$0xff]  }
  0x68   :  { %v5898_v12 = vld [vmem:[#allocation5 + $0xd4] ss:$24 sps:$4 sm:$0xff]   ;;  %v5896_v13 = vld [vmem:[#allocation5 + $0xd0] ss:$24 sps:$4 sm:$0xff]   ;;  %v5901_v14 = vld [vmem:[#allocation5 + $0xa4] ss:$24 sps:$4 sm:$0xff]  }
  0x69   :  { %796 = vmatpush1.bf16.msra.mxu1 %v5829_v26  ;;  %v5899_v15 = vld [vmem:[#allocation5 + $0xa0] ss:$24 sps:$4 sm:$0xff]   ;;  %v5904_v16 = vld [vmem:[#allocation5 + $0x74] ss:$24 sps:$4 sm:$0xff]   ;;  %v5902_v17 = vld [vmem:[#allocation5 + $0x70] ss:$24 sps:$4 sm:$0xff]  }
  0x6a   :  { %797 = vmatprep.subr.bf16.mxu1 %v5833_v27  ;;  %753 = vmatpush1.bf16.msra.mxu0 %v5832_v28  ;;  %v5907_v18 = vld [vmem:[#allocation5 + $0x44] ss:$24 sps:$4 sm:$0xff]   ;;  %v5905_v19 = vld [vmem:[#allocation5 + $0x40] ss:$24 sps:$4 sm:$0xff]   ;;  %v5910_v20 = vld [vmem:[#allocation5 + $0x14] ss:$24 sps:$4 sm:$0xff]  }
  0x6b   :  { %754 = vmatprep.subr.bf16.mxu0 %v5836_v29  ;;  %v5908_v21 = vld [vmem:[#allocation5 + $0x10] ss:$24 sps:$4 sm:$0xff]   ;;  %v5913_v22 = vld [vmem:[#allocation5 + $0x2e4] ss:$24 sps:$4 sm:$0xff]   ;;  %v5911_v23 = vld [vmem:[#allocation5 + $0x2e0] ss:$24 sps:$4 sm:$0xff]  }
  0x6c   :  { %v5916_v24 = vld [vmem:[#allocation5 + $0x2b4] ss:$24 sps:$4 sm:$0xff]   ;;  %v5914_v25 = vld [vmem:[#allocation5 + $0x2b0] ss:$24 sps:$4 sm:$0xff]   ;;  %v5919_v26 = vld [vmem:[#allocation5 + $0x284] ss:$24 sps:$4 sm:$0xff]  }
  0x6d   :  { %798 = vmatpush1.bf16.msra.mxu1 %v5835_v30  ;;  %v5917_v27 = vld [vmem:[#allocation5 + $0x280] ss:$24 sps:$4 sm:$0xff]   ;;  %v5922_v28 = vld [vmem:[#allocation5 + $0x254] ss:$24 sps:$4 sm:$0xff]   ;;  %v5920_v29 = vld [vmem:[#allocation5 + $0x250] ss:$24 sps:$4 sm:$0xff]  }
  0x6e   :  { %799 = vmatprep.subr.bf16.mxu1 %v5839_v31  ;;  %755 = vmatpush1.bf16.msra.mxu0 %v5838_v32  ;;  %v5925_v30 = vld [vmem:[#allocation5 + $0x224] ss:$24 sps:$4 sm:$0xff]   ;;  %v5923_v31 = vld [vmem:[#allocation5 + $0x220] ss:$24 sps:$4 sm:$0xff]   ;;  %v5928_v32 = vld [vmem:[#allocation5 + $0x1f4] ss:$24 sps:$4 sm:$0xff]  }
  0x6f   :  { %756 = vmatprep.subr.bf16.mxu0 %v5842_v33  ;;  %v5926_v33 = vld [vmem:[#allocation5 + $0x1f0] ss:$24 sps:$4 sm:$0xff]   ;;  %vm1892_vm2 = vcmask 1043456   ;;  %vm1696_vm3 = vcmask 64512   ;;  %vm2676_vm4 = vcmask 523264   ;;  %vm2679_vm5 = vcmask 785408  }
  0x71   :  { %800 = vmatpush2.bf16.msra.mxu1 %v5841_v34  ;;  %v5931_v34 = vld [vmem:[#allocation5 + $0x1c4] ss:$24 sps:$4 sm:$0xff]  }
  0x72   :  { %801 = vmatprep.subr.bf16.mxu1 %v5845_v35  ;;  %757 = vmatpush2.bf16.msra.mxu0 %v5844_v36  ;;  %v5929_v35 = vld [vmem:[#allocation5 + $0x1c0] ss:$24 sps:$4 sm:$0xff]   ;;  %v5934_v36 = vld [vmem:[#allocation5 + $0x194] ss:$24 sps:$4 sm:$0xff]  }
  0x73   :  { %758 = vmatprep.subr.bf16.mxu0 %v5848_v37  ;;  %v5932_v37 = vld [vmem:[#allocation5 + $0x190] ss:$24 sps:$4 sm:$0xff]  }
  0x75   :  { %802 = vmatpush2.bf16.msra.mxu1 %v5847_v38  ;;  %v6415_v38 = vmov 0.0  }
  0x76   :  { %803 = vmatprep.subr.bf16.mxu1 %v5851_v39  ;;  %759 = vmatpush2.bf16.msra.mxu0 %v5850_v40  ;;  %v230_v39 = vlaneseq }
  0x77   :  { %760 = vmatprep.subr.bf16.mxu0 %v5854_v41 }
  0x78   :  { %v6529_v40 = vshrl.u32 %v230_v39, 7 }
  0x79   :  { %804 = vmatpush2.bf16.msra.mxu1 %v5853_v42 }
  0x7a   :  { %805 = vmatprep.subr.bf16.mxu1 %v5857_v43  ;;  %761 = vmatpush2.bf16.msra.mxu0 %v5856_v44  ;;  %v240_v41 = vsub.s32 2, %v6529_v40  ;;  %v244_v42 = vsub.s32 3, %v6529_v40  ;;  %v6534_v43 = vsub.s32 0, %v6529_v40  ;;  %v228_v44 = vld [vmem:[#allocation7] sm:$0x3f] }
  0x7b   :  { %762 = vmatprep.subr.bf16.mxu0 %v5860_v45  ;;  %v6537_v45 = vsub.s32 1, %v6529_v40 }
  0x7c   :  { %v241_v46 = vrot.slane %v228_v44, %v240_v41  ;;  %v245_v47 = vrot.slane %v228_v44, %v244_v42 }
  0x7d   :  { %806 = vmatpush2.bf16.msra.mxu1 %v5859_v48  ;;  %v233_v48 = vrot.slane %v228_v44, %v6534_v43 }
  0x7e   :  { %807 = vmatprep.subr.bf16.mxu1 %v5863_v50  ;;  %763 = vmatpush2.bf16.msra.mxu0 %v5862_v51  ;;  %v237_v50 = vrot.slane %v228_v44, %v6537_v45 }
  0x7f   :  { %764 = vmatprep.subr.bf16.mxu0 %v5866_v52 }
  0x81   :  { %808 = vmatpush2.bf16.msra.mxu1 %v5865_v53 }
  0x82   :  { %809 = vmatprep.subr.bf16.mxu1 %v5869_v54  ;;  %765 = vmatpush2.bf16.msra.mxu0 %v5868_v55 }
  0x83   :  { %766 = vmatprep.subr.bf16.mxu0 %v5872_v56 }
  0x85   :  { %810 = vmatpush2.bf16.msra.mxu1 %v5871_v57 }
  0x86   :  { %811 = vmatprep.subr.bf16.mxu1 %v5875_v58  ;;  %767 = vmatpush2.bf16.msra.mxu0 %v5874_v59 }
  0x87   :  { %768 = vmatprep.subr.bf16.mxu0 %v5878_v60 }
  0x89   :  { %812 = vmatpush2.bf16.msra.mxu1 %v5877_v61 }
  0x8a   :  { %813 = vmatprep.subr.bf16.mxu1 %v5881_v62  ;;  %769 = vmatpush2.bf16.msra.mxu0 %v5880_v63 }
  0x8b   :  { %770 = vmatprep.subr.bf16.mxu0 %v5884_v1 }
  0x8d   :  { %814 = vmatpush2.bf16.msra.mxu1 %v5883_v0 }
  0x8e   :  { %771 = vmatpush2.bf16.msra.mxu0 %v5886_v4  ;;  %5550 = vmatprep.subr.bf16.mxu1 %v6415_v38 }
  0x8f   :  { %826 = vmatprep.subr.bf16.mxu0 %v5889_v6 }
  0x90   :  { %816 = vmatmul.mubr.bf16.vlgmr.msra.gmra.mxu1 %v6518_v5 }
  0x91   :  { %773 = vmatmul.mubr.bf16.vlgmr.msra.gmra.mxu0 %v6518_v5  ;;  %5552 = vmatprep.mubr.msk.bf16.mxu1 %vm6416_vm0, %v6415_v38 }
  0x92   :  { %827 = vmatpush1.bf16.msra.mxu0 %v5887_v7  ;;  %858 = vmatprep.mubr.bf16.mxu0 %v131_v49 }
  0x93   :  { %828 = vmatprep.subr.bf16.mxu0 %v5892_v8  ;;  %v248_v8 = vsub.s32 4, %v6529_v40 }
  0x96   :  { %829 = vmatpush1.bf16.msra.mxu0 %v5890_v9  ;;  %v252_v9 = vsub.s32 5, %v6529_v40 }
  0x97   :  { %830 = vmatprep.subr.bf16.mxu0 %v5895_v10  ;;  %v249_v10 = vrot.slane %v228_v44, %v248_v8 }
  0x9a   :  { %831 = vmatpush1.bf16.msra.mxu0 %v5893_v11 }
  0x9b   :  { %832 = vmatprep.subr.bf16.mxu0 %v5898_v12 }
  0x9e   :  { %833 = vmatpush1.bf16.msra.mxu0 %v5896_v13  ;;  %v253_v13 = vrot.slane %v228_v44, %v252_v9 }
  0x9f   :  { %834 = vmatprep.subr.bf16.mxu0 %v5901_v14 }
  0xa2   :  { %835 = vmatpush1.bf16.msra.mxu0 %v5899_v15 }
  0xa3   :  { %836 = vmatprep.subr.bf16.mxu0 %v5904_v16 }
  0xa6   :  { %837 = vmatpush1.bf16.msra.mxu0 %v5902_v17 }
  0xa7   :  { %838 = vmatprep.subr.bf16.mxu0 %v5907_v18 }
  0xaa   :  { %839 = vmatpush1.bf16.msra.mxu0 %v5905_v19 }
  0xab   :  { %840 = vmatprep.subr.bf16.mxu0 %v5910_v20 }
  0xae   :  { %841 = vmatpush1.bf16.msra.mxu0 %v5908_v21 }
  0xaf   :  { %842 = vmatprep.subr.bf16.mxu0 %v5913_v22 }
  0xb2   :  { %843 = vmatpush2.bf16.msra.mxu0 %v5911_v23 }
  0xb3   :  { %844 = vmatprep.subr.bf16.mxu0 %v5916_v24 }
  0xb6   :  { %845 = vmatpush2.bf16.msra.mxu0 %v5914_v25 }
  0xb7   :  { %846 = vmatprep.subr.bf16.mxu0 %v5919_v26 }
  0xba   :  { %847 = vmatpush2.bf16.msra.mxu0 %v5917_v27 }
  0xbb   :  { %848 = vmatprep.subr.bf16.mxu0 %v5922_v28 }
  0xbe   :  { %849 = vmatpush2.bf16.msra.mxu0 %v5920_v29 }
  0xbf   :  { %850 = vmatprep.subr.bf16.mxu0 %v5925_v30 }
  0xc2   :  { %851 = vmatpush2.bf16.msra.mxu0 %v5923_v31 }
  0xc3   :  { %852 = vmatprep.subr.bf16.mxu0 %v5928_v32 }
  0xc6   :  { %853 = vmatpush2.bf16.msra.mxu0 %v5926_v33 }
  0xc7   :  { %854 = vmatprep.subr.bf16.mxu0 %v5931_v34 }
  0xca   :  { %855 = vmatpush2.bf16.msra.mxu0 %v5929_v35 }
  0xcb   :  { %856 = vmatprep.subr.bf16.mxu0 %v5934_v36 }
  0xce   :  { %857 = vmatpush2.bf16.msra.mxu0 %v5932_v37 }
  0xcf   :  { %5646 = vmatprep.subr.bf16.mxu0 %v6415_v38 }
  0xd1   :  { %859 = vmatmul.mubr.bf16.vlgmr.msra.gmra.mxu0 %v6518_v5 }
  0xd2   :  { %5648 = vmatprep.mubr.msk.bf16.mxu0 %vm6416_vm0, %v6415_v38 }
 0x150   :  { %v817_v49 = vpop.f32.mrf.mxu1 }
 0x151   :  { %v774_v52 = vpop.f32.mrf.mxu0  ;;  %v818_v53 = vadd.f32 %v817_v49, %v241_v46 }
 0x152   :  { %v819_v51 = vpop.f32.mrf.mxu1  ;;  %v775_v55 = vadd.f32 %v774_v52, %v233_v48 }
 0x153   :  { %v820_v54 = vadd.f32 %v819_v51, %v245_v47  ;;  %v776_v57 = vpop.f32.mrf.mxu0 }
 0x154   :  { %v821_v56 = vpop.f32.mrf.mxu1  ;;  %v777_v59 = vadd.f32 %v776_v57, %v237_v50 }
 0x155   :  { %v6545_v58 = vpack.c.bf16 %v820_v54, %v818_v53  ;;  %v778_v61 = vpop.f32.mrf.mxu0  ;;  %v822_v62 = vadd.f32 %v821_v56, %v241_v46 }
 0x156   :  { %v823_v60 = vpop.f32.mrf.mxu1  ;;  %v6547_v63 = vpack.c.bf16 %v777_v59, %v775_v55  ;;  %v779_v4 = vadd.f32 %v778_v61, %v233_v48 }
 0x157   :  { %v824_v0 = vadd.f32 %v823_v60, %v245_v47  ;;  %919 = vrot.lane.b32.xlu0 %v6545_v58, %s6417_s7  ;;  %v964_v1 = vsel %vm959_vm1, %v6545_v58, 0  ;;  %v780_v2 = vpop.f32.mrf.mxu0  ;;  %v931_v46 = vrot.slane %v6545_v58, 4 }
 0x158   :  { %5551 = vmatpush3.bf16.xpose.msra.mxu1 %v964_v1  ;;  %v781_v5 = vadd.f32 %v780_v2, %v237_v50  ;;  %v911_v50 = vrot.slane %v6547_v63, 4 }
 0x159   :  { %v6553_v3 = vpack.c.bf16 %v824_v0, %v822_v62  ;;  %5556 = vmatprep.subr.bf16.mxu1 %v6415_v38  ;;  %v1332_v48 = vsel %vm959_vm1, %v931_v46, 0 }
 0x15a   :  { %v6560_v6 = vpack.c.bf16 %v781_v5, %v779_v4 }
 0x15b   :  { %921 = vrot.lane.b32.xlu1 %v6553_v3, %s6417_s7  ;;  %899 = vrot.lane.b32.xlu0 %v6547_v63, %s6417_s7  ;;  %v1010_v7 = vsel %vm959_vm1, %v6553_v3, 0  ;;  %v932_v49 = vrot.slane %v6553_v3, 4 }
 0x15c   :  { %v912_v53 = vrot.slane %v6560_v6, 4 }
 0x15d   :  { %v1378_v51 = vsel %vm959_vm1, %v932_v49, 0 }
 0x15f   :  { %901 = vrot.lane.b32.xlu1 %v6560_v6, %s6417_s7  ;;  %923 = vrot.lane.b32.xlu0 %v6545_v58, %s6418_s9 }
 0x160   :  { %5553 = vmatmul.mubr.msk.bf16.vlgmr.msra.gmra.mxu1 %vm959_vm1, %v6547_v63 }
 0x161   :  { %5557 = vmatpush3.bf16.xpose.msra.mxu1 %v1010_v7  ;;  %5558 = vmatprep.mubr.msk.bf16.mxu1 %vm6416_vm0, %v6415_v38 }
 0x162   :  { %5562 = vmatprep.subr.bf16.mxu1 %v6415_v38 }
 0x163   :  { %903 = vrot.lane.b32.xlu1 %v6547_v63, %s6418_s9  ;;  %925 = vrot.lane.b32.xlu0 %v6553_v3, %s6418_s9 }
 0x167   :  { %905 = vrot.lane.b32.xlu1 %v6560_v6, %s6418_s9  ;;  %927 = vrot.lane.b32.xlu0 %v6545_v58, %s6413_s20 }
 0x168   :  { %5559 = vmatmul.mubr.msk.bf16.vlgmr.msra.gmra.mxu1 %vm959_vm1, %v6560_v6 }
 0x169   :  { %5564 = vmatprep.mubr.msk.bf16.mxu1 %vm6416_vm0, %v6415_v38 }
 0x16b   :  { %907 = vrot.lane.b32.xlu1 %v6547_v63, %s6413_s20  ;;  %929 = vrot.lane.b32.xlu0 %v6553_v3, %s6413_s20 }
 0x16f   :  { %909 = vrot.lane.b32.xlu1 %v6560_v6, %s6413_s20 }
 0x191   :  { %v860_v11 = vpop.f32.mrf.mxu0 }
 0x192   :  { %v861_v12 = vadd.f32 %v860_v11, %v249_v10 }
 0x193   :  { %v862_v14 = vpop.f32.mrf.mxu0 }
 0x194   :  { %v863_v15 = vadd.f32 %v862_v14, %v253_v13 }
 0x195   :  { %v864_v16 = vpop.f32.mrf.mxu0 }
 0x196   :  { %v6597_v17 = vpack.c.bf16 %v863_v15, %v861_v12  ;;  %v865_v18 = vadd.f32 %v864_v16, %v249_v10 }
 0x197   :  { %v866_v19 = vpop.f32.mrf.mxu0 }
 0x198   :  { %v867_v20 = vadd.f32 %v866_v19, %v253_v13  ;;  %939 = vrot.lane.b32.xlu1 %v6597_v17, %s6417_s7  ;;  %v1894_v22 = vsel %vm1892_vm2, %v6597_v17, 0 }
 0x199   :  { %5647 = vmatpush3.bf16.msra.mxu0 %v1894_v22 }
 0x19a   :  { %v6601_v21 = vpack.c.bf16 %v867_v20, %v865_v18  ;;  %5658 = vmatprep.subr.bf16.mxu0 %v6415_v38 }
 0x19c   :  { %941 = vrot.lane.b32.xlu0 %v6601_v21, %s6417_s7  ;;  %v1940_v20 = vsel %vm1892_vm2, %v6601_v21, 0 }
 0x1c9   :  { %v920_v23 = vpop.permute.xlu0 %919 }
 0x1ca   :  { %v1056_v24 = vsel %vm959_vm1, %v920_v23, 0  ;;  %v933_v52 = vrot.slane %v920_v23, 4 }
 0x1cb   :  { %5563 = vmatpush3.bf16.xpose.msra.mxu1 %v1056_v24 }
 0x1cc   :  { %5568 = vmatprep.subr.bf16.mxu1 %v6415_v38  ;;  %v1424_v54 = vsel %vm959_vm1, %v933_v52, 0 }
 0x1cd   :  { %v922_v25 = vpop.permute.xlu1 %921  ;;  %v900_v26 = vpop.permute.xlu0 %899 }
 0x1ce   :  { %v1102_v27 = vsel %vm959_vm1, %v922_v25, 0  ;;  %v934_v55 = vrot.slane %v922_v25, 4  ;;  %v913_v56 = vrot.slane %v900_v26, 4 }
 0x1d0   :  { %v1470_v57 = vsel %vm959_vm1, %v934_v55, 0 }
 0x1d1   :  { %v924_v28 = vpop.permute.xlu0 %923  ;;  %v902_v29 = vpop.permute.xlu1 %901 }
 0x1d2   :  { %5565 = vmatmul.mubr.msk.bf16.vlgmr.msra.gmra.mxu1 %vm959_vm1, %v900_v26  ;;  %v1148_v30 = vsel %vm959_vm1, %v924_v28, 0  ;;  %v935_v58 = vrot.slane %v924_v28, 4  ;;  %v914_v59 = vrot.slane %v902_v29, 4 }
 0x1d3   :  { %5569 = vmatpush3.bf16.xpose.msra.mxu1 %v1102_v27  ;;  %5570 = vmatprep.mubr.msk.bf16.mxu1 %vm6416_vm0, %v6415_v38 }
 0x1d4   :  { %5574 = vmatprep.subr.bf16.mxu1 %v6415_v38  ;;  %v1516_v60 = vsel %vm959_vm1, %v935_v58, 0 }
 0x1d5   :  { %v6620_v31 = vpop.permute.xlu0 %925  ;;  %v6622_v32 = vpop.permute.xlu1 %903 }
 0x1d6   :  { %v1194_v33 = vsel %vm959_vm1, %v6620_v31, 0  ;;  %v936_v61 = vrot.slane %v6620_v31, 4  ;;  %v915_v62 = vrot.slane %v6622_v32, 4 }
 0x1d8   :  { %v1562_v2 = vsel %vm959_vm1, %v936_v61, 0 }
 0x1d9   :  { %v6631_v34 = vpop.permute.xlu0 %927  ;;  %v6633_v35 = vpop.permute.xlu1 %905 }
 0x1da   :  { %5571 = vmatmul.mubr.msk.bf16.vlgmr.msra.gmra.mxu1 %vm959_vm1, %v902_v29  ;;  %v1240_v36 = vsel %vm959_vm1, %v6631_v34, 0  ;;  %v937_v4 = vrot.slane %v6631_v34, 4  ;;  %v916_v6 = vrot.slane %v6633_v35, 4 }
 0x1db   :  { %5575 = vmatpush3.bf16.xpose.msra.mxu1 %v1148_v30  ;;  %5576 = vmatprep.mubr.msk.bf16.mxu1 %vm6416_vm0, %v6415_v38 }
 0x1dc   :  { %5580 = vmatprep.subr.bf16.mxu1 %v6415_v38  ;;  %v1608_v12 = vsel %vm959_vm1, %v937_v4, 0 }
 0x1dd   :  { %v6642_v37 = vpop.permute.xlu0 %929  ;;  %v6644_v39 = vpop.permute.xlu1 %907 }
 0x1de   :  { %v1286_v44 = vsel %vm959_vm1, %v6642_v37, 0  ;;  %v938_v14 = vrot.slane %v6642_v37, 4  ;;  %v917_v16 = vrot.slane %v6644_v39, 4 }
 0x1e0   :  { %v1654_v18 = vsel %vm959_vm1, %v938_v14, 0 }
 0x1e1   :  { %v6654_v47 = vpop.permute.xlu1 %909 }
 0x1e2   :  { %5577 = vmatmul.mubr.msk.bf16.vlgmr.msra.gmra.mxu1 %vm959_vm1, %v6622_v32  ;;  %v918_v19 = vrot.slane %v6654_v47, 4 }
 0x1e3   :  { %5581 = vmatpush3.bf16.xpose.msra.mxu1 %v1194_v33  ;;  %5582 = vmatprep.mubr.msk.bf16.mxu1 %vm6416_vm0, %v6415_v38 }
 0x1e4   :  { %5586 = vmatprep.subr.bf16.mxu1 %v6415_v38 }
 0x1ea   :  { %5583 = vmatmul.mubr.msk.bf16.vlgmr.msra.gmra.mxu1 %vm959_vm1, %v6633_v35 }
 0x1eb   :  { %5587 = vmatpush3.bf16.xpose.msra.mxu1 %v1240_v36  ;;  %5588 = vmatprep.mubr.msk.bf16.mxu1 %vm6416_vm0, %v6415_v38 }
 0x1ec   :  { %5592 = vmatprep.subr.bf16.mxu1 %v6415_v38 }
 0x1f2   :  { %5589 = vmatmul.mubr.msk.bf16.vlgmr.msra.gmra.mxu1 %vm959_vm1, %v6644_v39 }
 0x1f3   :  { %5593 = vmatpush3.bf16.xpose.msra.mxu1 %v1286_v44  ;;  %5594 = vmatprep.mubr.msk.bf16.mxu1 %vm6416_vm0, %v6415_v38 }
 0x1f4   :  { %5598 = vmatprep.subr.bf16.mxu1 %v6415_v38 }
 0x1fa   :  { %5595 = vmatmul.mubr.msk.bf16.vlgmr.msra.gmra.mxu1 %vm959_vm1, %v6654_v47 }
 0x1fb   :  { %5599 = vmatpush3.bf16.xpose.msra.mxu1 %v1332_v48  ;;  %5600 = vmatprep.mubr.msk.bf16.mxu1 %vm6416_vm0, %v6415_v38 }
 0x1fc   :  { %5604 = vmatprep.subr.bf16.mxu1 %v6415_v38 }
 0x202   :  { %5601 = vmatmul.mubr.msk.bf16.vlgmr.msra.gmra.mxu1 %vm959_vm1, %v911_v50 }
 0x203   :  { %5605 = vmatpush3.bf16.xpose.msra.mxu1 %v1378_v51  ;;  %5606 = vmatprep.mubr.msk.bf16.mxu1 %vm6416_vm0, %v6415_v38 }
 0x204   :  { %5610 = vmatprep.subr.bf16.mxu1 %v6415_v38 }
 0x20a   :  { %5607 = vmatmul.mubr.msk.bf16.vlgmr.msra.gmra.mxu1 %vm959_vm1, %v912_v53  ;;  %v6733_v51 = vpop.permute.xlu1 %939 }
 0x20b   :  { %5611 = vmatpush3.bf16.xpose.msra.mxu1 %v1424_v54  ;;  %5612 = vmatprep.mubr.msk.bf16.mxu1 %vm6416_vm0, %v6415_v38 }
 0x20c   :  { %5616 = vmatprep.subr.bf16.mxu1 %v6415_v38 }
 0x20e   :  { %v6727_v36 = vpop.permute.xlu0 %941 }
 0x212   :  { %5613 = vmatmul.mubr.msk.bf16.vlgmr.msra.gmra.mxu1 %vm959_vm1, %v913_v56 }
 0x213   :  { %5617 = vmatpush3.bf16.xpose.msra.mxu1 %v1470_v57  ;;  %5618 = vmatprep.mubr.msk.bf16.mxu1 %vm6416_vm0, %v6415_v38 }
 0x214   :  { %5622 = vmatprep.subr.bf16.mxu1 %v6415_v38 }
 0x21a   :  { %5619 = vmatmul.mubr.msk.bf16.vlgmr.msra.gmra.mxu1 %vm959_vm1, %v914_v59 }
 0x21b   :  { %5623 = vmatpush3.bf16.xpose.msra.mxu1 %v1516_v60  ;;  %5624 = vmatprep.mubr.msk.bf16.mxu1 %vm6416_vm0, %v6415_v38 }
 0x21c   :  { %5628 = vmatprep.subr.bf16.mxu1 %v6415_v38 }
 0x220   :  { %v1000_v63 = vpop.f32.mrf.mxu1 }
 0x221   :  { %v1697_v0 = vsel %vm1696_vm3, %v1000_v63, -inf }
 0x222   :  { %1698 = vmax.xlane.f32.xlu0 %v1697_v0  ;;  %v5554_v1 = vpop.f32.mrf.mxu1  ;;  %5625 = vmatmul.mubr.msk.bf16.vlgmr.msra.gmra.mxu1 %vm959_vm1, %v915_v62 }
 0x223   :  { %5629 = vmatpush3.bf16.xpose.msra.mxu1 %v1562_v2  ;;  %5630 = vmatprep.mubr.msk.bf16.mxu1 %vm6416_vm0, %v6415_v38 }
 0x224   :  { %v1003_v3 = vpop.f32.mrf.mxu1  ;;  %5634 = vmatprep.subr.bf16.mxu1 %v6415_v38 }
 0x226   :  { %v5555_v5 = vpop.f32.mrf.mxu1 }
 0x228   :  { %v1046_v7 = vpop.f32.mrf.mxu1 }
 0x229   :  { %v1700_v10 = vsel %vm1696_vm3, %v1046_v7, -inf }
 0x22a   :  { %1701 = vmax.xlane.f32.xlu1 %v1700_v10  ;;  %v5560_v11 = vpop.f32.mrf.mxu1  ;;  %5631 = vmatmul.mubr.msk.bf16.vlgmr.msra.gmra.mxu1 %vm959_vm1, %v916_v6 }
 0x22b   :  { %5635 = vmatpush3.bf16.xpose.msra.mxu1 %v1608_v12  ;;  %5636 = vmatprep.mubr.msk.bf16.mxu1 %vm6416_vm0, %v6415_v38 }
 0x22c   :  { %v1049_v13 = vpop.f32.mrf.mxu1  ;;  %5640 = vmatprep.subr.bf16.mxu1 %v6415_v38 }
 0x22e   :  { %v5561_v15 = vpop.f32.mrf.mxu1 }
 0x232   :  { %5637 = vmatmul.mubr.msk.bf16.vlgmr.msra.gmra.mxu1 %vm959_vm1, %v917_v16 }
 0x233   :  { %5641 = vmatpush3.bf16.xpose.msra.mxu1 %v1654_v18  ;;  %5642 = vmatprep.mubr.msk.bf16.mxu1 %vm6416_vm0, %v6415_v38 }
 0x234   :  { %5652 = vmatprep.subr.bf16.mxu1 %v6415_v38 }
 0x23a   :  { %5643 = vmatmul.mubr.msk.bf16.vlgmr.msra.gmra.mxu1 %vm959_vm1, %v918_v19 }
 0x23b   :  { %5653 = vmatpush3.bf16.msra.mxu1 %v1940_v20  ;;  %5654 = vmatprep.mubr.msk.bf16.mxu1 %vm6416_vm0, %v6415_v38 }
 0x23c   :  { %5664 = vmatprep.subr.bf16.mxu1 %v6415_v38 }
 0x292   :  { %v6715_v22 = vpop.f32.mrf.mxu1 }
 0x293   :  { %v1703_v23 = vsel %vm1696_vm3, %v6715_v22, -inf }
 0x294   :  { %1704 = vmax.xlane.f32.xlu0 %v1703_v23  ;;  %v5566_v24 = vpop.f32.mrf.mxu1 }
 0x296   :  { %v1095_v25 = vpop.f32.mrf.mxu1 }
 0x298   :  { %v5567_v26 = vpop.f32.mrf.mxu1 }
 0x29a   :  { %v6719_v27 = vpop.f32.mrf.mxu1 }
 0x29b   :  { %v1706_v28 = vsel %vm1696_vm3, %v6719_v27, -inf }
 0x29c   :  { %1707 = vmax.xlane.f32.xlu0 %v1706_v28  ;;  %v5572_v29 = vpop.f32.mrf.mxu1 }
 0x29e   :  { %v1141_v30 = vpop.f32.mrf.mxu1 }
 0x2a0   :  { %v5573_v31 = vpop.f32.mrf.mxu1 }
 0x2a2   :  { %v6723_v32 = vpop.f32.mrf.mxu1 }
 0x2a3   :  { %v1709_v33 = vsel %vm1696_vm3, %v6723_v32, -inf }
 0x2a4   :  { %1710 = vmax.xlane.f32.xlu1 %v1709_v33  ;;  %v5578_v34 = vpop.f32.mrf.mxu1 }
 0x2a6   :  { %v1187_v35 = vpop.f32.mrf.mxu1 }
 0x2a8   :  { %v5579_v37 = vpop.f32.mrf.mxu1 }
 0x2aa   :  { %v6729_v39 = vpop.f32.mrf.mxu1 }
 0x2ab   :  { %v1699_v44 = vpop.xlane.xlu0 %1698  ;;  %v1712_v46 = vsel %vm1696_vm3, %v6729_v39, -inf }
 0x2ac   :  { %v1745_v47 = vsub.f32 %v1000_v63, %v1699_v44  ;;  %1713 = vmax.xlane.f32.xlu0 %v1712_v46  ;;  %v5584_v48 = vpop.f32.mrf.mxu1 }
 0x2ae   :  { %v1761_v49 = vmul.f32 1.442695, %v1745_v47  ;;  %v1233_v50 = vpop.f32.mrf.mxu1 }
 0x2b0   :  { %6175 = vpow2.f32 %v1761_v49  ;;  %v5585_v52 = vpop.f32.mrf.mxu1 }
 0x2b2   :  { %v6735_v53 = vpop.f32.mrf.mxu1 }
 0x2b3   :  { %v1702_v54 = vpop.xlane.xlu1 %1701  ;;  %v1715_v55 = vsel %vm1696_vm3, %v6735_v53, -inf }
 0x2b4   :  { %v1746_v56 = vsub.f32 %v1046_v7, %v1702_v54  ;;  %1716 = vmax.xlane.f32.xlu1 %v1715_v55  ;;  %v5590_v57 = vpop.f32.mrf.mxu1 }
 0x2b6   :  { %v1763_v58 = vmul.f32 1.442695, %v1746_v56  ;;  %v1279_v59 = vpop.f32.mrf.mxu1 }
 0x2b8   :  { %6177 = vpow2.f32 %v1763_v58  ;;  %v5591_v60 = vpop.f32.mrf.mxu1 }
 0x2ba   :  { %v6739_v61 = vpop.f32.mrf.mxu1 }
 0x2bb   :  { %v1718_v62 = vsel %vm1696_vm3, %v6739_v61, -inf }
 0x2bc   :  { %1719 = vmax.xlane.f32.xlu0 %v1718_v62  ;;  %v5596_v63 = vpop.f32.mrf.mxu1 }
 0x2bd   :  { %v6743_v0 = vpop.eup %6175 }
 0x2be   :  { %v1793_v1 = vsel %vm1696_vm3, %v6743_v0, 0.0  ;;  %v1325_v2 = vpop.f32.mrf.mxu1 }
 0x2bf   :  { %1794 = vadd.xlane.f32.xlu1 %v1793_v1 }
 0x2c0   :  { %v5597_v3 = vpop.f32.mrf.mxu1 }
 0x2c2   :  { %v6747_v4 = vpop.f32.mrf.mxu1 }
 0x2c3   :  { %v1721_v5 = vsel %vm1696_vm3, %v6747_v4, -inf }
 0x2c4   :  { %1722 = vmax.xlane.f32.xlu1 %v1721_v5  ;;  %v5602_v6 = vpop.f32.mrf.mxu1 }
 0x2c5   :  { %v6751_v7 = vpop.eup %6177 }
 0x2c6   :  { %v1796_v10 = vsel %vm1696_vm3, %v6751_v7, 0.0  ;;  %v1371_v11 = vpop.f32.mrf.mxu1 }
 0x2c7   :  { %1797 = vadd.xlane.f32.xlu0 %v1796_v10 }
 0x2c8   :  { %v5603_v12 = vpop.f32.mrf.mxu1 }
 0x2ca   :  { %v6755_v13 = vpop.f32.mrf.mxu1 }
 0x2cb   :  { %v1724_v14 = vsel %vm1696_vm3, %v6755_v13, -inf }
 0x2cc   :  { %1725 = vmax.xlane.f32.xlu0 %v1724_v14  ;;  %v5608_v15 = vpop.f32.mrf.mxu1 }
 0x2ce   :  { %v1417_v16 = vpop.f32.mrf.mxu1 }
 0x2d0   :  { %v5609_v18 = vpop.f32.mrf.mxu1 }
 0x2d2   :  { %v6759_v19 = vpop.f32.mrf.mxu1 }
 0x2d3   :  { %v1727_v20 = vsel %vm1696_vm3, %v6759_v19, -inf }
 0x2d4   :  { %1728 = vmax.xlane.f32.xlu1 %v1727_v20  ;;  %v5614_v23 = vpop.f32.mrf.mxu1 }
 0x2d6   :  { %v1463_v24 = vpop.f32.mrf.mxu1 }
 0x2d8   :  { %v5615_v25 = vpop.f32.mrf.mxu1 }
 0x2da   :  { %v6763_v26 = vpop.f32.mrf.mxu1 }
 0x2db   :  { %v1730_v28 = vsel %vm1696_vm3, %v6763_v26, -inf }
 0x2dc   :  { %1731 = vmax.xlane.f32.xlu0 %v1730_v28  ;;  %v5620_v29 = vpop.f32.mrf.mxu1 }
 0x2de   :  { %v1509_v30 = vpop.f32.mrf.mxu1 }
 0x2e0   :  { %v5621_v31 = vpop.f32.mrf.mxu1 }
 0x2e2   :  { %v6767_v33 = vpop.f32.mrf.mxu1 }
 0x2e3   :  { %v1733_v34 = vsel %vm1696_vm3, %v6767_v33, -inf }
 0x2e4   :  { %1734 = vmax.xlane.f32.xlu1 %v1733_v34  ;;  %v5626_v35 = vpop.f32.mrf.mxu1 }
 0x2e6   :  { %v1555_v37 = vpop.f32.mrf.mxu1 }
 0x2e8   :  { %v5627_v44 = vpop.f32.mrf.mxu1 }
 0x2ea   :  { %v6771_v46 = vpop.f32.mrf.mxu1 }
 0x2eb   :  { %v1736_v47 = vsel %vm1696_vm3, %v6771_v46, -inf }
 0x2ec   :  { %1737 = vmax.xlane.f32.xlu0 %v1736_v47  ;;  %v5632_v48 = vpop.f32.mrf.mxu1 }
 0x2ee   :  { %v1601_v49 = vpop.f32.mrf.mxu1 }
 0x2f0   :  { %v5633_v50 = vpop.f32.mrf.mxu1 }
 0x2f2   :  { %v6775_v52 = vpop.f32.mrf.mxu1 }
 0x2f3   :  { %v1739_v54 = vsel %vm1696_vm3, %v6775_v52, -inf }
 0x2f4   :  { %1740 = vmax.xlane.f32.xlu1 %v1739_v54  ;;  %v5638_v55 = vpop.f32.mrf.mxu1 }
 0x2f6   :  { %v1647_v56 = vpop.f32.mrf.mxu1 }
 0x2f8   :  { %v5639_v57 = vpop.f32.mrf.mxu1 }
 0x2fa   :  { %v6779_v58 = vpop.f32.mrf.mxu1 }
 0x2fb   :  { %v1742_v59 = vsel %vm1696_vm3, %v6779_v58, -inf }
 0x2fc   :  { %1743 = vmax.xlane.f32.xlu0 %v1742_v59  ;;  %v5644_v60 = vpop.f32.mrf.mxu1 }
 0x2fe   :  { %v1693_v62 = vpop.f32.mrf.mxu1 }
 0x2ff   :  { %v1986_v62 = vsel %vm1892_vm2, %v6733_v51, 0 }
 0x300   :  { %v5645_v63 = vpop.f32.mrf.mxu1 }
 0x305   :  { %943 = vrot.lane.b32.xlu1 %v6597_v17, %s6418_s9 }
 0x312   :  { %945 = vrot.lane.b32.xlu0 %v6601_v21, %s6418_s9 }
 0x31d   :  { %v1705_v1 = vpop.xlane.xlu0 %1704 }
 0x31e   :  { %v1747_v2 = vsub.f32 %v6715_v22, %v1705_v1 }
 0x320   :  { %v1765_v3 = vmul.f32 1.442695, %v1747_v2 }
 0x322   :  { %6179 = vpow2.f32 %v1765_v3 }
 0x325   :  { %v1708_v5 = vpop.xlane.xlu0 %1707 }
 0x326   :  { %v1748_v6 = vsub.f32 %v6719_v27, %v1708_v5 }
 0x328   :  { %v1767_v10 = vmul.f32 1.442695, %v1748_v6 }
 0x32a   :  { %6181 = vpow2.f32 %v1767_v10  ;;  %v2032_v10 = vsel %vm1892_vm2, %v6727_v36, 0 }
 0x32d   :  { %v1711_v11 = vpop.xlane.xlu1 %1710 }
 0x32e   :  { %v1749_v12 = vsub.f32 %v6723_v32, %v1711_v11 }
 0x32f   :  { %v6790_v14 = vpop.eup %6179 }
 0x330   :  { %v1769_v15 = vmul.f32 1.442695, %v1749_v12  ;;  %v1799_v16 = vsel %vm1696_vm3, %v6790_v14, 0.0 }
 0x331   :  { %1800 = vadd.xlane.f32.xlu1 %v1799_v16 }
 0x332   :  { %6183 = vpow2.f32 %v1769_v15 }
 0x335   :  { %v1714_v18 = vpop.xlane.xlu0 %1713 }
 0x336   :  { %v1750_v22 = vsub.f32 %v6729_v39, %v1714_v18 }
 0x337   :  { %v6795_v20 = vpop.eup %6181 }
 0x338   :  { %v1771_v23 = vmul.f32 1.442695, %v1750_v22  ;;  %v1802_v27 = vsel %vm1696_vm3, %v6795_v20, 0.0 }
 0x339   :  { %1803 = vadd.xlane.f32.xlu0 %v1802_v27 }
 0x33a   :  { %6185 = vpow2.f32 %v1771_v23 }
 0x33d   :  { %v1717_v32 = vpop.xlane.xlu1 %1716 }
 0x33e   :  { %v1751_v24 = vsub.f32 %v6735_v53, %v1717_v32 }
 0x33f   :  { %v6800_v25 = vpop.eup %6183 }
 0x340   :  { %v1773_v28 = vmul.f32 1.442695, %v1751_v24  ;;  %v1805_v29 = vsel %vm1696_vm3, %v6800_v25, 0.0 }
 0x341   :  { %1806 = vadd.xlane.f32.xlu1 %v1805_v29 }
 0x342   :  { %6187 = vpow2.f32 %v1773_v28 }
 0x345   :  { %v1720_v39 = vpop.xlane.xlu0 %1719 }
 0x346   :  { %v1752_v30 = vsub.f32 %v6739_v61, %v1720_v39 }
 0x347   :  { %v6805_v31 = vpop.eup %6185 }
 0x348   :  { %v1775_v34 = vmul.f32 1.442695, %v1752_v30  ;;  %v1795_v35 = vpop.xlane.xlu1 %1794  ;;  %v1808_v37 = vsel %vm1696_vm3, %v6805_v31, 0.0 }
 0x349   :  { %6189 = vrcp.f32 %v1795_v35  ;;  %1809 = vadd.xlane.f32.xlu0 %v1808_v37 }
 0x34a   :  { %6191 = vpow2.f32 %v1775_v34 }
 0x34d   :  { %v1723_v53 = vpop.xlane.xlu1 %1722 }
 0x34e   :  { %v1753_v44 = vsub.f32 %v6747_v4, %v1723_v53 }
 0x34f   :  { %v6810_v47 = vpop.eup %6187 }
 0x350   :  { %v1777_v48 = vmul.f32 1.442695, %v1753_v44  ;;  %v1798_v49 = vpop.xlane.xlu0 %1797  ;;  %v1811_v61 = vsel %vm1696_vm3, %v6810_v47, 0.0 }
 0x351   :  { %6193 = vrcp.f32 %v1798_v49  ;;  %1812 = vadd.xlane.f32.xlu1 %v1811_v61 }
 0x352   :  { %6195 = vpow2.f32 %v1777_v48 }
 0x355   :  { %v1726_v50 = vpop.xlane.xlu0 %1725 }
 0x356   :  { %v6190_v54 = vpop.eup %6189  ;;  %v1754_v55 = vsub.f32 %v6755_v13, %v1726_v50 }
 0x357   :  { %v6815_v56 = vpop.eup %6191  ;;  %v1857_v57 = vmul.f32 %v6190_v54, %v6743_v0 }
 0x358   :  { %v1779_v59 = vmul.f32 1.442695, %v1754_v55  ;;  %v1814_v4 = vsel %vm1696_vm3, %v6815_v56, 0.0 }
 0x359   :  { %1815 = vadd.xlane.f32.xlu0 %v1814_v4  ;;  %v1873_v60 = vpack.c.bf16 %v1857_v57, %v1857_v57 }
 0x35a   :  { %6197 = vpow2.f32 %v1779_v59 }
 0x35b   :  { %5649 = vmatmul.mubr.msk.bf16.vlgmr.msra.gmra.mxu0 %vm1696_vm3, %v1873_v60 }
 0x35c   :  { %5659 = vmatpush3.bf16.msra.mxu0 %v1986_v62  ;;  %5660 = vmatprep.mubr.msk.bf16.mxu0 %vm6416_vm0, %v6415_v38 }
 0x35d   :  { %v1729_v13 = vpop.xlane.xlu1 %1728  ;;  %5670 = vmatprep.subr.bf16.mxu0 %v6415_v38 }
 0x35e   :  { %v6194_v0 = vpop.eup %6193  ;;  %v1755_v63 = vsub.f32 %v6759_v19, %v1729_v13 }
 0x35f   :  { %v6827_v1 = vpop.eup %6195  ;;  %v1858_v2 = vmul.f32 %v6194_v0, %v6751_v7 }
 0x360   :  { %v1781_v3 = vmul.f32 1.442695, %v1755_v63  ;;  %v1817_v5 = vsel %vm1696_vm3, %v6827_v1, 0.0 }
 0x361   :  { %1818 = vadd.xlane.f32.xlu1 %v1817_v5  ;;  %v1874_v6 = vpack.c.bf16 %v1858_v2, %v1858_v2 }
 0x362   :  { %6199 = vpow2.f32 %v1781_v3 }
 0x363   :  { %5655 = vmatmul.mubr.msk.bf16.vlgmr.msra.gmra.mxu1 %vm1696_vm3, %v1874_v6 }
 0x364   :  { %5665 = vmatpush3.bf16.msra.mxu1 %v2032_v10  ;;  %5666 = vmatprep.mubr.msk.bf16.mxu1 %vm6416_vm0, %v6415_v38 }
 0x365   :  { %v1732_v19 = vpop.xlane.xlu0 %1731  ;;  %5676 = vmatprep.subr.bf16.mxu1 %v6415_v38 }
 0x366   :  { %v1756_v7 = vsub.f32 %v6763_v26, %v1732_v19 }
 0x367   :  { %v6839_v11 = vpop.eup %6197 }
 0x368   :  { %v1783_v12 = vmul.f32 1.442695, %v1756_v7  ;;  %v1820_v15 = vsel %vm1696_vm3, %v6839_v11, 0.0 }
 0x369   :  { %1821 = vadd.xlane.f32.xlu0 %v1820_v15 }
 0x36a   :  { %6201 = vpow2.f32 %v1783_v12 }
 0x36d   :  { %v1735_v16 = vpop.xlane.xlu1 %1734 }
 0x36e   :  { %v1757_v18 = vsub.f32 %v6767_v33, %v1735_v16 }
 0x36f   :  { %v6844_v22 = vpop.eup %6199 }
 0x370   :  { %v1785_v23 = vmul.f32 1.442695, %v1757_v18  ;;  %v1823_v27 = vsel %vm1696_vm3, %v6844_v22, 0.0 }
 0x371   :  { %1824 = vadd.xlane.f32.xlu1 %v1823_v27 }
 0x372   :  { %6203 = vpow2.f32 %v1785_v23 }
 0x375   :  { %v1738_v26 = vpop.xlane.xlu0 %1737 }
 0x376   :  { %v1758_v32 = vsub.f32 %v6771_v46, %v1738_v26 }
 0x377   :  { %v6849_v24 = vpop.eup %6201 }
 0x378   :  { %v1787_v28 = vmul.f32 1.442695, %v1758_v32  ;;  %v1826_v29 = vsel %vm1696_vm3, %v6849_v24, 0.0 }
 0x379   :  { %1827 = vadd.xlane.f32.xlu0 %v1826_v29  ;;  %v951_v29 = vrot.slane %v6597_v17, 4 }
 0x37a   :  { %6205 = vpow2.f32 %v1787_v28 }
 0x37d   :  { %v1741_v46 = vpop.xlane.xlu1 %1740 }
 0x37e   :  { %v1759_v35 = vsub.f32 %v6775_v52, %v1741_v46 }
 0x37f   :  { %v6853_v33 = vpop.eup %6203 }
 0x380   :  { %v1829_v39 = vsel %vm1696_vm3, %v6853_v33, 0.0  ;;  %v1789_v37 = vmul.f32 1.442695, %v1759_v35 }
 0x381   :  { %1830 = vadd.xlane.f32.xlu1 %v1829_v39  ;;  %v6871_v50 = vpop.permute.xlu1 %943 }
 0x382   :  { %6207 = vpow2.f32 %v1789_v37  ;;  %v2078_v13 = vsel %vm1892_vm2, %v6871_v50, 0  ;;  %v2262_v37 = vsel %vm1892_vm2, %v951_v29, 0 }
 0x385   :  { %v1744_v53 = vpop.xlane.xlu0 %1743 }
 0x386   :  { %v1760_v44 = vsub.f32 %v6779_v58, %v1744_v53 }
 0x387   :  { %v6857_v30 = vpop.eup %6205 }
 0x388   :  { %v1832_v34 = vsel %vm1696_vm3, %v6857_v30, 0.0  ;;  %v1791_v48 = vmul.f32 1.442695, %v1760_v44  ;;  %v953_v44 = vrot.slane %v6733_v51, 4 }
 0x389   :  { %1833 = vadd.xlane.f32.xlu0 %v1832_v34  ;;  %v6877_v57 = vpop.permute.xlu0 %945 }
 0x38a   :  { %6209 = vpow2.f32 %v1791_v48  ;;  %v2124_v3 = vsel %vm1892_vm2, %v6877_v57, 0  ;;  %v2354_v51 = vsel %vm1892_vm2, %v953_v44, 0 }
 0x38f   :  { %v6867_v49 = vpop.eup %6207 }
 0x390   :  { %v1835_v61 = vsel %vm1696_vm3, %v6867_v49, 0.0 }
 0x392   :  { %947 = vrot.lane.b32.xlu1 %v6597_v17, %s6413_s20 }
 0x397   :  { %v6873_v54 = vpop.eup %6209 }
 0x398   :  { %v1838_v55 = vsel %vm1696_vm3, %v6873_v54, 0.0 }
 0x39f   :  { %949 = vrot.lane.b32.xlu0 %v6601_v21, %s6413_s20 }
 0x3b6   :  { %1836 = vadd.xlane.f32.xlu1 %v1835_v61  ;;  %v952_v61 = vrot.slane %v6601_v21, 4 }
 0x3ba   :  { %v1801_v52 = vpop.xlane.xlu1 %1800 }
 0x3bb   :  { %6211 = vrcp.f32 %v1801_v52 }
 0x3be   :  { %1839 = vadd.xlane.f32.xlu0 %v1838_v55 }
 0x3c2   :  { %v1804_v58 = vpop.xlane.xlu0 %1803 }
 0x3c3   :  { %6213 = vrcp.f32 %v1804_v58 }
 0x3c8   :  { %v6212_v59 = vpop.eup %6211 }
 0x3c9   :  { %v1859_v4 = vmul.f32 %v6212_v59, %v6790_v14 }
 0x3ca   :  { %v1807_v60 = vpop.xlane.xlu1 %1806 }
 0x3cb   :  { %6215 = vrcp.f32 %v1807_v60  ;;  %v1875_v62 = vpack.c.bf16 %v1859_v4, %v1859_v4 }
 0x3cd   :  { %5661 = vmatmul.mubr.msk.bf16.vlgmr.msra.gmra.mxu0 %vm1696_vm3, %v1875_v62  ;;  %v954_v62 = vrot.slane %v6727_v36, 4 }
 0x3ce   :  { %5671 = vmatpush3.bf16.msra.mxu0 %v2078_v13  ;;  %5672 = vmatprep.mubr.msk.bf16.mxu0 %vm6416_vm0, %v6415_v38  ;;  %v955_v13 = vrot.slane %v6871_v50, 4 }
 0x3cf   :  { %5682 = vmatprep.subr.bf16.mxu0 %v6415_v38 }
 0x3d0   :  { %v6214_v0 = vpop.eup %6213 }
 0x3d1   :  { %v1860_v63 = vmul.f32 %v6214_v0, %v6795_v20 }
 0x3d2   :  { %v1810_v2 = vpop.xlane.xlu0 %1809 }
 0x3d3   :  { %6217 = vrcp.f32 %v1810_v2  ;;  %v1876_v14 = vpack.c.bf16 %v1860_v63, %v1860_v63 }
 0x3d5   :  { %5667 = vmatmul.mubr.msk.bf16.vlgmr.msra.gmra.mxu1 %vm1696_vm3, %v1876_v14 }
 0x3d6   :  { %5677 = vmatpush3.bf16.msra.mxu1 %v2124_v3  ;;  %5678 = vmatprep.mubr.msk.bf16.mxu1 %vm6416_vm0, %v6415_v38 }
 0x3d7   :  { %5688 = vmatprep.subr.bf16.mxu1 %v6415_v38 }
 0x3d8   :  { %v6216_v5 = vpop.eup %6215 }
 0x3d9   :  { %v1861_v6 = vmul.f32 %v6216_v5, %v6800_v25 }
 0x3da   :  { %v1813_v12 = vpop.xlane.xlu1 %1812 }
 0x3db   :  { %v1877_v10 = vpack.c.bf16 %v1861_v6, %v1861_v6  ;;  %6219 = vrcp.f32 %v1813_v12 }
 0x3dd   :  { %5673 = vmatmul.mubr.msk.bf16.vlgmr.msra.gmra.mxu0 %vm1696_vm3, %v1877_v10 }
 0x3de   :  { %5684 = vmatprep.mubr.msk.bf16.mxu0 %vm6416_vm0, %v6415_v38 }
 0x3e0   :  { %v6218_v20 = vpop.eup %6217 }
 0x3e1   :  { %v1862_v19 = vmul.f32 %v6218_v20, %v6805_v31  ;;  %v956_v20 = vrot.slane %v6877_v57, 4 }
 0x3e2   :  { %v1816_v15 = vpop.xlane.xlu0 %1815 }
 0x3e3   :  { %v1878_v7 = vpack.c.bf16 %v1862_v19, %v1862_v19  ;;  %6221 = vrcp.f32 %v1816_v15 }
 0x3e5   :  { %5679 = vmatmul.mubr.msk.bf16.vlgmr.msra.gmra.mxu1 %vm1696_vm3, %v1878_v7 }
 0x3e6   :  { %5690 = vmatprep.mubr.msk.bf16.mxu1 %vm6416_vm0, %v6415_v38 }
 0x3e8   :  { %v6220_v23 = vpop.eup %6219 }
 0x3e9   :  { %v1863_v31 = vmul.f32 %v6220_v23, %v6810_v47 }
 0x3ea   :  { %v1819_v16 = vpop.xlane.xlu1 %1818 }
 0x3eb   :  { %6223 = vrcp.f32 %v1819_v16  ;;  %v1879_v34 = vpack.c.bf16 %v1863_v31, %v1863_v31 }
 0x3f0   :  { %v6222_v39 = vpop.eup %6221 }
 0x3f1   :  { %v1864_v17 = vmul.f32 %v6222_v39, %v6815_v56  ;;  %v2308_v56 = vsel %vm1892_vm2, %v952_v61, 0 }
 0x3f2   :  { %v1822_v18 = vpop.xlane.xlu0 %1821 }
 0x3f3   :  { %6225 = vrcp.f32 %v1822_v18  ;;  %v1880_v55 = vpack.c.bf16 %v1864_v17, %v1864_v17 }
 0x3f8   :  { %v6224_v46 = vpop.eup %6223 }
 0x3f9   :  { %v1865_v47 = vmul.f32 %v6224_v46, %v6827_v1 }
 0x3fa   :  { %v1825_v25 = vpop.xlane.xlu1 %1824 }
 0x3fb   :  { %6227 = vrcp.f32 %v1825_v25  ;;  %v1881_v58 = vpack.c.bf16 %v1865_v47, %v1865_v47 }
 0x400   :  { %v6226_v52 = vpop.eup %6225 }
 0x401   :  { %v1866_v1 = vmul.f32 %v6226_v52, %v6839_v11  ;;  %v2400_v11 = vsel %vm1892_vm2, %v954_v62, 0  ;;  %v5935_v52 = vld [vmem:[#allocation8 + $0x70] ss:$8 sps:$4 sm:$0xff]  }
 0x402   :  { %v1828_v26 = vpop.xlane.xlu0 %1827  ;;  %v5941_v62 = vld [vmem:[#allocation8 + $0x50] ss:$8 sps:$4 sm:$0xff]  }
 0x403   :  { %6229 = vrcp.f32 %v1828_v26  ;;  %v1882_v14 = vpack.c.bf16 %v1866_v1, %v1866_v1 }
 0x408   :  { %v6228_v59 = vpop.eup %6227 }
 0x409   :  { %v1867_v60 = vmul.f32 %v6228_v59, %v6844_v22  ;;  %v2446_v22 = vsel %vm1892_vm2, %v955_v13, 0 }
 0x40a   :  { %v1831_v27 = vpop.xlane.xlu1 %1830 }
 0x40b   :  { %6231 = vrcp.f32 %v1831_v27  ;;  %v1883_v3 = vpack.c.bf16 %v1867_v60, %v1867_v60 }
 0x40e   :  { %v6902_v32 = vpop.permute.xlu1 %947 }
 0x40f   :  { %v2170_v28 = vsel %vm1892_vm2, %v6902_v32, 0  ;;  %v957_v19 = vrot.slane %v6902_v32, 4 }
 0x410   :  { %5683 = vmatpush3.bf16.msra.mxu0 %v2170_v28  ;;  %v6230_v63 = vpop.eup %6229 }
 0x411   :  { %5694 = vmatprep.subr.bf16.mxu0 %v6415_v38  ;;  %v1868_v50 = vmul.f32 %v6230_v63, %v6849_v24  ;;  %v2492_v24 = vsel %vm1892_vm2, %v956_v20, 0 }
 0x412   :  { %v1834_v35 = vpop.xlane.xlu0 %1833 }
 0x413   :  { %5685 = vmatmul.mubr.msk.bf16.vlgmr.msra.gmra.mxu0 %vm1696_vm3, %v1879_v34  ;;  %6233 = vrcp.f32 %v1834_v35  ;;  %v1884_v15 = vpack.c.bf16 %v1868_v50, %v1868_v50 }
 0x414   :  { %5695 = vmatpush3.bf16.msra.mxu0 %v2262_v37  ;;  %5696 = vmatprep.mubr.msk.bf16.mxu0 %vm6416_vm0, %v6415_v38 }
 0x415   :  { %5706 = vmatprep.subr.bf16.mxu0 %v6415_v38 }
 0x416   :  { %v6915_v53 = vpop.permute.xlu0 %949 }
 0x417   :  { %v2216_v48 = vsel %vm1892_vm2, %v6915_v53, 0  ;;  %v958_v18 = vrot.slane %v6915_v53, 4 }
 0x418   :  { %5689 = vmatpush3.bf16.msra.mxu1 %v2216_v48  ;;  %v6232_v5 = vpop.eup %6231 }
 0x419   :  { %5700 = vmatprep.subr.bf16.mxu1 %v6415_v38  ;;  %v1869_v10 = vmul.f32 %v6232_v5, %v6853_v33  ;;  %v2538_v33 = vsel %vm1892_vm2, %v957_v19, 0  ;;  %v2584_v27 = vsel %vm1892_vm2, %v958_v18, 0 }
 0x41b   :  { %v6922_v4 = vpop.f32.mrf.mxu0  ;;  %5691 = vmatmul.mubr.msk.bf16.vlgmr.msra.gmra.mxu1 %vm1696_vm3, %v1880_v55  ;;  %5697 = vmatmul.mubr.msk.bf16.vlgmr.msra.gmra.mxu0 %vm1696_vm3, %v1881_v58  ;;  %v1885_v16 = vpack.c.bf16 %v1869_v10, %v1869_v10  ;;  %v5937_v55 = vld [vmem:[#allocation8 + $0x74] ss:$8 sps:$4 sm:$0xff]  }
 0x41c   :  { %5707 = vmatpush3.bf16.msra.mxu0 %v2354_v51  ;;  %5701 = vmatpush3.bf16.msra.mxu1 %v2308_v56  ;;  %v5938_v51 = vld [vmem:[#allocation8 + $0x60] ss:$8 sps:$4 sm:$0xff]   ;;  %v5943_v56 = vld [vmem:[#allocation8 + $0x54] ss:$8 sps:$4 sm:$0xff]  }
 0x41d   :  { %v5650_v21 = vpop.f32.mrf.mxu0  ;;  %5702 = vmatprep.mubr.msk.bf16.mxu1 %vm6416_vm0, %v6415_v38  ;;  %5708 = vmatprep.mubr.msk.bf16.mxu0 %vm6416_vm0, %v6415_v38 }
 0x41e   :  { %5712 = vmatprep.subr.bf16.mxu1 %v6415_v38  ;;  %5718 = vmatprep.subr.bf16.mxu0 %v6415_v38 }
 0x41f   :  { %v1933_v0 = vpop.f32.mrf.mxu0 }
 0x420   :  { %v6234_v25 = vpop.eup %6233 }
 0x421   :  { %v5651_v2 = vpop.f32.mrf.mxu0  ;;  %v1870_v57 = vmul.f32 %v6234_v25, %v6857_v30  ;;  %v5949_v25 = vld [vmem:[#allocation8 + $0x34] ss:$8 sps:$4 sm:$0xff]  }
 0x423   :  { %v6938_v6 = vpop.f32.mrf.mxu1  ;;  %5703 = vmatmul.mubr.msk.bf16.vlgmr.msra.gmra.mxu1 %vm1696_vm3, %v1882_v14  ;;  %5709 = vmatmul.mubr.msk.bf16.vlgmr.msra.gmra.mxu0 %vm1696_vm3, %v1883_v3  ;;  %v1886_v23 = vpack.c.bf16 %v1870_v57, %v1870_v57  ;;  %v5947_v57 = vld [vmem:[#allocation8 + $0x30] ss:$8 sps:$4 sm:$0xff]  }
 0x424   :  { %5713 = vmatpush3.bf16.msra.mxu1 %v2400_v11  ;;  %5719 = vmatpush3.bf16.msra.mxu0 %v2446_v22 }
 0x425   :  { %v5656_v36 = vpop.f32.mrf.mxu1  ;;  %5714 = vmatprep.mubr.msk.bf16.mxu1 %vm6416_vm0, %v6415_v38  ;;  %5720 = vmatprep.mubr.msk.bf16.mxu0 %vm6416_vm0, %v6415_v38 }
 0x426   :  { %5724 = vmatprep.subr.bf16.mxu1 %v6415_v38  ;;  %5730 = vmatprep.subr.bf16.mxu0 %v6415_v38 }
 0x427   :  { %v1979_v7 = vpop.f32.mrf.mxu1 }
 0x428   :  { %v5946_v7 = vld [vmem:[#allocation8 + $0x44] ss:$8 sps:$4 sm:$0xff]  }
 0x429   :  { %v5657_v12 = vpop.f32.mrf.mxu1 }
 0x42b   :  { %5715 = vmatmul.mubr.msk.bf16.vlgmr.msra.gmra.mxu1 %vm1696_vm3, %v1884_v15  ;;  %5721 = vmatmul.mubr.msk.bf16.vlgmr.msra.gmra.mxu0 %vm1696_vm3, %v1885_v16  ;;  %v5944_v16 = vld [vmem:[#allocation8 + $0x40] ss:$8 sps:$4 sm:$0xff]  }
 0x42c   :  { %5725 = vmatpush3.bf16.msra.mxu1 %v2492_v24  ;;  %5731 = vmatpush3.bf16.msra.mxu0 %v2538_v33 }
 0x42d   :  { %5726 = vmatprep.mubr.msk.bf16.mxu1 %vm6416_vm0, %v6415_v38  ;;  %5736 = vmatprep.subr.bf16.mxu1 %v6415_v38 }
 0x42e   :  { %5732 = vmatprep.mubr.msk.bf16.mxu0 %vm6416_vm0, %v6415_v38  ;;  %2894 = vmatprep.subr.bf16.mxu0 %v5937_v55  ;;  %v5959_v55 = vld [vmem:[#allocation8 + $0xf0] ss:$8 sps:$4 sm:$0xff]  }
 0x433   :  { %5727 = vmatmul.mubr.msk.bf16.vlgmr.msra.gmra.mxu1 %vm1696_vm3, %v1886_v23 }
 0x434   :  { %5737 = vmatpush3.bf16.msra.mxu1 %v2584_v27  ;;  %5738 = vmatprep.mubr.msk.bf16.mxu1 %vm6416_vm0, %v6415_v38 }
 0x43f   :  { %v1837_v31 = vpop.xlane.xlu1 %1836 }
 0x440   :  { %6235 = vrcp.f32 %v1837_v31 }
 0x447   :  { %v1840_v26 = vpop.xlane.xlu0 %1839 }
 0x448   :  { %6237 = vrcp.f32 %v1840_v26  ;;  %v5952_v26 = vld [vmem:[#allocation8 + $0x24] ss:$8 sps:$4 sm:$0xff]  }
 0x44d   :  { %v6236_v32 = vpop.eup %6235 }
 0x44e   :  { %v1871_v30 = vmul.f32 %v6236_v32, %v6867_v49 }
 0x450   :  { %v1887_v28 = vpack.c.bf16 %v1871_v30, %v1871_v30 }
 0x452   :  { %5733 = vmatmul.mubr.msk.bf16.vlgmr.msra.gmra.mxu0 %vm1696_vm3, %v1887_v28  ;;  %v5950_v28 = vld [vmem:[#allocation8 + $0x20] ss:$8 sps:$4 sm:$0xff]  }
 0x453   :  { %2895 = vmatpush1.bf16.msra.mxu0 %v5935_v52 }
 0x455   :  { %v6238_v29 = vpop.eup %6237 }
 0x456   :  { %v1872_v39 = vmul.f32 %v6238_v29, %v6873_v54  ;;  %v5940_v54 = vld [vmem:[#allocation8 + $0x64] ss:$8 sps:$4 sm:$0xff]  }
 0x457   :  { %2896 = vmatprep.subr.bf16.mxu0 %v5940_v54 }
 0x458   :  { %v1888_v34 = vpack.c.bf16 %v1872_v39, %v1872_v39  ;;  %2897 = vmatpush1.bf16.msra.mxu0 %v5938_v51 }
 0x459   :  { %2898 = vmatprep.subr.bf16.mxu0 %v5943_v56  ;;  %v5962_v56 = vld [vmem:[#allocation8 + $0xe0] ss:$8 sps:$4 sm:$0xff]  }
 0x45a   :  { %5739 = vmatmul.mubr.msk.bf16.vlgmr.msra.gmra.mxu1 %vm1696_vm3, %v1888_v34 }
 0x45c   :  { %2899 = vmatpush1.bf16.msra.mxu0 %v5941_v62  ;;  %v5968_v62 = vld [vmem:[#allocation8 + $0xc0] ss:$8 sps:$4 sm:$0xff]  }
 0x45d   :  { %2900 = vmatprep.subr.bf16.mxu0 %v5946_v7 }
 0x460   :  { %2901 = vmatpush1.bf16.msra.mxu0 %v5944_v16 }
 0x461   :  { %2902 = vmatprep.subr.bf16.mxu0 %v5949_v25 }
 0x464   :  { %2903 = vmatpush1.bf16.msra.mxu0 %v5947_v57 }
 0x465   :  { %2904 = vmatprep.subr.bf16.mxu0 %v5952_v26 }
 0x468   :  { %2905 = vmatpush1.bf16.msra.mxu0 %v5950_v28 }
 0x48d   :  { %v2022_v46 = vpop.f32.mrf.mxu0 }
 0x48f   :  { %v5662_v35 = vpop.f32.mrf.mxu0 }
 0x491   :  { %v2025_v37 = vpop.f32.mrf.mxu0 }
 0x493   :  { %v5663_v38 = vpop.f32.mrf.mxu0 }
 0x494   :  { %v5953_v38 = vld [vmem:[#allocation8 + $0x10] ss:$8 sps:$4 sm:$0xff]  }
 0x495   :  { %v2068_v17 = vpop.f32.mrf.mxu1 }
 0x496   :  { %v5761_v47 = vpack.i.bf16 %v2068_v17, %v2022_v46  ;;  %v5955_v46 = vld [vmem:[#allocation8 + $0x14] ss:$8 sps:$4 sm:$0xff]   ;;  %v5958_v17 = vld [vmem:[#allocation8 + $0x4] ss:$8 sps:$4 sm:$0xff]  }
 0x497   :  { %v5668_v53 = vpop.f32.mrf.mxu1  ;;  %2906 = vmatprep.subr.bf16.mxu0 %v5955_v46 }
 0x498   :  { %5762 = vrot.lane.b32.xlu0 %v5761_v47, %s6413_s20  ;;  %2907 = vmatpush1.bf16.msra.mxu0 %v5953_v38 }
 0x499   :  { %v2071_v44 = vpop.f32.mrf.mxu1  ;;  %2908 = vmatprep.subr.bf16.mxu0 %v5958_v17 }
 0x49a   :  { %v5956_v44 = vld [vmem:[#allocation8] ss:$8 sps:$4 sm:$0xff]  }
 0x49b   :  { %v5669_v49 = vpop.f32.mrf.mxu1 }
 0x49c   :  { %v5961_v49 = vld [vmem:[#allocation8 + $0xf4] ss:$8 sps:$4 sm:$0xff]   ;;  %2909 = vmatpush1.bf16.msra.mxu0 %v5956_v44 }
 0x49d   :  { %v2114_v48 = vpop.f32.mrf.mxu0  ;;  %2910 = vmatprep.subr.bf16.mxu0 %v5961_v49 }
 0x49f   :  { %v5674_v61 = vpop.f32.mrf.mxu0 }
 0x4a0   :  { %2911 = vmatpush2.bf16.msra.mxu0 %v5959_v55 }
 0x4a1   :  { %v2117_v58 = vpop.f32.mrf.mxu0 }
 0x4a2   :  { %v5964_v58 = vld [vmem:[#allocation8 + $0xe4] ss:$8 sps:$4 sm:$0xff]  }
 0x4a3   :  { %v5675_v59 = vpop.f32.mrf.mxu0  ;;  %2912 = vmatprep.subr.bf16.mxu0 %v5964_v58 }
 0x4a4   :  { %2913 = vmatpush2.bf16.msra.mxu0 %v5962_v56 }
 0x4a5   :  { %v2160_v21 = vpop.f32.mrf.mxu1 }
 0x4a6   :  { %v5766_v1 = vpack.i.bf16 %v2160_v21, %v2114_v48  ;;  %v5967_v21 = vld [vmem:[#allocation8 + $0xd4] ss:$8 sps:$4 sm:$0xff]  }
 0x4a7   :  { %v5680_v60 = vpop.f32.mrf.mxu1  ;;  %2914 = vmatprep.subr.bf16.mxu0 %v5967_v21 }
 0x4a8   :  { %5767 = vrot.lane.b32.xlu1 %v5766_v1, %s6418_s9  ;;  %v5965_v1 = vld [vmem:[#allocation8 + $0xd0] ss:$8 sps:$4 sm:$0xff]   ;;  %v5970_v60 = vld [vmem:[#allocation8 + $0xc4] ss:$8 sps:$4 sm:$0xff]  }
 0x4a9   :  { %v2163_v13 = vpop.f32.mrf.mxu1  ;;  %2915 = vmatpush2.bf16.msra.mxu0 %v5965_v1 }
 0x4aa   :  { %2916 = vmatprep.subr.bf16.mxu0 %v5970_v60  ;;  %v5973_v13 = vld [vmem:[#allocation8 + $0xb4] ss:$8 sps:$4 sm:$0xff]  }
 0x4ab   :  { %v5681_v0 = vpop.f32.mrf.mxu1 }
 0x4ac   :  { %v5971_v0 = vld [vmem:[#allocation8 + $0xb0] ss:$8 sps:$4 sm:$0xff]  }
 0x4ad   :  { %2917 = vmatpush2.bf16.msra.mxu0 %v5968_v62 }
 0x4ae   :  { %2918 = vmatprep.subr.bf16.mxu0 %v5973_v13  ;;  %v6247_v13 = vld [vmem:[#allocation2] sm:$0xff] }
 0x4b1   :  { %2919 = vmatpush2.bf16.msra.mxu0 %v5971_v0 }
 0x4d3   :  { %v6975_v63 = vpop.f32.mrf.mxu0 }
 0x4d5   :  { %v5686_v2 = vpop.f32.mrf.mxu0 }
 0x4d6   :  { %v5976_v2 = vld [vmem:[#allocation8 + $0xa4] ss:$8 sps:$4 sm:$0xff]  }
 0x4d7   :  { %v2209_v14 = vpop.f32.mrf.mxu0  ;;  %2920 = vmatprep.subr.bf16.mxu0 %v5976_v2  ;;  %v6248_v2 = vld [vmem:[#allocation2 + $0x8] sm:$0xff] }
 0x4d8   :  { %v5979_v14 = vld [vmem:[#allocation8 + $0x94] ss:$8 sps:$4 sm:$0xff]  }
 0x4d9   :  { %v5687_v3 = vpop.f32.mrf.mxu0 }
 0x4da   :  { %v5977_v3 = vld [vmem:[#allocation8 + $0x90] ss:$8 sps:$4 sm:$0xff]  }
 0x4db   :  { %v2252_v5 = vpop.f32.mrf.mxu1  ;;  %v6977_v11 = vpop.f32.mrf.mxu0 }
 0x4dc   :  { %v5786_v59 = vpack.i.bf16 %v2252_v5, %v6975_v63  ;;  %v5974_v63 = vld [vmem:[#allocation8 + $0xa0] ss:$8 sps:$4 sm:$0xff]   ;;  %v5982_v5 = vld [vmem:[#allocation8 + $0x84] ss:$8 sps:$4 sm:$0xff]  }
 0x4dd   :  { %v5692_v22 = vpop.f32.mrf.mxu1  ;;  %v5698_v36 = vpop.f32.mrf.mxu0  ;;  %2921 = vmatpush2.bf16.msra.mxu0 %v5974_v63 }
 0x4de   :  { %2922 = vmatprep.subr.bf16.mxu0 %v5979_v14  ;;  %v5980_v22 = vld [vmem:[#allocation8 + $0x80] ss:$8 sps:$4 sm:$0xff]  }
 0x4df   :  { %v2255_v50 = vpop.f32.mrf.mxu1  ;;  %v2301_v10 = vpop.f32.mrf.mxu0 }
 0x4e1   :  { %v5693_v20 = vpop.f32.mrf.mxu1  ;;  %v5699_v19 = vpop.f32.mrf.mxu0  ;;  %2923 = vmatpush2.bf16.msra.mxu0 %v5977_v3 }
 0x4e2   :  { %2924 = vmatprep.subr.bf16.mxu0 %v5982_v5 }
 0x4e3   :  { %v6979_v12 = vpop.f32.mrf.mxu1  ;;  %v2390_v15 = vpop.f32.mrf.mxu0 }
 0x4e5   :  { %v5704_v24 = vpop.f32.mrf.mxu1  ;;  %v5710_v33 = vpop.f32.mrf.mxu0  ;;  %2925 = vmatpush2.bf16.msra.mxu0 %v5980_v22 }
 0x4e7   :  { %v2347_v18 = vpop.f32.mrf.mxu1  ;;  %v2393_v23 = vpop.f32.mrf.mxu0 }
 0x4e9   :  { %v5705_v27 = vpop.f32.mrf.mxu1  ;;  %v5711_v31 = vpop.f32.mrf.mxu0 }
 0x4eb   :  { %v2436_v32 = vpop.f32.mrf.mxu1  ;;  %v2482_v30 = vpop.f32.mrf.mxu0 }
 0x4ec   :  { %v5771_v29 = vpack.i.bf16 %v2436_v32, %v2390_v15 }
 0x4ed   :  { %v5716_v39 = vpop.f32.mrf.mxu1  ;;  %v5722_v34 = vpop.f32.mrf.mxu0 }
 0x4ee   :  { %5772 = vrot.lane.b32.xlu1 %v5771_v29, %s6413_s20 }
 0x4ef   :  { %v2439_v35 = vpop.f32.mrf.mxu1  ;;  %v2485_v37 = vpop.f32.mrf.mxu0 }
 0x4f1   :  { %v5717_v47 = vpop.f32.mrf.mxu1  ;;  %v5723_v53 = vpop.f32.mrf.mxu0 }
 0x4f3   :  { %v2528_v48 = vpop.f32.mrf.mxu1 }
 0x4f4   :  { %v5776_v61 = vpack.i.bf16 %v2528_v48, %v2482_v30 }
 0x4f5   :  { %v5728_v52 = vpop.f32.mrf.mxu1 }
 0x4f6   :  { %5777 = vrot.lane.b32.xlu1 %v5776_v61, %s6418_s9 }
 0x4f7   :  { %v2531_v54 = vpop.f32.mrf.mxu1 }
 0x4f9   :  { %v5729_v51 = vpop.f32.mrf.mxu1 }
 0x4fa   :  { %5787 = vrot.lane.b32.xlu1 %v5786_v59, %s6417_s7 }
 0x50a   :  { %v5763_v18 = vpop.permute.xlu0 %5762 }
 0x50b   :  { %v5765_v23 = vunpack.i.h.bf16 %v5763_v18  ;;  %v5764_v27 = vunpack.i.l.bf16 %v5763_v18  ;;  %v3060_v18 = vld [vmem:[#allocation10 + $0x1a0] sm:$0xff] }
 0x50d   :  { %v2675_v35 = vsel %vm959_vm1, %v6938_v6, %v5765_v23  ;;  %v2674_v37 = vsel %vm959_vm1, %v6922_v4, %v5764_v27 }
 0x512   :  { %v2574_v36 = vpop.f32.mrf.mxu0 }
 0x514   :  { %v5734_v50 = vpop.f32.mrf.mxu0 }
 0x516   :  { %v2577_v10 = vpop.f32.mrf.mxu0 }
 0x517   :  { %v6250_v10 = vld [vmem:[#allocation2 + $0x18] sm:$0xff] }
 0x518   :  { %v5735_v20 = vpop.f32.mrf.mxu0 }
 0x51a   :  { %v2620_v19 = vpop.f32.mrf.mxu1  ;;  %v5768_v24 = vpop.permute.xlu1 %5767 }
 0x51b   :  { %v5781_v7 = vpack.i.bf16 %v2620_v19, %v2574_v36  ;;  %v5770_v26 = vunpack.i.h.bf16 %v5768_v24  ;;  %v5769_v32 = vunpack.i.l.bf16 %v5768_v24  ;;  %v6249_v36 = vld [vmem:[#allocation2 + $0x10] sm:$0xff] }
 0x51c   :  { %v5740_v15 = vpop.f32.mrf.mxu1 }
 0x51d   :  { %5782 = vrot.lane.b32.xlu0 %v5781_v7, %s6417_s7  ;;  %v2678_v38 = vsel %vm2676_vm4, %v2675_v35, %v5770_v26  ;;  %v2677_v17 = vsel %vm2676_vm4, %v2674_v37, %v5769_v32  ;;  %v3064_v7 = vld [vmem:[#allocation10 + $0x1c0] sm:$0xff]  ;;  %v3057_v26 = vld [vmem:[#allocation10 + $0x188] sm:$0xff] }
 0x51e   :  { %v2623_v16 = vpop.f32.mrf.mxu1  ;;  %v3068_v15 = vld [vmem:[#allocation10 + $0x1e0] sm:$0xff]  ;;  %v3061_v32 = vld [vmem:[#allocation10 + $0x1a8] sm:$0xff] }
 0x51f   :  { %v3065_v16 = vld [vmem:[#allocation10 + $0x1c8] sm:$0xff]  ;;  %v5281_v24 = vcombine.high %v3064_v7, %v3068_v15  ;;  %v5274_v35 = vcombine.low %v3057_v26, %v3061_v32 }
 0x520   :  { %v5741_v25 = vpop.f32.mrf.mxu1 }
 0x521   :  { %v5280_v25 = vcombine.low %v3064_v7, %v3068_v15  ;;  %3818 = vmatprep.subr.bf16.mxu1 %v5281_v24  ;;  %v3008_v15 = vld [vmem:[#allocation10] sm:$0xff]  ;;  %v3013_v24 = vld [vmem:[#allocation10 + $0x28] sm:$0xff] }
 0x523   :  { %3819 = vmatpush1.bf16.msra.mxu1 %v5280_v25  ;;  %v3009_v25 = vld [vmem:[#allocation10 + $0x8] sm:$0xff] }
 0x560   :  { %v5773_v33 = vpop.permute.xlu1 %5772 }
 0x561   :  { %v5775_v30 = vunpack.i.h.bf16 %v5773_v33  ;;  %v5774_v28 = vunpack.i.l.bf16 %v5773_v33  ;;  %v3069_v33 = vld [vmem:[#allocation10 + $0x1e8] sm:$0xff] }
 0x562   :  { %v5282_v23 = vcombine.low %v3065_v16, %v3069_v33  ;;  %v5283_v27 = vcombine.high %v3065_v16, %v3069_v33  ;;  %v3012_v16 = vld [vmem:[#allocation10 + $0x20] sm:$0xff] }
 0x563   :  { %v2683_v53 = vsel %vm959_vm1, %v6979_v12, %v5775_v30  ;;  %v2682_v44 = vsel %vm959_vm1, %v6977_v11, %v5774_v28  ;;  %v2722_v12 = vld [vmem:[%s7121_s4] sm:$0x3]  ;;  %v3048_v30 = vld [vmem:[#allocation10 + $0x140] sm:$0xff]  ;;  %v5275_v28 = vcombine.high %v3057_v26, %v3061_v32  ;;  %v3129_v26 = vld [vmem:[#allocation10 + $0x3c8] sm:$0xff] }
 0x564   :  { %v2727_v11 = vrot.slane %v2722_v12, %v6534_v43  ;;  %v2731_v51 = vrot.slane %v2722_v12, %v6537_v45  ;;  %3861 = vmatprep.subr.bf16.mxu0 %v5283_v27  ;;  %v3128_v27 = vld [vmem:[#allocation10 + $0x3c0] sm:$0xff]  ;;  %v3133_v32 = vld [vmem:[#allocation10 + $0x3e8] sm:$0xff] }
 0x568   :  { %v5778_v57 = vpop.permute.xlu1 %5777 }
 0x569   :  { %v5780_v29 = vunpack.i.h.bf16 %v5778_v57  ;;  %v5779_v39 = vunpack.i.l.bf16 %v5778_v57  ;;  %v3056_v57 = vld [vmem:[#allocation10 + $0x180] sm:$0xff] }
 0x56b   :  { %v2685_v61 = vsel %vm2676_vm4, %v2683_v53, %v5780_v29  ;;  %v2684_v6 = vsel %vm2676_vm4, %v2682_v44, %v5779_v39  ;;  %v3052_v29 = vld [vmem:[#allocation10 + $0x160] sm:$0xff]  ;;  %v3049_v39 = vld [vmem:[#allocation10 + $0x148] sm:$0xff] }
 0x56c   :  { %v5788_v31 = vpop.permute.xlu1 %5787  ;;  %v5265_v37 = vcombine.high %v3048_v30, %v3052_v29  ;;  %v3041_v53 = vld [vmem:[#allocation10 + $0x108] sm:$0xff] }
 0x56d   :  { %v5790_v34 = vunpack.i.h.bf16 %v5788_v31  ;;  %v5789_v46 = vunpack.i.l.bf16 %v5788_v31  ;;  %v5273_v31 = vcombine.high %v3056_v57, %v3060_v18  ;;  %v3045_v44 = vld [vmem:[#allocation10 + $0x128] sm:$0xff] }
 0x56f   :  { %v2681_v52 = vsel %vm2679_vm5, %v2678_v38, %v5790_v34  ;;  %v2680_v4 = vsel %vm2679_vm5, %v2677_v17, %v5789_v46  ;;  %v3053_v34 = vld [vmem:[#allocation10 + $0x168] sm:$0xff]  ;;  %v5272_v46 = vcombine.low %v3056_v57, %v3060_v18  ;;  %3820 = vmatprep.subr.bf16.mxu1 %v5273_v31  ;;  %v3040_v17 = vld [vmem:[#allocation10 + $0x100] sm:$0xff]  ;;  %v5225_v18 = vcombine.high %v3008_v15, %v3012_v16 }
 0x570   :  { %v2688_v59 = vpack.c.bf16 %v2681_v52, %v2680_v4  ;;  %v5267_v38 = vcombine.high %v3049_v39, %v3053_v34  ;;  %v3032_v52 = vld [vmem:[#allocation10 + $0xc0] sm:$0xff] }
 0x571   :  { %3821 = vmatpush1.bf16.msra.mxu1 %v5272_v46  ;;  %v3036_v4 = vld [vmem:[#allocation10 + $0xe0] sm:$0xff]  ;;  %v5346_v46 = vcombine.low %v3129_v26, %v3133_v32 }
 0x572   :  { %3822 = vmatprep.subr.bf16.mxu1 %v5265_v37  ;;  %v5249_v12 = vcombine.high %v3032_v52, %v3036_v4  ;;  %v3132_v31 = vld [vmem:[#allocation10 + $0x3e0] sm:$0xff] }
 0x58f   :  { %v5783_v47 = vpop.permute.xlu0 %5782 }
 0x590   :  { %v5785_v49 = vunpack.i.h.bf16 %v5783_v47  ;;  %v5784_v48 = vunpack.i.l.bf16 %v5783_v47  ;;  %v3044_v47 = vld [vmem:[#allocation10 + $0x120] sm:$0xff] }
 0x592   :  { %v2686_v55 = vsel %vm2679_vm5, %v2684_v6, %v5784_v48  ;;  %v2687_v58 = vsel %vm2679_vm5, %v2685_v61, %v5785_v49  ;;  %v5264_v49 = vcombine.low %v3048_v30, %v3052_v29  ;;  %v5266_v48 = vcombine.low %v3049_v39, %v3053_v34 }
 0x593   :  { %v2689_v54 = vpack.c.bf16 %v2687_v58, %v2686_v55  ;;  %v5257_v61 = vcombine.high %v3040_v17, %v3044_v47  ;;  %v5259_v6 = vcombine.high %v3041_v53, %v3045_v44  ;;  %v3033_v55 = vld [vmem:[#allocation10 + $0xc8] sm:$0xff]  ;;  %v5224_v30 = vcombine.low %v3008_v15, %v3012_v16 }
 0x594   :  { %v3037_v58 = vld [vmem:[#allocation10 + $0xe8] sm:$0xff]  ;;  %3823 = vmatpush1.bf16.msra.mxu1 %v5264_v49  ;;  %v5345_v29 = vcombine.high %v3128_v27, %v3132_v31  ;;  %v5347_v39 = vcombine.high %v3129_v26, %v3133_v32  ;;  %v5344_v34 = vcombine.low %v3128_v27, %v3132_v31 }
 0x595   :  { %2926 = vmatprep.mubr.bf16.mxu0 %v2689_v54  ;;  %v5256_v54 = vcombine.low %v3040_v17, %v3044_v47  ;;  %3824 = vmatprep.subr.bf16.mxu1 %v5257_v61  ;;  %v3093_v27 = vld [vmem:[#allocation10 + $0x2a8] sm:$0xff] }
 0x596   :  { %2927 = vmatmul.mubr.bf16.vlgmr.msra.gmra.mxu0 %v2688_v59  ;;  %v5258_v59 = vcombine.low %v3041_v53, %v3045_v44 }
 0x597   :  { %3862 = vmatpush1.bf16.msra.mxu0 %v5282_v23  ;;  %v5227_v23 = vcombine.high %v3009_v25, %v3013_v24 }
 0x598   :  { %3863 = vmatprep.subr.bf16.mxu0 %v5275_v28  ;;  %3825 = vmatpush1.bf16.msra.mxu1 %v5256_v54  ;;  %v5226_v28 = vcombine.low %v3009_v25, %v3013_v24  ;;  %v3097_v25 = vld [vmem:[#allocation10 + $0x2c8] sm:$0xff] }
 0x599   :  { %3826 = vmatprep.subr.bf16.mxu1 %v5249_v12  ;;  %v3101_v24 = vld [vmem:[#allocation10 + $0x2e8] sm:$0xff] }
 0x59a   :  { %v5314_v26 = vcombine.low %v3097_v25, %v3101_v24 }
 0x59b   :  { %3864 = vmatpush1.bf16.msra.mxu0 %v5274_v35 }
 0x59c   :  { %3865 = vmatprep.subr.bf16.mxu0 %v5267_v38 }
 0x59f   :  { %3866 = vmatpush1.bf16.msra.mxu0 %v5266_v48 }
 0x5a0   :  { %3867 = vmatprep.subr.bf16.mxu0 %v5259_v6 }
 0x5a3   :  { %3868 = vmatpush1.bf16.msra.mxu0 %v5258_v59  ;;  %v3125_v59 = vld [vmem:[#allocation10 + $0x3a8] sm:$0xff] }
 0x656   :  { %v2928_v56 = vpop.f32.mrf.mxu0 }
 0x657   :  { %v2929_v21 = vadd.f32 %v2928_v56, %v2727_v11  ;;  %v3028_v56 = vld [vmem:[#allocation10 + $0xa0] sm:$0xff] }
 0x658   :  { %v2930_v1 = vpop.f32.mrf.mxu0 }
 0x659   :  { %v2931_v60 = vadd.f32 %v2930_v1, %v2731_v51  ;;  %v7003_v0 = vadd.f32 %v6247_v13, %v2929_v21  ;;  %v3025_v21 = vld [vmem:[#allocation10 + $0x88] sm:$0xff] }
 0x65a   :  { %v2932_v62 = vpop.f32.mrf.mxu0  ;;  %v3029_v1 = vld [vmem:[#allocation10 + $0xa8] sm:$0xff] }
 0x65b   :  { %v7005_v63 = vadd.f32 %v6248_v2, %v2931_v60  ;;  %v2933_v14 = vadd.f32 %v2932_v62, %v2727_v11  ;;  %v5251_v11 = vcombine.high %v3033_v55, %v3037_v58  ;;  %v5248_v60 = vcombine.low %v3032_v52, %v3036_v4  ;;  %v3120_v4 = vld [vmem:[#allocation10 + $0x380] sm:$0xff] }
 0x65c   :  { %v2934_v3 = vpop.f32.mrf.mxu0  ;;  %v5250_v62 = vcombine.low %v3033_v55, %v3037_v58  ;;  %v5243_v2 = vcombine.high %v3025_v21, %v3029_v1  ;;  %v3124_v55 = vld [vmem:[#allocation10 + $0x3a0] sm:$0xff]  ;;  %v3121_v58 = vld [vmem:[#allocation10 + $0x388] sm:$0xff] }
 0x65d   :  { %v2935_v5 = vadd.f32 %v2934_v3, %v2731_v51  ;;  %v2943_v22 = vadd.f32 %v7005_v63, %v7003_v0  ;;  %v7009_v50 = vadd.f32 %v6249_v36, %v2933_v14  ;;  %v3024_v51 = vld [vmem:[#allocation10 + $0x80] sm:$0xff]  ;;  %3869 = vmatprep.subr.bf16.mxu0 %v5251_v11  ;;  %3827 = vmatpush1.bf16.msra.mxu1 %v5248_v60 }
 0x65e   :  { %v5241_v13 = vcombine.high %v3024_v51, %v3028_v56  ;;  %v3016_v14 = vld [vmem:[#allocation10 + $0x40] sm:$0xff]  ;;  %v5240_v36 = vcombine.low %v3024_v51, %v3028_v56  ;;  %3870 = vmatpush1.bf16.msra.mxu0 %v5250_v62  ;;  %v5337_v54 = vcombine.high %v3120_v4, %v3124_v55  ;;  %v5338_v12 = vcombine.low %v3121_v58, %v3125_v59  ;;  %v3113_v56 = vld [vmem:[#allocation10 + $0x348] sm:$0xff] }
 0x65f   :  { %v7011_v20 = vadd.f32 %v6250_v10, %v2935_v5  ;;  %2944 = vadd.xlane.f32.xlu0 %v2943_v22  ;;  %v3020_v3 = vld [vmem:[#allocation10 + $0x60] sm:$0xff]  ;;  %v3017_v5 = vld [vmem:[#allocation10 + $0x48] sm:$0xff]  ;;  %v5242_v10 = vcombine.low %v3025_v21, %v3029_v1  ;;  %3871 = vmatprep.subr.bf16.mxu0 %v5243_v2  ;;  %v5339_v11 = vcombine.high %v3121_v58, %v3125_v59  ;;  %v3070_v59 = vld [vmem:[#allocation10 + $0x1f0] sm:$0xff] }
 0x660   :  { %v3021_v22 = vld [vmem:[#allocation10 + $0x68] sm:$0xff]  ;;  %3828 = vmatprep.subr.bf16.mxu1 %v5241_v13  ;;  %v5232_v33 = vcombine.low %v3016_v14, %v3020_v3  ;;  %v3116_v51 = vld [vmem:[#allocation10 + $0x360] sm:$0xff] }
 0x661   :  { %v2946_v19 = vadd.f32 %v7011_v20, %v7009_v50  ;;  %v5235_v7 = vcombine.high %v3017_v5, %v3021_v22  ;;  %3829 = vmatpush1.bf16.msra.mxu1 %v5240_v36  ;;  %v5234_v57 = vcombine.low %v3017_v5, %v3021_v22  ;;  %v3117_v1 = vld [vmem:[#allocation10 + $0x368] sm:$0xff]  ;;  %v3104_v2 = vld [vmem:[#allocation10 + $0x300] sm:$0xff] }
 0x662   :  { %3872 = vmatpush1.bf16.msra.mxu0 %v5242_v10  ;;  %v5330_v62 = vcombine.low %v3113_v56, %v3117_v1  ;;  %v5331_v13 = vcombine.high %v3113_v56, %v3117_v1  ;;  %v3109_v36 = vld [vmem:[#allocation10 + $0x328] sm:$0xff]  ;;  %v3096_v10 = vld [vmem:[#allocation10 + $0x2c0] sm:$0xff] }
 0x663   :  { %2947 = vadd.xlane.f32.xlu1 %v2946_v19  ;;  %v5233_v19 = vcombine.high %v3016_v14, %v3020_v3  ;;  %3873 = vmatprep.subr.bf16.mxu0 %v5235_v7  ;;  %v3108_v14 = vld [vmem:[#allocation10 + $0x320] sm:$0xff]  ;;  %v3105_v3 = vld [vmem:[#allocation10 + $0x308] sm:$0xff] }
 0x664   :  { %v5320_v5 = vcombine.low %v3104_v2, %v3108_v14  ;;  %v5321_v22 = vcombine.high %v3104_v2, %v3108_v14  ;;  %v5322_v7 = vcombine.low %v3105_v3, %v3109_v36  ;;  %v5323_v15 = vcombine.high %v3105_v3, %v3109_v36  ;;  %v2941_v14 = vld [vmem:[%s7122_s5] sm:$0x3] }
 0x665   :  { %3830 = vmatprep.subr.bf16.mxu1 %v5233_v19  ;;  %v3100_v19 = vld [vmem:[#allocation10 + $0x2e0] sm:$0xff]  ;;  %v2984_v36 = vrot.slane %v2941_v14, %v6537_v45 }
 0x666   :  { %3831 = vmatpush1.bf16.msra.mxu1 %v5232_v33  ;;  %3874 = vmatpush1.bf16.msra.mxu0 %v5234_v57  ;;  %v5313_v16 = vcombine.high %v3096_v10, %v3100_v19  ;;  %v5315_v33 = vcombine.high %v3097_v25, %v3101_v24  ;;  %v3088_v57 = vld [vmem:[#allocation10 + $0x280] sm:$0xff]  ;;  %v5312_v31 = vcombine.low %v3096_v10, %v3100_v19 }
 0x667   :  { %3832 = vmatprep.subr.bf16.mxu1 %v5225_v18  ;;  %3875 = vmatprep.subr.bf16.mxu0 %v5227_v23  ;;  %v3092_v18 = vld [vmem:[#allocation10 + $0x2a0] sm:$0xff]  ;;  %v3089_v23 = vld [vmem:[#allocation10 + $0x288] sm:$0xff]  ;;  %v2980_v19 = vrot.slane %v2941_v14, %v6534_v43 }
 0x668   :  { %v5305_v32 = vcombine.high %v3088_v57, %v3092_v18 }
 0x66a   :  { %3833 = vmatpush1.bf16.msra.mxu1 %v5224_v30  ;;  %3876 = vmatpush1.bf16.msra.mxu0 %v5226_v28  ;;  %v5307_v30 = vcombine.high %v3089_v23, %v3093_v27  ;;  %v3080_v28 = vld [vmem:[#allocation10 + $0x240] sm:$0xff] }
 0x66b   :  { %3834 = vmatprep.subr.bf16.mxu1 %v5345_v29  ;;  %3877 = vmatprep.subr.bf16.mxu0 %v5347_v39  ;;  %v3084_v29 = vld [vmem:[#allocation10 + $0x260] sm:$0xff]  ;;  %v3081_v39 = vld [vmem:[#allocation10 + $0x248] sm:$0xff] }
 0x66e   :  { %3835 = vmatpush2.bf16.msra.mxu1 %v5344_v34  ;;  %3878 = vmatpush2.bf16.msra.mxu0 %v5346_v46  ;;  %v3085_v34 = vld [vmem:[#allocation10 + $0x268] sm:$0xff]  ;;  %v5304_v46 = vcombine.low %v3088_v57, %v3092_v18 }
 0x66f   :  { %3836 = vmatprep.subr.bf16.mxu1 %v5337_v54  ;;  %3879 = vmatprep.subr.bf16.mxu0 %v5339_v11  ;;  %v3066_v54 = vld [vmem:[#allocation10 + $0x1d0] sm:$0xff] }
 0x670   :  { %v5285_v11 = vcombine.high %v3066_v54, %v3070_v59 }
 0x672   :  { %3880 = vmatpush2.bf16.msra.mxu0 %v5338_v12  ;;  %v5284_v12 = vcombine.low %v3066_v54, %v3070_v59  ;;  %v3034_v59 = vld [vmem:[#allocation10 + $0xd0] sm:$0xff] }
 0x673   :  { %3881 = vmatprep.subr.bf16.mxu0 %v5331_v13 }
 0x676   :  { %3882 = vmatpush2.bf16.msra.mxu0 %v5330_v62 }
 0x677   :  { %3883 = vmatprep.subr.bf16.mxu0 %v5323_v15 }
 0x67a   :  { %3884 = vmatpush2.bf16.msra.mxu0 %v5322_v7 }
 0x67b   :  { %3885 = vmatprep.subr.bf16.mxu0 %v5315_v33 }
 0x67e   :  { %3886 = vmatpush2.bf16.msra.mxu0 %v5314_v26  ;;  %v3058_v26 = vld [vmem:[#allocation10 + $0x190] sm:$0xff] }
 0x67f   :  { %3887 = vmatprep.subr.bf16.mxu0 %v5307_v30  ;;  %v3059_v30 = vld [vmem:[#allocation10 + $0x198] sm:$0xff] }
 0x6e8   :  { %v2945_v35 = vpop.xlane.xlu0 %2944 }
 0x6e9   :  { %v2950_v37 = vmul.f32 0.00390625, %v2945_v35  ;;  %v5306_v35 = vcombine.low %v3089_v23, %v3093_v27 }
 0x6eb   :  { %v7016_v38 = vsub.f32 %v7003_v0, %v2950_v37  ;;  %v7019_v17 = vsub.f32 %v7005_v63, %v2950_v37  ;;  %v5297_v37 = vcombine.high %v3080_v28, %v3084_v29  ;;  %3888 = vmatpush2.bf16.msra.mxu0 %v5306_v35  ;;  %v3051_v35 = vld [vmem:[#allocation10 + $0x158] sm:$0xff] }
 0x6ec   :  { %v2948_v47 = vpop.xlane.xlu1 %2947 }
 0x6ed   :  { %v2951_v53 = vmul.f32 0.00390625, %v2948_v47  ;;  %v2956_v44 = vmul.f32 %v7016_v38, %v7016_v38  ;;  %v2957_v49 = vmul.f32 %v7019_v17, %v7019_v17  ;;  %v5299_v47 = vcombine.high %v3081_v39, %v3085_v34 }
 0x6ef   :  { %v7026_v48 = vsub.f32 %v7009_v50, %v2951_v53  ;;  %v7029_v61 = vsub.f32 %v7011_v20, %v2951_v53  ;;  %v2960_v6 = vadd.f32 %v2957_v49, %v2956_v44  ;;  %v5336_v50 = vcombine.low %v3120_v4, %v3124_v55  ;;  %v3112_v20 = vld [vmem:[#allocation10 + $0x340] sm:$0xff]  ;;  %v3073_v49 = vld [vmem:[#allocation10 + $0x208] sm:$0xff]  ;;  %3889 = vmatprep.subr.bf16.mxu0 %v5299_v47 }
 0x6f0   :  { %v5329_v21 = vcombine.high %v3112_v20, %v3116_v51  ;;  %v5328_v60 = vcombine.low %v3112_v20, %v3116_v51  ;;  %v3072_v53 = vld [vmem:[#allocation10 + $0x200] sm:$0xff]  ;;  %v3071_v20 = vld [vmem:[#allocation10 + $0x1f8] sm:$0xff] }
 0x6f1   :  { %2961 = vadd.xlane.f32.xlu0 %v2960_v6  ;;  %v2958_v0 = vmul.f32 %v7026_v48, %v7026_v48  ;;  %v2959_v63 = vmul.f32 %v7029_v61, %v7029_v61  ;;  %3837 = vmatpush2.bf16.msra.mxu1 %v5336_v50  ;;  %v3076_v44 = vld [vmem:[#allocation10 + $0x220] sm:$0xff]  ;;  %v3077_v6 = vld [vmem:[#allocation10 + $0x228] sm:$0xff]  ;;  %v3067_v50 = vld [vmem:[#allocation10 + $0x1d8] sm:$0xff] }
 0x6f2   :  { %3838 = vmatprep.subr.bf16.mxu1 %v5329_v21  ;;  %v5291_v4 = vcombine.high %v3073_v49, %v3077_v6  ;;  %v5288_v55 = vcombine.low %v3072_v53, %v3076_v44  ;;  %v5290_v58 = vcombine.low %v3073_v49, %v3077_v6  ;;  %v5286_v51 = vcombine.low %v3067_v50, %v3071_v20  ;;  %v3042_v6 = vld [vmem:[#allocation10 + $0x110] sm:$0xff] }
 0x6f3   :  { %v2963_v52 = vadd.f32 %v2959_v63, %v2958_v0  ;;  %v5296_v0 = vcombine.low %v3080_v28, %v3084_v29  ;;  %v5298_v63 = vcombine.low %v3081_v39, %v3085_v34  ;;  %v5287_v56 = vcombine.high %v3067_v50, %v3071_v20  ;;  %v3063_v28 = vld [vmem:[#allocation10 + $0x1b8] sm:$0xff]  ;;  %v3050_v29 = vld [vmem:[#allocation10 + $0x150] sm:$0xff] }
 0x6f4   :  { %v5279_v34 = vcombine.high %v3059_v30, %v3063_v28  ;;  %v3038_v50 = vld [vmem:[#allocation10 + $0xf0] sm:$0xff] }
 0x6f5   :  { %2964 = vadd.xlane.f32.xlu0 %v2963_v52  ;;  %3839 = vmatpush2.bf16.msra.mxu1 %v5328_v60  ;;  %v5289_v52 = vcombine.high %v3072_v53, %v3076_v44  ;;  %v5278_v53 = vcombine.low %v3059_v30, %v3063_v28  ;;  %v3130_v28 = vld [vmem:[#allocation10 + $0x3d0] sm:$0xff] }
 0x6f6   :  { %3840 = vmatprep.subr.bf16.mxu1 %v5321_v22  ;;  %3890 = vmatpush2.bf16.msra.mxu0 %v5298_v63  ;;  %v3043_v63 = vld [vmem:[#allocation10 + $0x118] sm:$0xff] }
 0x6f7   :  { %3891 = vmatprep.subr.bf16.mxu0 %v5291_v4 }
 0x6f9   :  { %3841 = vmatpush2.bf16.msra.mxu1 %v5320_v5  ;;  %v2942_v5 = vld [vmem:[%s7123_s6] sm:$0x3] }
 0x6fa   :  { %3842 = vmatprep.subr.bf16.mxu1 %v5313_v16  ;;  %3892 = vmatpush2.bf16.msra.mxu0 %v5290_v58  ;;  %v2999_v15 = vrot.slane %v2942_v5, %v6537_v45  ;;  %v2995_v16 = vrot.slane %v2942_v5, %v6534_v43 }
 0x6fb   :  { %3947 = vmatprep.subr.bf16.mxu0 %v5287_v56  ;;  %v5253_v56 = vcombine.high %v3034_v59, %v3038_v50 }
 0x6fd   :  { %3843 = vmatpush2.bf16.msra.mxu1 %v5312_v31 }
 0x6fe   :  { %3844 = vmatprep.subr.bf16.mxu1 %v5305_v32  ;;  %v3062_v32 = vld [vmem:[#allocation10 + $0x1b0] sm:$0xff] }
 0x6ff   :  { %v5277_v39 = vcombine.high %v3058_v26, %v3062_v32  ;;  %v5276_v47 = vcombine.low %v3058_v26, %v3062_v32 }
 0x701   :  { %3845 = vmatpush2.bf16.msra.mxu1 %v5304_v46  ;;  %v3054_v46 = vld [vmem:[#allocation10 + $0x170] sm:$0xff] }
 0x702   :  { %3846 = vmatprep.subr.bf16.mxu1 %v5297_v37  ;;  %v3055_v37 = vld [vmem:[#allocation10 + $0x178] sm:$0xff]  ;;  %v5269_v44 = vcombine.high %v3050_v29, %v3054_v46  ;;  %v5268_v4 = vcombine.low %v3050_v29, %v3054_v46 }
 0x703   :  { %v5271_v49 = vcombine.high %v3051_v35, %v3055_v37  ;;  %v3131_v29 = vld [vmem:[#allocation10 + $0x3d8] sm:$0xff] }
 0x705   :  { %3847 = vmatpush2.bf16.msra.mxu1 %v5296_v0  ;;  %v3046_v0 = vld [vmem:[#allocation10 + $0x130] sm:$0xff] }
 0x706   :  { %3848 = vmatprep.subr.bf16.mxu1 %v5289_v52  ;;  %v3047_v52 = vld [vmem:[#allocation10 + $0x138] sm:$0xff]  ;;  %v5261_v58 = vcombine.high %v3042_v6, %v3046_v0  ;;  %v5260_v20 = vcombine.low %v3042_v6, %v3046_v0 }
 0x707   :  { %v5263_v54 = vcombine.high %v3043_v63, %v3047_v52 }
 0x709   :  { %3849 = vmatpush2.bf16.msra.mxu1 %v5288_v55  ;;  %v5270_v55 = vcombine.low %v3051_v35, %v3055_v37 }
 0x70a   :  { %3904 = vmatprep.subr.bf16.mxu1 %v5285_v11  ;;  %v3039_v11 = vld [vmem:[#allocation10 + $0xf8] sm:$0xff] }
 0x77a   :  { %v2962_v21 = vpop.xlane.xlu0 %2961 }
 0x77b   :  { %v2966_v1 = vmul.f32 0.00390625, %v2962_v21 }
 0x77d   :  { %v2968_v60 = vadd.f32 1e-05, %v2966_v1  ;;  %v3026_v1 = vld [vmem:[#allocation10 + $0x90] sm:$0xff] }
 0x77e   :  { %v2965_v62 = vpop.xlane.xlu0 %2964 }
 0x77f   :  { %6239 = vrsqrt.f32 %v2968_v60  ;;  %v2967_v13 = vmul.f32 0.00390625, %v2965_v62  ;;  %v3030_v60 = vld [vmem:[#allocation10 + $0xb0] sm:$0xff]  ;;  %v3027_v62 = vld [vmem:[#allocation10 + $0x98] sm:$0xff] }
 0x781   :  { %v2969_v2 = vadd.f32 1e-05, %v2967_v13  ;;  %v3031_v13 = vld [vmem:[#allocation10 + $0xb8] sm:$0xff] }
 0x782   :  { %v5247_v5 = vcombine.high %v3027_v62, %v3031_v13 }
 0x783   :  { %6241 = vrsqrt.f32 %v2969_v2  ;;  %v5252_v2 = vcombine.low %v3034_v59, %v3038_v50 }
 0x78c   :  { %v6240_v3 = vpop.eup %6239 }
 0x78d   :  { %v2973_v22 = vmul.f32 %v6240_v3, %v7019_v17  ;;  %v2972_v10 = vmul.f32 %v6240_v3, %v7016_v38  ;;  %v5245_v3 = vcombine.high %v3026_v1, %v3030_v60 }
 0x78f   :  { %v2988_v24 = vmul.f32 %v2984_v36, %v2973_v22  ;;  %v2987_v57 = vmul.f32 %v2980_v19, %v2972_v10  ;;  %v3018_v22 = vld [vmem:[#allocation10 + $0x50] sm:$0xff]  ;;  %v3019_v10 = vld [vmem:[#allocation10 + $0x58] sm:$0xff] }
 0x790   :  { %v6242_v7 = vpop.eup %6241 }
 0x791   :  { %v2975_v25 = vmul.f32 %v6242_v7, %v7029_v61  ;;  %v2974_v33 = vmul.f32 %v6242_v7, %v7026_v48  ;;  %v7049_v17 = vadd.f32 %v2999_v15, %v2988_v24  ;;  %v7053_v38 = vadd.f32 %v2995_v16, %v2987_v57  ;;  %v3010_v24 = vld [vmem:[#allocation10 + $0x10] sm:$0xff]  ;;  %v3011_v57 = vld [vmem:[#allocation10 + $0x18] sm:$0xff] }
 0x792   :  { %v5244_v7 = vcombine.low %v3026_v1, %v3030_v60 }
 0x793   :  { %v2990_v18 = vmul.f32 %v2984_v36, %v2975_v25  ;;  %v2989_v23 = vmul.f32 %v2980_v19, %v2974_v33  ;;  %v3022_v36 = vld [vmem:[#allocation10 + $0x70] sm:$0xff]  ;;  %v3023_v19 = vld [vmem:[#allocation10 + $0x78] sm:$0xff] }
 0x794   :  { %v5239_v25 = vcombine.high %v3019_v10, %v3023_v19  ;;  %v3014_v33 = vld [vmem:[#allocation10 + $0x30] sm:$0xff]  ;;  %v5238_v26 = vcombine.low %v3019_v10, %v3023_v19 }
 0x795   :  { %v7051_v27 = vadd.f32 %v2999_v15, %v2990_v18  ;;  %v7055_v31 = vadd.f32 %v2995_v16, %v2989_v23  ;;  %v5246_v15 = vcombine.low %v3027_v62, %v3031_v13  ;;  %v5237_v16 = vcombine.high %v3018_v22, %v3022_v36  ;;  %v3015_v18 = vld [vmem:[#allocation10 + $0x38] sm:$0xff] }
 0x796   :  { %v5236_v23 = vcombine.low %v3018_v22, %v3022_v36  ;;  %v5229_v32 = vcombine.high %v3010_v24, %v3014_v33  ;;  %v5231_v30 = vcombine.high %v3011_v57, %v3015_v18  ;;  %v5230_v46 = vcombine.low %v3011_v57, %v3015_v18 }
 0x797   :  { %v3007_v61 = vpack.c.bf16 %v7051_v27, %v7049_v17  ;;  %v7061_v48 = vpack.c.bf16 %v7055_v31, %v7053_v38 }
 0x799   :  { %3850 = vmatprep.mubr.bf16.mxu1 %v3007_v61  ;;  %3893 = vmatprep.mubr.bf16.mxu0 %v3007_v61 }
 0x79a   :  { %3851 = vmatmul.mubr.bf16.vlgmr.msra.gmra.mxu1 %v7061_v48  ;;  %3894 = vmatmul.mubr.bf16.vlgmr.msra.gmra.mxu0 %v7061_v48 }
 0x79b   :  { %3905 = vmatpush1.bf16.msra.mxu1 %v5284_v12  ;;  %3948 = vmatpush1.bf16.msra.mxu0 %v5286_v51  ;;  %v3035_v12 = vld [vmem:[#allocation10 + $0xd8] sm:$0xff]  ;;  %v5262_v51 = vcombine.low %v3043_v63, %v3047_v52 }
 0x79c   :  { %3936 = vmatprep.mubr.bf16.mxu1 %v3007_v61  ;;  %3979 = vmatprep.mubr.bf16.mxu0 %v3007_v61  ;;  %v5255_v21 = vcombine.high %v3035_v12, %v3039_v11  ;;  %v5254_v14 = vcombine.low %v3035_v12, %v3039_v11  ;;  %v3134_v61 = vld [vmem:[#allocation10 + $0x3f0] sm:$0xff] }
 0x79d   :  { %3906 = vmatprep.subr.bf16.mxu1 %v5277_v39  ;;  %3949 = vmatprep.subr.bf16.mxu0 %v5279_v34  ;;  %v3135_v39 = vld [vmem:[#allocation10 + $0x3f8] sm:$0xff]  ;;  %v5228_v34 = vcombine.low %v3010_v24, %v3014_v33  ;;  %v5349_v35 = vcombine.high %v3130_v28, %v3134_v61  ;;  %v5348_v6 = vcombine.low %v3130_v28, %v3134_v61 }
 0x79e   :  { %v5351_v37 = vcombine.high %v3131_v29, %v3135_v39  ;;  %v5350_v0 = vcombine.low %v3131_v29, %v3135_v39 }
 0x79f   :  { %3907 = vmatpush1.bf16.msra.mxu1 %v5276_v47  ;;  %3950 = vmatpush1.bf16.msra.mxu0 %v5278_v53  ;;  %v3122_v47 = vld [vmem:[#allocation10 + $0x390] sm:$0xff] }
 0x7a0   :  { %3908 = vmatprep.subr.bf16.mxu1 %v5269_v44  ;;  %3951 = vmatprep.subr.bf16.mxu0 %v5271_v49  ;;  %v3126_v53 = vld [vmem:[#allocation10 + $0x3b0] sm:$0xff]  ;;  %v3123_v44 = vld [vmem:[#allocation10 + $0x398] sm:$0xff] }
 0x7a1   :  { %v3127_v49 = vld [vmem:[#allocation10 + $0x3b8] sm:$0xff]  ;;  %v5341_v63 = vcombine.high %v3122_v47, %v3126_v53  ;;  %v5340_v59 = vcombine.low %v3122_v47, %v3126_v53 }
 0x7a2   :  { %v5343_v52 = vcombine.high %v3123_v44, %v3127_v49  ;;  %v5342_v50 = vcombine.low %v3123_v44, %v3127_v49 }
 0x7a3   :  { %3909 = vmatpush1.bf16.msra.mxu1 %v5268_v4  ;;  %3952 = vmatpush1.bf16.msra.mxu0 %v5270_v55  ;;  %v3114_v4 = vld [vmem:[#allocation10 + $0x350] sm:$0xff] }
 0x7a4   :  { %3910 = vmatprep.subr.bf16.mxu1 %v5261_v58  ;;  %3953 = vmatprep.subr.bf16.mxu0 %v5263_v54  ;;  %v3118_v55 = vld [vmem:[#allocation10 + $0x370] sm:$0xff]  ;;  %v3115_v58 = vld [vmem:[#allocation10 + $0x358] sm:$0xff] }
 0x7a5   :  { %v3119_v54 = vld [vmem:[#allocation10 + $0x378] sm:$0xff]  ;;  %v5333_v12 = vcombine.high %v3114_v4, %v3118_v55  ;;  %v5332_v1 = vcombine.low %v3114_v4, %v3118_v55 }
 0x7a6   :  { %v5335_v11 = vcombine.high %v3115_v58, %v3119_v54  ;;  %v5334_v60 = vcombine.low %v3115_v58, %v3119_v54  ;;  %v5983_v4 = vld [vmem:[#allocation11 + $0x70] ss:$8 sps:$4 sm:$0xff]   ;;  %v5991_v58 = vld [vmem:[#allocation11 + $0x64] ss:$8 sps:$4 sm:$0xff]  }
 0x7a7   :  { %3911 = vmatpush1.bf16.msra.mxu1 %v5260_v20  ;;  %3954 = vmatpush1.bf16.msra.mxu0 %v5262_v51  ;;  %v3106_v20 = vld [vmem:[#allocation10 + $0x310] sm:$0xff]  ;;  %v5994_v54 = vld [vmem:[#allocation11 + $0x164] ss:$8 sps:$4 sm:$0xff]  }
 0x7a8   :  { %3912 = vmatprep.subr.bf16.mxu1 %v5253_v56  ;;  %3955 = vmatprep.subr.bf16.mxu0 %v5255_v21  ;;  %v3110_v51 = vld [vmem:[#allocation10 + $0x330] sm:$0xff]  ;;  %v3107_v56 = vld [vmem:[#allocation10 + $0x318] sm:$0xff] }
 0x7a9   :  { %v3111_v21 = vld [vmem:[#allocation10 + $0x338] sm:$0xff]  ;;  %v5325_v62 = vcombine.high %v3106_v20, %v3110_v51  ;;  %v5324_v22 = vcombine.low %v3106_v20, %v3110_v51 }
 0x7aa   :  { %v5327_v13 = vcombine.high %v3107_v56, %v3111_v21  ;;  %v5326_v36 = vcombine.low %v3107_v56, %v3111_v21  ;;  %v5986_v55 = vld [vmem:[#allocation11 + $0x170] ss:$8 sps:$4 sm:$0xff]   ;;  %v6003_v56 = vld [vmem:[#allocation11 + $0x44] ss:$8 sps:$4 sm:$0xff]  }
 0x7ab   :  { %3913 = vmatpush1.bf16.msra.mxu1 %v5252_v2  ;;  %3956 = vmatpush1.bf16.msra.mxu0 %v5254_v14  ;;  %v3098_v2 = vld [vmem:[#allocation10 + $0x2d0] sm:$0xff]  ;;  %v6006_v21 = vld [vmem:[#allocation11 + $0x144] ss:$8 sps:$4 sm:$0xff]  }
 0x7ac   :  { %3914 = vmatprep.subr.bf16.mxu1 %v5245_v3  ;;  %3957 = vmatprep.subr.bf16.mxu0 %v5247_v5  ;;  %v3102_v14 = vld [vmem:[#allocation10 + $0x2f0] sm:$0xff]  ;;  %v3099_v3 = vld [vmem:[#allocation10 + $0x2d8] sm:$0xff] }
 0x7ad   :  { %v3103_v5 = vld [vmem:[#allocation10 + $0x2f8] sm:$0xff]  ;;  %v5317_v10 = vcombine.high %v3098_v2, %v3102_v14  ;;  %v5316_v24 = vcombine.low %v3098_v2, %v3102_v14  ;;  %v6015_v14 = vld [vmem:[#allocation11 + $0x24] ss:$8 sps:$4 sm:$0xff]  }
 0x7ae   :  { %v5319_v19 = vcombine.high %v3099_v3, %v3103_v5  ;;  %v5318_v33 = vcombine.low %v3099_v3, %v3103_v5  ;;  %v5995_v20 = vld [vmem:[#allocation11 + $0x50] ss:$8 sps:$4 sm:$0xff]   ;;  %v6018_v3 = vld [vmem:[#allocation11 + $0x124] ss:$8 sps:$4 sm:$0xff]   ;;  %v6013_v5 = vld [vmem:[#allocation11 + $0x20] ss:$8 sps:$4 sm:$0xff]  }
 0x7af   :  { %3915 = vmatpush1.bf16.msra.mxu1 %v5244_v7  ;;  %3958 = vmatpush1.bf16.msra.mxu0 %v5246_v15  ;;  %v3090_v7 = vld [vmem:[#allocation10 + $0x290] sm:$0xff] }
 0x7b0   :  { %3916 = vmatprep.subr.bf16.mxu1 %v5237_v16  ;;  %3959 = vmatprep.subr.bf16.mxu0 %v5239_v25  ;;  %v3094_v15 = vld [vmem:[#allocation10 + $0x2b0] sm:$0xff]  ;;  %v3091_v16 = vld [vmem:[#allocation10 + $0x298] sm:$0xff] }
 0x7b1   :  { %v3095_v25 = vld [vmem:[#allocation10 + $0x2b8] sm:$0xff]  ;;  %v5309_v57 = vcombine.high %v3090_v7, %v3094_v15  ;;  %v5308_v28 = vcombine.low %v3090_v7, %v3094_v15  ;;  %v6027_v15 = vld [vmem:[#allocation11 + $0x4] ss:$8 sps:$4 sm:$0xff]  }
 0x7b2   :  { %v5311_v18 = vcombine.high %v3091_v16, %v3095_v25  ;;  %v5310_v61 = vcombine.low %v3091_v16, %v3095_v25  ;;  %v5998_v51 = vld [vmem:[#allocation11 + $0x150] ss:$8 sps:$4 sm:$0xff]   ;;  %v6030_v16 = vld [vmem:[#allocation11 + $0x104] ss:$8 sps:$4 sm:$0xff]   ;;  %v6025_v25 = vld [vmem:[#allocation11] ss:$8 sps:$4 sm:$0xff]  }
 0x7b3   :  { %3917 = vmatpush1.bf16.msra.mxu1 %v5236_v23  ;;  %3960 = vmatpush1.bf16.msra.mxu0 %v5238_v26  ;;  %v3082_v23 = vld [vmem:[#allocation10 + $0x250] sm:$0xff] }
 0x7b4   :  { %3918 = vmatprep.subr.bf16.mxu1 %v5229_v32  ;;  %3961 = vmatprep.subr.bf16.mxu0 %v5231_v30  ;;  %v3086_v26 = vld [vmem:[#allocation10 + $0x270] sm:$0xff]  ;;  %v3083_v32 = vld [vmem:[#allocation10 + $0x258] sm:$0xff] }
 0x7b5   :  { %v3087_v30 = vld [vmem:[#allocation10 + $0x278] sm:$0xff]  ;;  %v5301_v29 = vcombine.high %v3082_v23, %v3086_v26  ;;  %v5300_v47 = vcombine.low %v3082_v23, %v3086_v26  ;;  %v6039_v26 = vld [vmem:[#allocation11 + $0xe4] ss:$8 sps:$4 sm:$0xff]  }
 0x7b6   :  { %v5303_v39 = vcombine.high %v3083_v32, %v3087_v30  ;;  %v5302_v53 = vcombine.low %v3083_v32, %v3087_v30  ;;  %v6010_v2 = vld [vmem:[#allocation11 + $0x130] ss:$8 sps:$4 sm:$0xff]   ;;  %v6042_v32 = vld [vmem:[#allocation11 + $0x1e4] ss:$8 sps:$4 sm:$0xff]   ;;  %v6037_v30 = vld [vmem:[#allocation11 + $0xe0] ss:$8 sps:$4 sm:$0xff]  }
 0x7b7   :  { %3919 = vmatpush1.bf16.msra.mxu1 %v5228_v34  ;;  %3962 = vmatpush1.bf16.msra.mxu0 %v5230_v46  ;;  %v3074_v34 = vld [vmem:[#allocation10 + $0x210] sm:$0xff] }
 0x7b8   :  { %3920 = vmatprep.subr.bf16.mxu1 %v5349_v35  ;;  %3963 = vmatprep.subr.bf16.mxu0 %v5351_v37  ;;  %v3078_v46 = vld [vmem:[#allocation10 + $0x230] sm:$0xff]  ;;  %v3075_v35 = vld [vmem:[#allocation10 + $0x218] sm:$0xff] }
 0x7b9   :  { %v3079_v37 = vld [vmem:[#allocation10 + $0x238] sm:$0xff]  ;;  %v5293_v44 = vcombine.high %v3074_v34, %v3078_v46 }
 0x7ba   :  { %v5295_v49 = vcombine.high %v3075_v35, %v3079_v37  ;;  %v6022_v7 = vld [vmem:[#allocation11 + $0x110] ss:$8 sps:$4 sm:$0xff]  }
 0x7bb   :  { %3921 = vmatpush2.bf16.msra.mxu1 %v5348_v6  ;;  %3964 = vmatpush2.bf16.msra.mxu0 %v5350_v0  ;;  %v5292_v6 = vcombine.low %v3074_v34, %v3078_v46  ;;  %v5294_v0 = vcombine.low %v3075_v35, %v3079_v37  ;;  %v6034_v23 = vld [vmem:[#allocation11 + $0x1f0] ss:$8 sps:$4 sm:$0xff]   ;;  %v6051_v46 = vld [vmem:[#allocation11 + $0xc4] ss:$8 sps:$4 sm:$0xff]   ;;  %v6049_v37 = vld [vmem:[#allocation11 + $0xc0] ss:$8 sps:$4 sm:$0xff]  }
 0x7bc   :  { %3922 = vmatprep.subr.bf16.mxu1 %v5341_v63  ;;  %3965 = vmatprep.subr.bf16.mxu0 %v5343_v52  ;;  %v5985_v63 = vld [vmem:[#allocation11 + $0x74] ss:$8 sps:$4 sm:$0xff]   ;;  %v6046_v34 = vld [vmem:[#allocation11 + $0x1d0] ss:$8 sps:$4 sm:$0xff]   ;;  %v6054_v35 = vld [vmem:[#allocation11 + $0x1c4] ss:$8 sps:$4 sm:$0xff]  }
 0x7bd   :  { %v5988_v52 = vld [vmem:[#allocation11 + $0x174] ss:$8 sps:$4 sm:$0xff]  }
 0x7bf   :  { %3923 = vmatpush2.bf16.msra.mxu1 %v5340_v59  ;;  %3966 = vmatpush2.bf16.msra.mxu0 %v5342_v50  ;;  %v5989_v59 = vld [vmem:[#allocation11 + $0x60] ss:$8 sps:$4 sm:$0xff]  }
 0x7c0   :  { %3924 = vmatprep.subr.bf16.mxu1 %v5333_v12  ;;  %3967 = vmatprep.subr.bf16.mxu0 %v5335_v11  ;;  %v5992_v50 = vld [vmem:[#allocation11 + $0x160] ss:$8 sps:$4 sm:$0xff]   ;;  %v5997_v12 = vld [vmem:[#allocation11 + $0x54] ss:$8 sps:$4 sm:$0xff]  }
 0x7c1   :  { %v6000_v11 = vld [vmem:[#allocation11 + $0x154] ss:$8 sps:$4 sm:$0xff]  }
 0x7c3   :  { %3925 = vmatpush2.bf16.msra.mxu1 %v5332_v1  ;;  %3968 = vmatpush2.bf16.msra.mxu0 %v5334_v60  ;;  %v6001_v1 = vld [vmem:[#allocation11 + $0x40] ss:$8 sps:$4 sm:$0xff]   ;;  %v6009_v60 = vld [vmem:[#allocation11 + $0x34] ss:$8 sps:$4 sm:$0xff]  }
 0x7c4   :  { %3926 = vmatprep.subr.bf16.mxu1 %v5325_v62  ;;  %3969 = vmatprep.subr.bf16.mxu0 %v5327_v13  ;;  %v6012_v62 = vld [vmem:[#allocation11 + $0x134] ss:$8 sps:$4 sm:$0xff]   ;;  %v6007_v13 = vld [vmem:[#allocation11 + $0x30] ss:$8 sps:$4 sm:$0xff]  }
 0x7c7   :  { %3927 = vmatpush2.bf16.msra.mxu1 %v5324_v22  ;;  %3970 = vmatpush2.bf16.msra.mxu0 %v5326_v36  ;;  %v6016_v22 = vld [vmem:[#allocation11 + $0x120] ss:$8 sps:$4 sm:$0xff]   ;;  %v6021_v36 = vld [vmem:[#allocation11 + $0x14] ss:$8 sps:$4 sm:$0xff]  }
 0x7c8   :  { %3928 = vmatprep.subr.bf16.mxu1 %v5317_v10  ;;  %3971 = vmatprep.subr.bf16.mxu0 %v5319_v19  ;;  %v6024_v10 = vld [vmem:[#allocation11 + $0x114] ss:$8 sps:$4 sm:$0xff]   ;;  %v6019_v19 = vld [vmem:[#allocation11 + $0x10] ss:$8 sps:$4 sm:$0xff]  }
 0x7cb   :  { %3929 = vmatpush2.bf16.msra.mxu1 %v5316_v24  ;;  %3972 = vmatpush2.bf16.msra.mxu0 %v5318_v33  ;;  %v6028_v24 = vld [vmem:[#allocation11 + $0x100] ss:$8 sps:$4 sm:$0xff]   ;;  %v6033_v33 = vld [vmem:[#allocation11 + $0xf4] ss:$8 sps:$4 sm:$0xff]  }
 0x7cc   :  { %3930 = vmatprep.subr.bf16.mxu1 %v5309_v57  ;;  %3973 = vmatprep.subr.bf16.mxu0 %v5311_v18  ;;  %v6036_v57 = vld [vmem:[#allocation11 + $0x1f4] ss:$8 sps:$4 sm:$0xff]   ;;  %v6031_v18 = vld [vmem:[#allocation11 + $0xf0] ss:$8 sps:$4 sm:$0xff]  }
 0x7cf   :  { %3931 = vmatpush2.bf16.msra.mxu1 %v5308_v28  ;;  %3974 = vmatpush2.bf16.msra.mxu0 %v5310_v61  ;;  %v6040_v28 = vld [vmem:[#allocation11 + $0x1e0] ss:$8 sps:$4 sm:$0xff]   ;;  %v6045_v61 = vld [vmem:[#allocation11 + $0xd4] ss:$8 sps:$4 sm:$0xff]  }
 0x7d0   :  { %3932 = vmatprep.subr.bf16.mxu1 %v5301_v29  ;;  %3975 = vmatprep.subr.bf16.mxu0 %v5303_v39  ;;  %v6048_v29 = vld [vmem:[#allocation11 + $0x1d4] ss:$8 sps:$4 sm:$0xff]   ;;  %v6043_v39 = vld [vmem:[#allocation11 + $0xd0] ss:$8 sps:$4 sm:$0xff]  }
 0x7d3   :  { %3933 = vmatpush2.bf16.msra.mxu1 %v5300_v47  ;;  %3976 = vmatpush2.bf16.msra.mxu0 %v5302_v53  ;;  %v6052_v47 = vld [vmem:[#allocation11 + $0x1c0] ss:$8 sps:$4 sm:$0xff]   ;;  %v6057_v53 = vld [vmem:[#allocation11 + $0xb4] ss:$8 sps:$4 sm:$0xff]  }
 0x7d4   :  { %3934 = vmatprep.subr.bf16.mxu1 %v5293_v44  ;;  %3977 = vmatprep.subr.bf16.mxu0 %v5295_v49  ;;  %v6060_v44 = vld [vmem:[#allocation11 + $0x1b4] ss:$8 sps:$4 sm:$0xff]   ;;  %v6055_v49 = vld [vmem:[#allocation11 + $0xb0] ss:$8 sps:$4 sm:$0xff]  }
 0x7d7   :  { %3935 = vmatpush2.bf16.msra.mxu1 %v5292_v6  ;;  %3978 = vmatpush2.bf16.msra.mxu0 %v5294_v0  ;;  %v6058_v6 = vld [vmem:[#allocation11 + $0x1b0] ss:$8 sps:$4 sm:$0xff]   ;;  %v6063_v0 = vld [vmem:[#allocation11 + $0xa4] ss:$8 sps:$4 sm:$0xff]  }
 0x7d8   :  { %4794 = vmatprep.subr.bf16.mxu1 %v5985_v63  ;;  %4837 = vmatprep.subr.bf16.mxu0 %v5988_v52  ;;  %v6066_v63 = vld [vmem:[#allocation11 + $0x1a4] ss:$8 sps:$4 sm:$0xff]   ;;  %v6061_v52 = vld [vmem:[#allocation11 + $0xa0] ss:$8 sps:$4 sm:$0xff]  }
 0x7da   :  { %3937 = vmatmul.mubr.bf16.vlgmr.msra.gmra.mxu1 %v7061_v48  ;;  %3980 = vmatmul.mubr.bf16.vlgmr.msra.gmra.mxu0 %v7061_v48  ;;  %v6004_v48 = vld [vmem:[#allocation11 + $0x140] ss:$8 sps:$4 sm:$0xff]  }
 0x7db   :  { %4795 = vmatpush1.bf16.msra.mxu1 %v5983_v4  ;;  %4838 = vmatpush1.bf16.msra.mxu0 %v5986_v55  ;;  %v6064_v4 = vld [vmem:[#allocation11 + $0x1a0] ss:$8 sps:$4 sm:$0xff]   ;;  %v6069_v55 = vld [vmem:[#allocation11 + $0x94] ss:$8 sps:$4 sm:$0xff]  }
 0x7dc   :  { %4796 = vmatprep.subr.bf16.mxu1 %v5991_v58  ;;  %4839 = vmatprep.subr.bf16.mxu0 %v5994_v54  ;;  %v6072_v58 = vld [vmem:[#allocation11 + $0x194] ss:$8 sps:$4 sm:$0xff]   ;;  %v6067_v54 = vld [vmem:[#allocation11 + $0x90] ss:$8 sps:$4 sm:$0xff]  }
 0x7df   :  { %4797 = vmatpush1.bf16.msra.mxu1 %v5989_v59  ;;  %4840 = vmatpush1.bf16.msra.mxu0 %v5992_v50  ;;  %v6070_v59 = vld [vmem:[#allocation11 + $0x190] ss:$8 sps:$4 sm:$0xff]   ;;  %v6075_v50 = vld [vmem:[#allocation11 + $0x84] ss:$8 sps:$4 sm:$0xff]  }
 0x7e0   :  { %4798 = vmatprep.subr.bf16.mxu1 %v5997_v12  ;;  %4841 = vmatprep.subr.bf16.mxu0 %v6000_v11  ;;  %v6078_v12 = vld [vmem:[#allocation11 + $0x184] ss:$8 sps:$4 sm:$0xff]   ;;  %v6073_v11 = vld [vmem:[#allocation11 + $0x80] ss:$8 sps:$4 sm:$0xff]  }
 0x7e3   :  { %4799 = vmatpush1.bf16.msra.mxu1 %v5995_v20  ;;  %4842 = vmatpush1.bf16.msra.mxu0 %v5998_v51  ;;  %v6076_v20 = vld [vmem:[#allocation11 + $0x180] ss:$8 sps:$4 sm:$0xff]   ;;  %v6081_v51 = vld [vmem:[#allocation11 + $0x274] ss:$8 sps:$4 sm:$0xff]  }
 0x7e4   :  { %4800 = vmatprep.subr.bf16.mxu1 %v6003_v56  ;;  %4843 = vmatprep.subr.bf16.mxu0 %v6006_v21  ;;  %v6084_v56 = vld [vmem:[#allocation11 + $0x374] ss:$8 sps:$4 sm:$0xff]  }
 0x7e5   :  { %v7070_v21 = vld [vmem:[%s7125_s8] sm:$0xff] }
 0x7e7   :  { %4801 = vmatpush1.bf16.msra.mxu1 %v6001_v1  ;;  %4844 = vmatpush1.bf16.msra.mxu0 %v6004_v48 }
 0x7e8   :  { %4802 = vmatprep.subr.bf16.mxu1 %v6009_v60  ;;  %4845 = vmatprep.subr.bf16.mxu0 %v6012_v62  ;;  %v3145_v60 = vrot.slane %v7070_v21, %v6537_v45  ;;  %v3153_v62 = vrot.slane %v7070_v21, %v244_v42 }
 0x7eb   :  { %4803 = vmatpush1.bf16.msra.mxu1 %v6007_v13  ;;  %4846 = vmatpush1.bf16.msra.mxu0 %v6010_v2  ;;  %v3141_v13 = vrot.slane %v7070_v21, %v6534_v43  ;;  %v3149_v2 = vrot.slane %v7070_v21, %v240_v41 }
 0x7ec   :  { %4804 = vmatprep.subr.bf16.mxu1 %v6015_v14  ;;  %4847 = vmatprep.subr.bf16.mxu0 %v6018_v3 }
 0x7ef   :  { %4805 = vmatpush1.bf16.msra.mxu1 %v6013_v5  ;;  %4848 = vmatpush1.bf16.msra.mxu0 %v6016_v22 }
 0x7f0   :  { %4806 = vmatprep.subr.bf16.mxu1 %v6021_v36  ;;  %4849 = vmatprep.subr.bf16.mxu0 %v6024_v10 }
 0x7f3   :  { %4807 = vmatpush1.bf16.msra.mxu1 %v6019_v19  ;;  %4850 = vmatpush1.bf16.msra.mxu0 %v6022_v7 }
 0x7f4   :  { %4808 = vmatprep.subr.bf16.mxu1 %v6027_v15  ;;  %4851 = vmatprep.subr.bf16.mxu0 %v6030_v16 }
 0x7f7   :  { %4809 = vmatpush1.bf16.msra.mxu1 %v6025_v25  ;;  %4852 = vmatpush1.bf16.msra.mxu0 %v6028_v24 }
 0x7f8   :  { %4810 = vmatprep.subr.bf16.mxu1 %v6033_v33  ;;  %4853 = vmatprep.subr.bf16.mxu0 %v6036_v57 }
 0x7fb   :  { %4811 = vmatpush2.bf16.msra.mxu1 %v6031_v18  ;;  %4854 = vmatpush2.bf16.msra.mxu0 %v6034_v23 }
 0x7fc   :  { %4812 = vmatprep.subr.bf16.mxu1 %v6039_v26  ;;  %4855 = vmatprep.subr.bf16.mxu0 %v6042_v32 }
 0x7ff   :  { %4813 = vmatpush2.bf16.msra.mxu1 %v6037_v30  ;;  %4856 = vmatpush2.bf16.msra.mxu0 %v6040_v28 }
 0x800   :  { %4814 = vmatprep.subr.bf16.mxu1 %v6045_v61  ;;  %4857 = vmatprep.subr.bf16.mxu0 %v6048_v29 }
 0x803   :  { %4815 = vmatpush2.bf16.msra.mxu1 %v6043_v39  ;;  %4858 = vmatpush2.bf16.msra.mxu0 %v6046_v34  ;;  %v6079_v39 = vld [vmem:[#allocation11 + $0x270] ss:$8 sps:$4 sm:$0xff]  }
 0x804   :  { %4816 = vmatprep.subr.bf16.mxu1 %v6051_v46  ;;  %4859 = vmatprep.subr.bf16.mxu0 %v6054_v35  ;;  %v6082_v34 = vld [vmem:[#allocation11 + $0x370] ss:$8 sps:$4 sm:$0xff]  }
 0x807   :  { %4817 = vmatpush2.bf16.msra.mxu1 %v6049_v37  ;;  %4860 = vmatpush2.bf16.msra.mxu0 %v6052_v47  ;;  %v6087_v37 = vld [vmem:[#allocation11 + $0x264] ss:$8 sps:$4 sm:$0xff]  }
 0x808   :  { %4818 = vmatprep.subr.bf16.mxu1 %v6057_v53  ;;  %4861 = vmatprep.subr.bf16.mxu0 %v6060_v44  ;;  %v6090_v47 = vld [vmem:[#allocation11 + $0x364] ss:$8 sps:$4 sm:$0xff]   ;;  %v6085_v53 = vld [vmem:[#allocation11 + $0x260] ss:$8 sps:$4 sm:$0xff]  }
 0x809   :  { %v6088_v44 = vld [vmem:[#allocation11 + $0x360] ss:$8 sps:$4 sm:$0xff]  }
 0x80b   :  { %4819 = vmatpush2.bf16.msra.mxu1 %v6055_v49  ;;  %4862 = vmatpush2.bf16.msra.mxu0 %v6058_v6  ;;  %v6093_v49 = vld [vmem:[#allocation11 + $0x254] ss:$8 sps:$4 sm:$0xff]  }
 0x80c   :  { %4820 = vmatprep.subr.bf16.mxu1 %v6063_v0  ;;  %4863 = vmatprep.subr.bf16.mxu0 %v6066_v63  ;;  %v6096_v6 = vld [vmem:[#allocation11 + $0x354] ss:$8 sps:$4 sm:$0xff]   ;;  %v6091_v0 = vld [vmem:[#allocation11 + $0x250] ss:$8 sps:$4 sm:$0xff]  }
 0x80d   :  { %v6094_v63 = vld [vmem:[#allocation11 + $0x350] ss:$8 sps:$4 sm:$0xff]  }
 0x80f   :  { %4821 = vmatpush2.bf16.msra.mxu1 %v6061_v52  ;;  %4864 = vmatpush2.bf16.msra.mxu0 %v6064_v4  ;;  %v6099_v52 = vld [vmem:[#allocation11 + $0x244] ss:$8 sps:$4 sm:$0xff]  }
 0x810   :  { %4822 = vmatprep.subr.bf16.mxu1 %v6069_v55  ;;  %4865 = vmatprep.subr.bf16.mxu0 %v6072_v58  ;;  %v6102_v4 = vld [vmem:[#allocation11 + $0x344] ss:$8 sps:$4 sm:$0xff]   ;;  %v6097_v55 = vld [vmem:[#allocation11 + $0x240] ss:$8 sps:$4 sm:$0xff]  }
 0x811   :  { %v6100_v58 = vld [vmem:[#allocation11 + $0x340] ss:$8 sps:$4 sm:$0xff]  }
 0x813   :  { %4823 = vmatpush2.bf16.msra.mxu1 %v6067_v54  ;;  %4866 = vmatpush2.bf16.msra.mxu0 %v6070_v59  ;;  %v6105_v54 = vld [vmem:[#allocation11 + $0x234] ss:$8 sps:$4 sm:$0xff]  }
 0x814   :  { %4824 = vmatprep.subr.bf16.mxu1 %v6075_v50  ;;  %4867 = vmatprep.subr.bf16.mxu0 %v6078_v12  ;;  %v6108_v59 = vld [vmem:[#allocation11 + $0x334] ss:$8 sps:$4 sm:$0xff]   ;;  %v6103_v50 = vld [vmem:[#allocation11 + $0x230] ss:$8 sps:$4 sm:$0xff]  }
 0x815   :  { %v6106_v12 = vld [vmem:[#allocation11 + $0x330] ss:$8 sps:$4 sm:$0xff]  }
 0x817   :  { %4825 = vmatpush2.bf16.msra.mxu1 %v6073_v11  ;;  %4868 = vmatpush2.bf16.msra.mxu0 %v6076_v20  ;;  %v6111_v11 = vld [vmem:[#allocation11 + $0x224] ss:$8 sps:$4 sm:$0xff]  }
 0x818   :  { %4880 = vmatprep.subr.bf16.mxu1 %v6081_v51  ;;  %4923 = vmatprep.subr.bf16.mxu0 %v6084_v56  ;;  %v6114_v20 = vld [vmem:[#allocation11 + $0x324] ss:$8 sps:$4 sm:$0xff]   ;;  %v6109_v51 = vld [vmem:[#allocation11 + $0x220] ss:$8 sps:$4 sm:$0xff]  }
 0x819   :  { %v6112_v56 = vld [vmem:[#allocation11 + $0x320] ss:$8 sps:$4 sm:$0xff]  }
 0x85a   :  { %v3852_v1 = vpop.f32.mrf.mxu1  ;;  %v3895_v48 = vpop.f32.mrf.mxu0 }
 0x85b   :  { %v3853_v15 = vadd.f32 %v3852_v1, %v3141_v13  ;;  %v3896_v16 = vadd.f32 %v3895_v48, %v3149_v2  ;;  %v6117_v1 = vld [vmem:[#allocation11 + $0x214] ss:$8 sps:$4 sm:$0xff]  }
 0x85c   :  { %v3854_v14 = vpop.f32.mrf.mxu1  ;;  %v3897_v3 = vpop.f32.mrf.mxu0  ;;  %v6120_v48 = vld [vmem:[#allocation11 + $0x314] ss:$8 sps:$4 sm:$0xff]  }
 0x85d   :  { %v3855_v36 = vadd.f32 %v3854_v14, %v3145_v60  ;;  %v3898_v10 = vadd.f32 %v3897_v3, %v3153_v62  ;;  %v3990_v30 = vmax.f32 %v3853_v15, 0.0  ;;  %v3992_v28 = vmax.f32 %v3896_v16, 0.0  ;;  %v6121_v14 = vld [vmem:[#allocation11 + $0x200] ss:$8 sps:$4 sm:$0xff]  }
 0x85e   :  { %v3856_v5 = vpop.f32.mrf.mxu1  ;;  %v3899_v22 = vpop.f32.mrf.mxu0  ;;  %v6124_v3 = vld [vmem:[#allocation11 + $0x300] ss:$8 sps:$4 sm:$0xff]  }
 0x85f   :  { %v3857_v19 = vadd.f32 %v3856_v5, %v3141_v13  ;;  %v3900_v7 = vadd.f32 %v3899_v22, %v3149_v2  ;;  %v3991_v23 = vmax.f32 %v3855_v36, 0.0  ;;  %v3993_v26 = vmax.f32 %v3898_v10, 0.0  ;;  %v6123_v13 = vld [vmem:[#allocation11 + $0x204] ss:$8 sps:$4 sm:$0xff]   ;;  %v6129_v5 = vld [vmem:[#allocation11 + $0x2f4] ss:$8 sps:$4 sm:$0xff]  }
 0x860   :  { %v3858_v25 = vpop.f32.mrf.mxu1  ;;  %v3901_v24 = vpop.f32.mrf.mxu0  ;;  %v6126_v2 = vld [vmem:[#allocation11 + $0x304] ss:$8 sps:$4 sm:$0xff]   ;;  %v6132_v22 = vld [vmem:[#allocation11 + $0x3f4] ss:$8 sps:$4 sm:$0xff]   ;;  %v6127_v36 = vld [vmem:[#allocation11 + $0x2f0] ss:$8 sps:$4 sm:$0xff]  }
 0x861   :  { %v3859_v42 = vadd.f32 %v3858_v25, %v3145_v60  ;;  %v3902_v33 = vadd.f32 %v3901_v24, %v3153_v62  ;;  %v3998_v57 = vmax.f32 %v3857_v19, 0.0  ;;  %v4000_v18 = vmax.f32 %v3900_v7, 0.0  ;;  %v6115_v60 = vld [vmem:[#allocation11 + $0x210] ss:$8 sps:$4 sm:$0xff]   ;;  %v6135_v19 = vld [vmem:[#allocation11 + $0x2e4] ss:$8 sps:$4 sm:$0xff]  }
 0x862   :  { %v6118_v62 = vld [vmem:[#allocation11 + $0x310] ss:$8 sps:$4 sm:$0xff]   ;;  %v6138_v7 = vld [vmem:[#allocation11 + $0x3e4] ss:$8 sps:$4 sm:$0xff]   ;;  %v6133_v15 = vld [vmem:[#allocation11 + $0x2e0] ss:$8 sps:$4 sm:$0xff]  }
 0x863   :  { %v3999_v32 = vmax.f32 %v3859_v42, 0.0  ;;  %v4001_v41 = vmax.f32 %v3902_v33, 0.0  ;;  %v4006_v46 = vpack.c.bf16 %v3998_v57, %v3990_v30  ;;  %v4008_v35 = vpack.c.bf16 %v4000_v18, %v3992_v28  ;;  %v6130_v10 = vld [vmem:[#allocation11 + $0x3f0] ss:$8 sps:$4 sm:$0xff]   ;;  %v6136_v16 = vld [vmem:[#allocation11 + $0x3e0] ss:$8 sps:$4 sm:$0xff]  }
 0x864   :  { %v6141_v25 = vld [vmem:[#allocation11 + $0x2d4] ss:$8 sps:$4 sm:$0xff]   ;;  %v6139_v42 = vld [vmem:[#allocation11 + $0x2d0] ss:$8 sps:$4 sm:$0xff]   ;;  %v6147_v57 = vld [vmem:[#allocation11 + $0x2c4] ss:$8 sps:$4 sm:$0xff]  }
 0x865   :  { %v4007_v61 = vpack.c.bf16 %v3999_v32, %v3991_v23  ;;  %v4009_v29 = vpack.c.bf16 %v4001_v41, %v3993_v26  ;;  %v6144_v24 = vld [vmem:[#allocation11 + $0x3d4] ss:$8 sps:$4 sm:$0xff]   ;;  %v6142_v33 = vld [vmem:[#allocation11 + $0x3d0] ss:$8 sps:$4 sm:$0xff]   ;;  %v6150_v18 = vld [vmem:[#allocation11 + $0x3c4] ss:$8 sps:$4 sm:$0xff]  }
 0x866   :  { %v6145_v23 = vld [vmem:[#allocation11 + $0x2c0] ss:$8 sps:$4 sm:$0xff]   ;;  %v6153_v32 = vld [vmem:[#allocation11 + $0x2b4] ss:$8 sps:$4 sm:$0xff]   ;;  %v6151_v30 = vld [vmem:[#allocation11 + $0x2b0] ss:$8 sps:$4 sm:$0xff]  }
 0x867   :  { %4826 = vmatprep.mubr.bf16.mxu1 %v4007_v61  ;;  %4869 = vmatprep.mubr.bf16.mxu0 %v4009_v29  ;;  %v6148_v26 = vld [vmem:[#allocation11 + $0x3c0] ss:$8 sps:$4 sm:$0xff]   ;;  %v6156_v41 = vld [vmem:[#allocation11 + $0x3b4] ss:$8 sps:$4 sm:$0xff]   ;;  %v6154_v28 = vld [vmem:[#allocation11 + $0x3b0] ss:$8 sps:$4 sm:$0xff]  }
 0x868   :  { %4827 = vmatmul.mubr.bf16.vlgmr.msra.gmra.mxu1 %v4006_v46  ;;  %4870 = vmatmul.mubr.bf16.vlgmr.msra.gmra.mxu0 %v4008_v35  ;;  %v6159_v61 = vld [vmem:[#allocation11 + $0x2a4] ss:$8 sps:$4 sm:$0xff]   ;;  %v6157_v46 = vld [vmem:[#allocation11 + $0x2a0] ss:$8 sps:$4 sm:$0xff]  }
 0x869   :  { %4881 = vmatpush1.bf16.msra.mxu1 %v6079_v39  ;;  %4924 = vmatpush1.bf16.msra.mxu0 %v6082_v34  ;;  %v6162_v29 = vld [vmem:[#allocation11 + $0x3a4] ss:$8 sps:$4 sm:$0xff]   ;;  %v3168_v39 = vsub.s32 7, %v6529_v40  ;;  %v3164_v34 = vsub.s32 6, %v6529_v40  ;;  %v6160_v35 = vld [vmem:[#allocation11 + $0x3a0] ss:$8 sps:$4 sm:$0xff]  }
 0x86a   :  { %4882 = vmatprep.subr.bf16.mxu1 %v6087_v37  ;;  %4925 = vmatprep.subr.bf16.mxu0 %v6090_v47 }
 0x86d   :  { %4883 = vmatpush1.bf16.msra.mxu1 %v6085_v53  ;;  %4926 = vmatpush1.bf16.msra.mxu0 %v6088_v44  ;;  %v6165_v53 = vld [vmem:[#allocation11 + $0x294] ss:$8 sps:$4 sm:$0xff]  }
 0x86e   :  { %4884 = vmatprep.subr.bf16.mxu1 %v6093_v49  ;;  %4927 = vmatprep.subr.bf16.mxu0 %v6096_v6  ;;  %v6168_v44 = vld [vmem:[#allocation11 + $0x394] ss:$8 sps:$4 sm:$0xff]   ;;  %v3161_v49 = vrot.slane %v7070_v21, %v252_v9  ;;  %v3169_v6 = vrot.slane %v7070_v21, %v3168_v39  ;;  %v6174_v9 = vld [vmem:[#allocation11 + $0x384] ss:$8 sps:$4 sm:$0xff]  }
 0x871   :  { %4885 = vmatpush1.bf16.msra.mxu1 %v6091_v0  ;;  %4928 = vmatpush1.bf16.msra.mxu0 %v6094_v63  ;;  %v3157_v0 = vrot.slane %v7070_v21, %v248_v8  ;;  %v3165_v63 = vrot.slane %v7070_v21, %v3164_v34 }
 0x872   :  { %4886 = vmatprep.subr.bf16.mxu1 %v6099_v52  ;;  %4929 = vmatprep.subr.bf16.mxu0 %v6102_v4 }
 0x875   :  { %4887 = vmatpush1.bf16.msra.mxu1 %v6097_v55  ;;  %4930 = vmatpush1.bf16.msra.mxu0 %v6100_v58  ;;  %v6163_v55 = vld [vmem:[#allocation11 + $0x290] ss:$8 sps:$4 sm:$0xff]  }
 0x876   :  { %4888 = vmatprep.subr.bf16.mxu1 %v6105_v54  ;;  %4931 = vmatprep.subr.bf16.mxu0 %v6108_v59  ;;  %v6166_v58 = vld [vmem:[#allocation11 + $0x390] ss:$8 sps:$4 sm:$0xff]  }
 0x879   :  { %4889 = vmatpush1.bf16.msra.mxu1 %v6103_v50  ;;  %4932 = vmatpush1.bf16.msra.mxu0 %v6106_v12  ;;  %v6171_v50 = vld [vmem:[#allocation11 + $0x284] ss:$8 sps:$4 sm:$0xff]  }
 0x87a   :  { %4890 = vmatprep.subr.bf16.mxu1 %v6111_v11  ;;  %4933 = vmatprep.subr.bf16.mxu0 %v6114_v20 }
 0x87d   :  { %4891 = vmatpush1.bf16.msra.mxu1 %v6109_v51  ;;  %4934 = vmatpush1.bf16.msra.mxu0 %v6112_v56 }
 0x87e   :  { %4892 = vmatprep.subr.bf16.mxu1 %v6117_v1  ;;  %4935 = vmatprep.subr.bf16.mxu0 %v6120_v48 }
 0x881   :  { %4893 = vmatpush1.bf16.msra.mxu1 %v6115_v60  ;;  %4936 = vmatpush1.bf16.msra.mxu0 %v6118_v62  ;;  %v6169_v60 = vld [vmem:[#allocation11 + $0x280] ss:$8 sps:$4 sm:$0xff]  }
 0x882   :  { %4894 = vmatprep.subr.bf16.mxu1 %v6123_v13  ;;  %4937 = vmatprep.subr.bf16.mxu0 %v6126_v2  ;;  %v6172_v62 = vld [vmem:[#allocation11 + $0x380] ss:$8 sps:$4 sm:$0xff]  }
 0x885   :  { %4895 = vmatpush1.bf16.msra.mxu1 %v6121_v14  ;;  %4938 = vmatpush1.bf16.msra.mxu0 %v6124_v3 }
 0x886   :  { %4896 = vmatprep.subr.bf16.mxu1 %v6129_v5  ;;  %4939 = vmatprep.subr.bf16.mxu0 %v6132_v22 }
 0x889   :  { %4897 = vmatpush2.bf16.msra.mxu1 %v6127_v36  ;;  %4940 = vmatpush2.bf16.msra.mxu0 %v6130_v10 }
 0x88a   :  { %4898 = vmatprep.subr.bf16.mxu1 %v6135_v19  ;;  %4941 = vmatprep.subr.bf16.mxu0 %v6138_v7 }
 0x88d   :  { %4899 = vmatpush2.bf16.msra.mxu1 %v6133_v15  ;;  %4942 = vmatpush2.bf16.msra.mxu0 %v6136_v16 }
 0x88e   :  { %4900 = vmatprep.subr.bf16.mxu1 %v6141_v25  ;;  %4943 = vmatprep.subr.bf16.mxu0 %v6144_v24 }
 0x891   :  { %4901 = vmatpush2.bf16.msra.mxu1 %v6139_v42  ;;  %4944 = vmatpush2.bf16.msra.mxu0 %v6142_v33  ;;  %v4142_v42 = vld [vmem:[%s7127_s10] sm:$0x3] }
 0x892   :  { %4902 = vmatprep.subr.bf16.mxu1 %v6147_v57  ;;  %4945 = vmatprep.subr.bf16.mxu0 %v6150_v18  ;;  %v4147_v18 = vrot.slane %v4142_v42, %v6534_v43 }
 0x895   :  { %4903 = vmatpush2.bf16.msra.mxu1 %v6145_v23  ;;  %4946 = vmatpush2.bf16.msra.mxu0 %v6148_v26  ;;  %v4151_v23 = vrot.slane %v4142_v42, %v6537_v45 }
 0x896   :  { %4904 = vmatprep.subr.bf16.mxu1 %v6153_v32  ;;  %4947 = vmatprep.subr.bf16.mxu0 %v6156_v41 }
 0x899   :  { %4905 = vmatpush2.bf16.msra.mxu1 %v6151_v30  ;;  %4948 = vmatpush2.bf16.msra.mxu0 %v6154_v28 }
 0x89a   :  { %v3938_v37 = vpop.f32.mrf.mxu1  ;;  %v3981_v47 = vpop.f32.mrf.mxu0  ;;  %4906 = vmatprep.subr.bf16.mxu1 %v6159_v61  ;;  %4949 = vmatprep.subr.bf16.mxu0 %v6162_v29 }
 0x89b   :  { %v3939_v51 = vadd.f32 %v3938_v37, %v3157_v0  ;;  %v3982_v8 = vadd.f32 %v3981_v47, %v3165_v63 }
 0x89c   :  { %v3940_v52 = vpop.f32.mrf.mxu1  ;;  %v3983_v4 = vpop.f32.mrf.mxu0 }
 0x89d   :  { %4907 = vmatpush2.bf16.msra.mxu1 %v6157_v46  ;;  %4950 = vmatpush2.bf16.msra.mxu0 %v6160_v35  ;;  %v3941_v12 = vadd.f32 %v3940_v52, %v3161_v49  ;;  %v3984_v11 = vadd.f32 %v3983_v4, %v3169_v6  ;;  %v3994_v36 = vmax.f32 %v3939_v51, 0.0  ;;  %v3996_v10 = vmax.f32 %v3982_v8, 0.0 }
 0x89e   :  { %v3942_v54 = vpop.f32.mrf.mxu1  ;;  %v3985_v59 = vpop.f32.mrf.mxu0  ;;  %4908 = vmatprep.subr.bf16.mxu1 %v6165_v53  ;;  %4951 = vmatprep.subr.bf16.mxu0 %v6168_v44 }
 0x89f   :  { %v3943_v20 = vadd.f32 %v3942_v54, %v3157_v0  ;;  %v3986_v40 = vadd.f32 %v3985_v59, %v3165_v63  ;;  %v3995_v14 = vmax.f32 %v3941_v12, 0.0  ;;  %v3997_v3 = vmax.f32 %v3984_v11, 0.0 }
 0x8a0   :  { %v3944_v56 = vpop.f32.mrf.mxu1  ;;  %v3987_v21 = vpop.f32.mrf.mxu0 }
 0x8a1   :  { %v3945_v1 = vadd.f32 %v3944_v56, %v3161_v49  ;;  %v3988_v48 = vadd.f32 %v3987_v21, %v3169_v6  ;;  %4909 = vmatpush2.bf16.msra.mxu1 %v6163_v55  ;;  %4952 = vmatpush2.bf16.msra.mxu0 %v6166_v58  ;;  %v4002_v13 = vmax.f32 %v3943_v20, 0.0  ;;  %v4004_v2 = vmax.f32 %v3986_v40, 0.0 }
 0x8a2   :  { %4910 = vmatprep.subr.bf16.mxu1 %v6171_v50  ;;  %4953 = vmatprep.subr.bf16.mxu0 %v6174_v9 }
 0x8a3   :  { %v4003_v5 = vmax.f32 %v3945_v1, 0.0  ;;  %v4005_v22 = vmax.f32 %v3988_v48, 0.0  ;;  %v4010_v15 = vpack.c.bf16 %v4002_v13, %v3994_v36  ;;  %v4012_v16 = vpack.c.bf16 %v4004_v2, %v3996_v10 }
 0x8a5   :  { %v4011_v19 = vpack.c.bf16 %v4003_v5, %v3995_v14  ;;  %v4013_v7 = vpack.c.bf16 %v4005_v22, %v3997_v3  ;;  %4911 = vmatpush2.bf16.msra.mxu1 %v6169_v60  ;;  %4954 = vmatpush2.bf16.msra.mxu0 %v6172_v62 }
 0x8a7   :  { %4912 = vmatprep.mubr.bf16.mxu1 %v4011_v19  ;;  %4955 = vmatprep.mubr.bf16.mxu0 %v4013_v7 }
 0x8a8   :  { %4913 = vmatmul.mubr.bf16.vlgmr.msra.gmra.mxu1 %v4010_v15  ;;  %4956 = vmatmul.mubr.bf16.vlgmr.msra.gmra.mxu0 %v4012_v16  ;;  %v4970_v16 = vld [vmem:[%s7128_s11] sm:$0x3]  ;;  %s6419_s11 = smov [#allocation13]  }
 0x8a9   :  { %v5012_v42 = vrot.slane %v4970_v16, %v6537_v45 }
 0x928   :  { %v4828_v25 = vpop.f32.mrf.mxu1  ;;  %v4871_v24 = vpop.f32.mrf.mxu0 }
 0x929   :  { %v4829_v41 = vadd.f32 %v4828_v25, %v4147_v18  ;;  %v4971_v25 = vld [vmem:[%s7129_s12] sm:$0x3]  ;;  %s5043_s12 = sshll.u32 %s6419_s11, 4  ;;  %s5044_s12 = int_to_ptr.vmem [resolvable:$true] %s5043_s12 }
 0x92a   :  { %v4830_v33 = vpop.f32.mrf.mxu1  ;;  %v4873_v57 = vpop.f32.mrf.mxu0  ;;  %s6371_s17 = scalar_lea.vmem %s5044_s12, 512  ;;  %p6376_p3 = scmp.lt.s32.totalorder %s5044_s12, %s5044_s12 }
 0x92b   :  { %v4831_v30 = vadd.f32 %v4830_v33, %v4151_v23  ;;  %v4872_v29 = vadd.f32 %v4871_v24, %v4829_v41  ;;  %v5008_v24 = vrot.slane %v4970_v16, %v6534_v43  ;;  %p6372_p2 = scmp.ne.s32.totalorder %s5044_s12, %s6371_s17  ;;  %p6377_p4 = scmp.lt.s32.totalorder %s6371_s17, %s6371_s17 }
 0x92c   :  { %v4832_v26 = vpop.f32.mrf.mxu1  ;;  %v4875_v32 = vpop.f32.mrf.mxu0 }
 0x92d   :  { %v4833_v39 = vadd.f32 %v4832_v26, %v4147_v18  ;;  %v4874_v35 = vadd.f32 %v4873_v57, %v4831_v30  ;;  %v5027_v26 = vrot.slane %v4971_v25, %v6537_v45  ;;  %p6378_p5 = por %p6377_p4, %p6376_p3 }
 0x92e   :  { %v4834_v28 = vpop.f32.mrf.mxu1  ;;  %v4877_v61 = vpop.f32.mrf.mxu0 }
 0x92f   :  { %v4835_v37 = vadd.f32 %v4834_v28, %v4151_v23  ;;  %v4876_v49 = vadd.f32 %v4875_v32, %v4833_v39  ;;  %v5023_v23 = vrot.slane %v4971_v25, %v6534_v43  ;;  %p6379_p6 = pnand %p6378_p5, %p6372_p2 }
 0x931   :  { %v4878_v4 = vadd.f32 %v4877_v61, %v4835_v37 }
 0x968   :  { %v4914_v34 = vpop.f32.mrf.mxu1  ;;  %v4957_v46 = vpop.f32.mrf.mxu0 }
 0x969   :  { %v4915_v47 = vadd.f32 %v4914_v34, %v4872_v29 }
 0x96a   :  { %v4916_v53 = vpop.f32.mrf.mxu1  ;;  %v4959_v44 = vpop.f32.mrf.mxu0 }
 0x96b   :  { %v4958_v6 = vadd.f32 %v4957_v46, %v4915_v47  ;;  %v4917_v0 = vadd.f32 %v4916_v53, %v4874_v35 }
 0x96c   :  { %v4918_v63 = vpop.f32.mrf.mxu1  ;;  %v4961_v52 = vpop.f32.mrf.mxu0 }
 0x96d   :  { %v4960_v55 = vadd.f32 %v4959_v44, %v4917_v0  ;;  %v4919_v58 = vadd.f32 %v4918_v63, %v4876_v49  ;;  %v4966_v59 = vadd.f32 %v4958_v6, %v7053_v38 }
 0x96e   :  { %v4920_v54 = vpop.f32.mrf.mxu1  ;;  %v4963_v11 = vpop.f32.mrf.mxu0 }
 0x96f   :  { %v4967_v50 = vadd.f32 %v4960_v55, %v7049_v17  ;;  %v4962_v9 = vadd.f32 %v4961_v52, %v4919_v58  ;;  %v4921_v12 = vadd.f32 %v4920_v54, %v4878_v4 }
 0x971   :  { %v4964_v20 = vadd.f32 %v4963_v11, %v4921_v12  ;;  %v4972_v40 = vadd.f32 %v4967_v50, %v4966_v59  ;;  %v4968_v51 = vadd.f32 %v4962_v9, %v7055_v31 }
 0x973   :  { %v4969_v8 = vadd.f32 %v4964_v20, %v7051_v27  ;;  %4973 = vadd.xlane.f32.xlu1 %v4972_v40 }
 0x975   :  { %v4975_v56 = vadd.f32 %v4969_v8, %v4968_v51 }
 0x977   :  { %4976 = vadd.xlane.f32.xlu0 %v4975_v56 }
 0x9fc   :  { %v4974_v21 = vpop.xlane.xlu1 %4973 }
 0x9fd   :  { %v4978_v1 = vmul.f32 0.00390625, %v4974_v21 }
 0x9ff   :  { %v4980_v48 = vsub.f32 %v4966_v59, %v4978_v1  ;;  %v4981_v60 = vsub.f32 %v4967_v50, %v4978_v1 }
 0xa00   :  { %v4977_v62 = vpop.xlane.xlu0 %4976 }
 0xa01   :  { %v4979_v38 = vmul.f32 0.00390625, %v4977_v62  ;;  %v4984_v13 = vmul.f32 %v4980_v48, %v4980_v48  ;;  %v4985_v17 = vmul.f32 %v4981_v60, %v4981_v60 }
 0xa03   :  { %v4982_v2 = vsub.f32 %v4968_v51, %v4979_v38  ;;  %v4983_v14 = vsub.f32 %v4969_v8, %v4979_v38  ;;  %v4988_v3 = vadd.f32 %v4985_v17, %v4984_v13 }
 0xa05   :  { %4989 = vadd.xlane.f32.xlu1 %v4988_v3  ;;  %v4986_v5 = vmul.f32 %v4982_v2, %v4982_v2  ;;  %v4987_v22 = vmul.f32 %v4983_v14, %v4983_v14 }
 0xa07   :  { %v4991_v31 = vadd.f32 %v4987_v22, %v4986_v5 }
 0xa09   :  { %4992 = vadd.xlane.f32.xlu0 %v4991_v31 }
 0xa8e   :  { %v4990_v27 = vpop.xlane.xlu1 %4989 }
 0xa8f   :  { %v4994_v36 = vmul.f32 0.00390625, %v4990_v27 }
 0xa91   :  { %v4996_v10 = vadd.f32 1e-05, %v4994_v36 }
 0xa92   :  { %v4993_v19 = vpop.xlane.xlu0 %4992 }
 0xa93   :  { %6243 = vrsqrt.f32 %v4996_v10  ;;  %v4995_v7 = vmul.f32 0.00390625, %v4993_v19 }
 0xa95   :  { %v4997_v15 = vadd.f32 1e-05, %v4995_v7 }
 0xa97   :  { %6245 = vrsqrt.f32 %v4997_v15 }
 0xaa0   :  { %v6244_v33 = vpop.eup %6243 }
 0xaa1   :  { %v5000_v57 = vmul.f32 %v6244_v33, %v4980_v48  ;;  %v5001_v18 = vmul.f32 %v6244_v33, %v4981_v60 }
 0xaa3   :  { %v5015_v32 = vmul.f32 %v5008_v24, %v5000_v57  ;;  %v5016_v41 = vmul.f32 %v5012_v42, %v5001_v18 }
 0xaa4   :  { %v6246_v30 = vpop.eup %6245 }
 0xaa5   :  { %v5002_v28 = vmul.f32 %v6246_v30, %v4982_v2  ;;  %v5003_v61 = vmul.f32 %v6246_v30, %v4983_v14  ;;  %v5030_v29 = vadd.f32 %v5023_v23, %v5015_v32  ;;  %v5031_v39 = vadd.f32 %v5027_v26, %v5016_v41 }
 0xaa7   :  { %v5017_v34 = vmul.f32 %v5008_v24, %v5002_v28  ;;  %v5018_v46 = vmul.f32 %v5012_v42, %v5003_v61  ;;  %5034 = vst [vmem:[#allocation13] sm:$0xff] %v5030_v29  ;;  %5035 = vst [vmem:[#allocation13 + $0x8] sm:$0xff] %v5031_v39 }
 0xaa9   :  { %v5032_v35 = vadd.f32 %v5023_v23, %v5017_v34  ;;  %v5033_v37 = vadd.f32 %v5027_v26, %v5018_v46 }
 0xaab   :  { %5036 = vst [vmem:[#allocation13 + $0x10] sm:$0xff] %v5032_v35  ;;  %5037 = vst [vmem:[#allocation13 + $0x18] sm:$0xff] %v5033_v37 }
 0xaac   :  { %6382 = shalt.err (!%p6379_p6)
}
 0xaad   :  { %5049 = dma.vmem_to_hbm [thread:$0]  %s5044_s12, 512, %s7130_s13, [#allocation4], %s6408_s24, %s6408_s24, %s6409_s25  }
 0xaae   :  { %6399 = dma.done.wait [#allocation4], 512  }
 0xaaf   :  { %6400 = vsyncadd [#allocation4], 4294966784 }
 0xab0   :  { %5053 = vsyncpa [#allocation3], 1 }
 0xab1   :  { %5054 = vsyncpa [#allocation6], 1 }
 0xab2   :  { %5055 = vsyncpa [#allocation9], 1 }
 0xab3   :  { %5056 = vsyncpa [#allocation12], 1 }
 0xab4   :  { %5057 = vsyncpa [#allocation4], 1 }

</bundles_post_ra>
